<compile_context>
chip_gen: v5e
topology: v5e:2x2
jax: 0.10.0
libtpu: 0.0.40
codegen_flags: <defaults>
</compile_context>

<pallas_src>
import functools

import jax
import jax.numpy as jnp
from jax import lax
from jax.experimental import pallas as pl
from jax.experimental.pallas import tpu as pltpu


def _cdiv(a, b):
    return (a + b - 1) // b


def _round_up(n, m):
    return _cdiv(n, m) * m


def _pad_axis(a, target, axis):
    pad = target - a.shape[axis]
    if pad <= 0:
        return a
    widths = [(0, 0)] * a.ndim
    widths[axis] = (0, pad)
    return jnp.pad(a, widths)


def _pad_gates(w, H, GP):
    """(rows, 3H) with [r|z|n] gates -> (rows, 3*GP) with each gate in its own
    zero-padded 128-lane slab [r|0 | z|0 | n|0]."""
    r, z, n = w[:, :H], w[:, H:2 * H], w[:, 2 * H:3 * H]
    return jnp.concatenate(
        [_pad_axis(r, GP, 1), _pad_axis(z, GP, 1), _pad_axis(n, GP, 1)], axis=1)


def _choose_batch_tiling(B):
    """Static batch tiling: >=2 parallel tiles when there is enough work
    (v7x: 2 TensorCores), per-block rows capped so VMEM stays bounded."""
    B8 = _round_up(B, 8)
    num_blocks = 2 if B8 >= 16 else 1
    num_blocks = max(num_blocks, _cdiv(B8, 256))
    B_BLK = _round_up(_cdiv(B8, num_blocks), 8)
    num_blocks = _cdiv(B8, B_BLK)
    return B_BLK, num_blocks, B_BLK * num_blocks


# ----------------------------------------------------------------------------
# Fused kernel: GRU recurrence (PyTorch gate order r,z,n) + predictor MLP.
# Gate slabs are GP = round_up(H, 128) lanes wide; padding is exactly zero.
# ----------------------------------------------------------------------------
def _fused_kernel(T, B, GP,
                  past_ref,     # (T, B, F)     time-major past, this batch block
                  xc_ref,       # (B, XCW)      conditional features
                  wih_ref,      # (F, 3*GP)
                  whh_ref,      # (GP, 3*GP)
                  ball_ref,     # (1, 3*GP)     b_ih + [b_hh_r, b_hh_z, 0], gate-padded
                  bhn_ref,      # (1, GP)       b_hh_n
                  w1e_ref,      # (GP, MLP_PAD)
                  w1x_ref,      # (XCW, MLP_PAD)
                  b1_ref,       # (1, MLP_PAD)
                  scale_ref,    # (1, MLP_PAD)  BN eval-mode folded scale
                  shift_ref,    # (1, MLP_PAD)  BN eval-mode folded shift
                  w2_ref,       # (MLP_PAD, OUT_PAD)
                  b2_ref,       # (1, OUT_PAD)
                  out_ref,      # (B, OUT_PAD)
                  gi_scr):      # VMEM scratch (T, B, 3*GP)
    unroll = True if T <= 32 else 8

    # ---- hoisted input projection for all timesteps (off the serial path) ---
    wih = wih_ref[...]
    ball_b = jnp.broadcast_to(ball_ref[...], (B, 3 * GP))   # hoisted broadcast

    def proj(t, carry):
        gi_scr[t] = (jnp.dot(past_ref[t], wih,
                             preferred_element_type=jnp.float32) + ball_b)
        return carry

    lax.fori_loop(0, T, proj, 0, unroll=unroll)

    # ---- GRU recurrence: only h @ W_hh stays on the serial chain ------------
    whh = whh_ref[...]
    bhn_b = jnp.broadcast_to(bhn_ref[...], (B, GP))          # hoisted broadcast

    def step(t, h):
        g = gi_scr[t]                                        # (B, 3*GP) aligned
        gh = jnp.dot(h, whh, preferred_element_type=jnp.float32)
        rz = jax.nn.sigmoid(g[:, :2 * GP] + gh[:, :2 * GP])  # one fused sigmoid
        r = rz[:, :GP]                                       # vreg-aligned slabs
        z = rz[:, GP:]
        n = jnp.tanh(g[:, 2 * GP:] + r * (gh[:, 2 * GP:] + bhn_b))
        return (1.0 - z) * n + z * h

    h0 = jnp.zeros((B, GP), jnp.float32)
    encoding = lax.fori_loop(0, T, step, h0, unroll=unroll)  # (B, GP)

    # ---- fused predictor: Linear -> ReLU -> BN(eval, folded) -> Linear ------
    # concat(encoding, xc) expressed as split matmul: enc@W1[:GP] + xc@W1[GP:]
    h1 = (jnp.dot(encoding, w1e_ref[...], preferred_element_type=jnp.float32)
          + jnp.dot(xc_ref[...], w1x_ref[...], preferred_element_type=jnp.float32)
          + b1_ref[...])
    h1 = jnp.maximum(h1, 0.0)                     # ReLU ('mimic' branch)
    h1 = h1 * scale_ref[...] + shift_ref[...]     # BatchNorm1d eval mode, folded
    out_ref[...] = (jnp.dot(h1, w2_ref[...], preferred_element_type=jnp.float32)
                    + b2_ref[...])


def _full_spec(a):
    nd = a.ndim
    return pl.BlockSpec(a.shape, lambda i, _nd=nd: (0,) * _nd)


def _fused_forward_call(past3d, xc, prepped, *, T, B_pad, B_BLK, num_blocks,
                        GP, MLP_PAD, OUT_PAD):
    F = past3d.shape[2]
    XCW = xc.shape[1]
    weights = (prepped["w_ih_t"], prepped["w_hh_t"], prepped["b_all"],
               prepped["b_hn"], prepped["w1e"], prepped["w1x"], prepped["b1"],
               prepped["scale"], prepped["shift"], prepped["w2"], prepped["b2"])

    flops = int(2 * T * B_pad * F * 3 * GP          # hoisted input projection
                + 2 * T * B_pad * GP * 3 * GP       # recurrence matmuls
                + 2 * B_pad * (GP + XCW) * MLP_PAD  # first linear (split matmul)
                + 2 * B_pad * MLP_PAD * OUT_PAD)    # second linear
    transcendentals = int(T * B_pad * 3 * GP)       # sigmoids + tanh per step
    bytes_accessed = int((past3d.size + xc.size
                          + sum(w.size for w in weights)
                          + B_pad * OUT_PAD) * 4)

    in_specs = ([pl.BlockSpec((T, B_BLK, F), lambda i: (0, i, 0)),
                 pl.BlockSpec((B_BLK, XCW), lambda i: (i, 0))]
                + [_full_spec(w) for w in weights])
    out_specs = pl.BlockSpec((B_BLK, OUT_PAD), lambda i: (i, 0))

    return pl.pallas_call(
        functools.partial(_fused_kernel, T, B_BLK, GP),
        out_shape=jax.ShapeDtypeStruct((B_pad, OUT_PAD), jnp.float32),
        grid=(num_blocks,),
        in_specs=in_specs,
        out_specs=out_specs,
        scratch_shapes=[pltpu.VMEM((T, B_BLK, 3 * GP), jnp.float32)],
        compiler_params=pltpu.CompilerParams(
            dimension_semantics=("parallel",),
            vmem_limit_bytes=32 * 1024 * 1024),
        cost_estimate=pl.CostEstimate(flops=flops,
                                      transcendentals=transcendentals,
                                      bytes_accessed=bytes_accessed),
    )(past3d, xc, *weights)


# ----------------------------------------------------------------------------
# One-time parameter folding / padding (run OUTSIDE the per-call jitted path).
# ----------------------------------------------------------------------------
def prepare_params(params):
    H = params["w_hh_t"].shape[0]
    GP = _round_up(H, 128)                       # lane-aligned gate slab width
    mlp = params["w1_t"].shape[1]
    MLP_PAD = _round_up(mlp, 128)
    out_dim = params["w2_t"].shape[1]
    OUT_PAD = _round_up(out_dim, 128)

    # GRU bias precombine: r/z hidden biases folded into the hoisted bias,
    # n-gate hidden bias kept separate (needed inside r * (.) per PyTorch GRU).
    b_ih, b_hh = params["b_ih"], params["b_hh"]
    b_all = b_ih + jnp.concatenate(
        [b_hh[:, :2 * H], jnp.zeros_like(b_hh[:, 2 * H:])], axis=1)

    # BatchNorm1d eval-mode fold: y = h*scale + shift
    scale = params["gamma"] * lax.rsqrt(params["run_var"] + 1e-5)
    shift = params["beta"] - params["run_mean"] * scale

    prepped = {
        "w_ih_t": _pad_gates(params["w_ih_t"], H, GP),                  # (F, 3GP)
        "w_hh_t": _pad_axis(_pad_gates(params["w_hh_t"], H, GP), GP, 0),  # (GP, 3GP)
        "b_all": _pad_gates(b_all, H, GP),                              # (1, 3GP)
        "b_hn": _pad_axis(b_hh[:, 2 * H:], GP, 1),                      # (1, GP)
        "w1e": _pad_axis(_pad_axis(params["w1_t"][:H], GP, 0), MLP_PAD, 1),
        "w1x": _pad_axis(params["w1_t"][H:], MLP_PAD, 1),
        "b1": _pad_axis(params["b1"], MLP_PAD, 1),
        "scale": _pad_axis(scale, MLP_PAD, 1),
        "shift": _pad_axis(shift, MLP_PAD, 1),
        "w2": _pad_axis(_pad_axis(params["w2_t"], MLP_PAD, 0), OUT_PAD, 1),
        "b2": _pad_axis(params["b2"], OUT_PAD, 1),
    }
    return jax.tree_util.tree_map(lambda a: a.astype(jnp.float32), prepped)


# ----------------------------------------------------------------------------
# Full module forward (deterministic=True): returns (mu, std)
# ----------------------------------------------------------------------------
@functools.partial(jax.jit, static_argnames=("feature_index", "prediction_size"))
def individual_feature_generator_forward(prepped, x, past, *, feature_index,
                                         prediction_size):
    B, F, T = past.shape
    GP = prepped["w_hh_t"].shape[0]
    MLP_PAD, OUT_PAD = prepped["w2"].shape

    B_BLK, num_blocks, B_pad = _choose_batch_tiling(B)

    # past: (B, F, T) -> time-major (T, B, F), batch padded to B_pad
    past3d = jnp.transpose(past, (2, 0, 1)).astype(jnp.float32)
    past3d = _pad_axis(past3d, B_pad, 1)

    # conditional branch: drop feature_index channel, pad time to prediction_size
    xr = x if x.ndim == 3 else x[:, :, None]
    xc = jnp.concatenate(
        [xr[:, :feature_index, :], xr[:, feature_index + 1:, :]], axis=1)
    num_to_pad = prediction_size - xc.shape[2]
    if num_to_pad > 0:
        xc = jnp.pad(xc, ((0, 0), (0, 0), (0, num_to_pad)))
    xc = xc.reshape(B, -1).astype(jnp.float32)               # (B, (F-1)*P)
    xc = _pad_axis(xc, B_pad, 0)

    out = _fused_forward_call(past3d, xc, prepped, T=T, B_pad=B_pad,
                              B_BLK=B_BLK, num_blocks=num_blocks, GP=GP,
                              MLP_PAD=MLP_PAD, OUT_PAD=OUT_PAD)

    P = prediction_size
    mu = out[:B, :P]
    std = out[:B, P:2 * P]
    return mu, std


# ----------------------------------------------------------------------------
# Pure-JAX reference (silent correctness check, uses the unpadded params)
# ----------------------------------------------------------------------------
def _reference_forward(params, x, past, feature_index, prediction_size):
    past_tbf = jnp.transpose(past, (2, 0, 1)).astype(jnp.float32)
    B = past_tbf.shape[1]
    H = params["w_hh_t"].shape[0]

    def step(h, x_t):
        gi = x_t @ params["w_ih_t"] + params["b_ih"]
        gh = h @ params["w_hh_t"] + params["b_hh"]
        r = jax.nn.sigmoid(gi[:, :H] + gh[:, :H])
        z = jax.nn.sigmoid(gi[:, H:2 * H] + gh[:, H:2 * H])
        n = jnp.tanh(gi[:, 2 * H:] + r * gh[:, 2 * H:])
        return (1.0 - z) * n + z * h, None

    h0 = jnp.zeros((B, H), jnp.float32)
    encoding, _ = lax.scan(step, h0, past_tbf)

    xr = x if x.ndim == 3 else x[:, :, None]
    xc = jnp.concatenate(
        [xr[:, :feature_index, :], xr[:, feature_index + 1:, :]], axis=1)
    pad = prediction_size - xc.shape[2]
    if pad > 0:
        xc = jnp.pad(xc, ((0, 0), (0, 0), (0, pad)))
    feat = jnp.concatenate([encoding, xc.reshape(xc.shape[0], -1)], axis=1)

    h1 = jnp.maximum(feat @ params["w1_t"] + params["b1"], 0.0)
    h1 = ((h1 - params["run_mean"]) * lax.rsqrt(params["run_var"] + 1e-5)
          * params["gamma"] + params["beta"])
    mu_std = h1 @ params["w2_t"] + params["b2"]
    half = mu_std.shape[1] // 2
    return mu_std[:, :half], mu_std[:, half:]


# ----------------------------------------------------------------------------
# Deterministic parameter init (synthetic; shapes match torch module __init__)
# ----------------------------------------------------------------------------
def init_params(key, feature_size, hidden_size, prediction_size, mlp_hidden=200):
    f_size = hidden_size + (feature_size - 1) * prediction_size
    ks = jax.random.split(key, 10)
    s = 0.1
    return {
        # GRU weights, stored transposed (in, 3H); gate order r,z,n as in torch
        "w_ih_t": s * jax.random.normal(ks[0], (feature_size, 3 * hidden_size), jnp.float32),
        "w_hh_t": s * jax.random.normal(ks[1], (hidden_size, 3 * hidden_size), jnp.float32),
        "b_ih": s * jax.random.normal(ks[2], (1, 3 * hidden_size), jnp.float32),
        "b_hh": s * jax.random.normal(ks[3], (1, 3 * hidden_size), jnp.float32),
        # predictor: Linear(f_size,200) -> ReLU -> BatchNorm1d(200) -> Linear(200, 2P)
        "w1_t": s * jax.random.normal(ks[4], (f_size, mlp_hidden), jnp.float32),
        "b1": s * jax.random.normal(ks[5], (1, mlp_hidden), jnp.float32),
        "gamma": 1.0 + 0.05 * jax.random.normal(ks[6], (1, mlp_hidden), jnp.float32),
        "beta": 0.05 * jax.random.normal(ks[7], (1, mlp_hidden), jnp.float32),
        "run_mean": 0.05 * jax.random.normal(ks[8], (1, mlp_hidden), jnp.float32),
        "run_var": jnp.ones((1, mlp_hidden), jnp.float32),
        "w2_t": s * jax.random.normal(ks[9], (mlp_hidden, 2 * prediction_size), jnp.float32),
        "b2": jnp.zeros((1, 2 * prediction_size), jnp.float32),
    }


if __name__ == "__main__":
    # Small shapes consistent with the module's forward.
    num_samples = 16      # B (>= 16 -> two "parallel" batch tiles for v7x)
    feature_size = 4      # F
    time_past = 16        # T
    time_forward = 1
    hidden_size = 32      # H
    prediction_size = 1   # P
    feature_index = 2

    key = jax.random.PRNGKey(0)
    kp, kx, kpast = jax.random.split(key, 3)
    params = init_params(kp, feature_size, hidden_size, prediction_size)

    # One-time parameter fold/pad (outside the per-call jitted path).
    prepped = prepare_params(params)

    x = jax.random.normal(kx, (num_samples, feature_size, time_forward), jnp.float32)
    past = jax.random.normal(kpast, (num_samples, feature_size, time_past), jnp.float32)

    mu, std = individual_feature_generator_forward(
        prepped, x, past, feature_index=feature_index,
        prediction_size=prediction_size)
    jax.block_until_ready((mu, std))

    mu_ref, std_ref = _reference_forward(params, x, past, feature_index,
                                         prediction_size)
    assert mu.shape == (num_samples, prediction_size)
    assert std.shape == (num_samples, prediction_size)
    assert jnp.allclose(mu, mu_ref, rtol=1e-4, atol=1e-4)
    assert jnp.allclose(std, std_ref, rtol=1e-4, atol=1e-4)

    print("KERNEL_OK")
</pallas_src>

<mosaic_0001>
module attributes {stable_mosaic.version = 11 : i64} {
  func.func @_fused_kernel(%arg0: i32, %arg1: memref<16x8x4xf32, #tpu.memory_space<vmem>>, %arg2: memref<8x3xf32, #tpu.memory_space<vmem>>, %arg3: memref<4x384xf32, #tpu.memory_space<vmem>>, %arg4: memref<128x384xf32, #tpu.memory_space<vmem>>, %arg5: memref<1x384xf32, #tpu.memory_space<vmem>>, %arg6: memref<1x128xf32, #tpu.memory_space<vmem>>, %arg7: memref<128x256xf32, #tpu.memory_space<vmem>>, %arg8: memref<3x256xf32, #tpu.memory_space<vmem>>, %arg9: memref<1x256xf32, #tpu.memory_space<vmem>>, %arg10: memref<1x256xf32, #tpu.memory_space<vmem>>, %arg11: memref<1x256xf32, #tpu.memory_space<vmem>>, %arg12: memref<256x128xf32, #tpu.memory_space<vmem>>, %arg13: memref<1x128xf32, #tpu.memory_space<vmem>>, %arg14: memref<8x128xf32, #tpu.memory_space<vmem>>, %arg15: memref<16x8x384xf32, #tpu.memory_space<vmem>>) attributes {dimension_semantics = [#tpu.dimension_semantics<parallel>], iteration_bounds = array<i64: 2>, scalar_prefetch = 0 : i64, scratch_operands = 1 : i64, tpu.core_type = #tpu.core_type<tc>, window_params = [{transform_indices = @transform_0, window_bounds = array<i64: 16, 8, 4>}, {transform_indices = @transform_1, window_bounds = array<i64: 8, 3>}, {pipeline_mode = #tpu.pipeline_mode<synchronous>, transform_indices = @transform_2, window_bounds = array<i64: 4, 384>}, {pipeline_mode = #tpu.pipeline_mode<synchronous>, transform_indices = @transform_3, window_bounds = array<i64: 128, 384>}, {pipeline_mode = #tpu.pipeline_mode<synchronous>, transform_indices = @transform_4, window_bounds = array<i64: 1, 384>}, {pipeline_mode = #tpu.pipeline_mode<synchronous>, transform_indices = @transform_5, window_bounds = array<i64: 1, 128>}, {pipeline_mode = #tpu.pipeline_mode<synchronous>, transform_indices = @transform_6, window_bounds = array<i64: 128, 256>}, {pipeline_mode = #tpu.pipeline_mode<synchronous>, transform_indices = @transform_7, window_bounds = array<i64: 3, 256>}, {pipeline_mode = #tpu.pipeline_mode<synchronous>, transform_indices = @transform_8, window_bounds = array<i64: 1, 256>}, {pipeline_mode = #tpu.pipeline_mode<synchronous>, transform_indices = @transform_9, window_bounds = array<i64: 1, 256>}, {pipeline_mode = #tpu.pipeline_mode<synchronous>, transform_indices = @transform_10, window_bounds = array<i64: 1, 256>}, {pipeline_mode = #tpu.pipeline_mode<synchronous>, transform_indices = @transform_11, window_bounds = array<i64: 256, 128>}, {pipeline_mode = #tpu.pipeline_mode<synchronous>, transform_indices = @transform_12, window_bounds = array<i64: 1, 128>}, {transform_indices = @transform_13, window_bounds = array<i64: 8, 128>}]} {
    %c0 = arith.constant 0 : index
    %c0_0 = arith.constant 0 : index
    %0 = vector.load %arg3[%c0, %c0_0] : memref<4x384xf32, #tpu.memory_space<vmem>>, vector<4x384xf32>
    %c0_1 = arith.constant 0 : index
    %c0_2 = arith.constant 0 : index
    %1 = vector.load %arg5[%c0_1, %c0_2] : memref<1x384xf32, #tpu.memory_space<vmem>>, vector<1x384xf32>
    %2 = vector.shape_cast %1 : vector<1x384xf32> to vector<1x384xf32>
    %3 = vector.broadcast %2 : vector<1x384xf32> to vector<8x384xf32>
    %c0_i32 = arith.constant 0 : i32
    %4 = arith.index_cast %c0_i32 : i32 to index
    %c0_3 = arith.constant 0 : index
    %c0_4 = arith.constant 0 : index
    %5 = vector.load %arg1[%4, %c0_3, %c0_4] : memref<16x8x4xf32, #tpu.memory_space<vmem>>, vector<1x8x4xf32>
    %6 = vector.shape_cast %5 : vector<1x8x4xf32> to vector<8x4xf32>
    %cst = arith.constant dense<0.000000e+00> : vector<8x384xf32>
    %7 = tpu.matmul %6, %0, %cst {dimension_numbers = #tpu.dot_dimension_numbers<[1], [0], [0], [1], [0, 0, 1, 1], [], []>} : vector<8x4xf32>, vector<4x384xf32>, vector<8x384xf32> -> vector<8x384xf32>
    %8 = arith.addf %7, %3 : vector<8x384xf32>
    %9 = arith.index_cast %c0_i32 : i32 to index
    %c0_5 = arith.constant 0 : index
    %c0_6 = arith.constant 0 : index
    %10 = vector.load %arg15[%9, %c0_5, %c0_6] : memref<16x8x384xf32, #tpu.memory_space<vmem>>, vector<1x8x384xf32>
    %11 = vector.shape_cast %10 : vector<1x8x384xf32> to vector<8x384xf32>
    %12 = vector.shape_cast %8 : vector<8x384xf32> to vector<1x8x384xf32>
    tpu.vector_store %arg15[%9, %c0_5, %c0_6], %12 {strides = array<i32>} : memref<16x8x384xf32, #tpu.memory_space<vmem>>, vector<1x8x384xf32>,
    %c1_i32 = arith.constant 1 : i32
    %13 = arith.index_cast %c1_i32 : i32 to index
    %c0_7 = arith.constant 0 : index
    %c0_8 = arith.constant 0 : index
    %14 = vector.load %arg1[%13, %c0_7, %c0_8] : memref<16x8x4xf32, #tpu.memory_space<vmem>>, vector<1x8x4xf32>
    %15 = vector.shape_cast %14 : vector<1x8x4xf32> to vector<8x4xf32>
    %cst_9 = arith.constant dense<0.000000e+00> : vector<8x384xf32>
    %16 = tpu.matmul %15, %0, %cst_9 {dimension_numbers = #tpu.dot_dimension_numbers<[1], [0], [0], [1], [0, 0, 1, 1], [], []>} : vector<8x4xf32>, vector<4x384xf32>, vector<8x384xf32> -> vector<8x384xf32>
    %17 = arith.addf %16, %3 : vector<8x384xf32>
    %18 = arith.index_cast %c1_i32 : i32 to index
    %c0_10 = arith.constant 0 : index
    %c0_11 = arith.constant 0 : index
    %19 = vector.load %arg15[%18, %c0_10, %c0_11] : memref<16x8x384xf32, #tpu.memory_space<vmem>>, vector<1x8x384xf32>
    %20 = vector.shape_cast %19 : vector<1x8x384xf32> to vector<8x384xf32>
    %21 = vector.shape_cast %17 : vector<8x384xf32> to vector<1x8x384xf32>
    tpu.vector_store %arg15[%18, %c0_10, %c0_11], %21 {strides = array<i32>} : memref<16x8x384xf32, #tpu.memory_space<vmem>>, vector<1x8x384xf32>,
    %c2_i32 = arith.constant 2 : i32
    %22 = arith.index_cast %c2_i32 : i32 to index
    %c0_12 = arith.constant 0 : index
    %c0_13 = arith.constant 0 : index
    %23 = vector.load %arg1[%22, %c0_12, %c0_13] : memref<16x8x4xf32, #tpu.memory_space<vmem>>, vector<1x8x4xf32>
    %24 = vector.shape_cast %23 : vector<1x8x4xf32> to vector<8x4xf32>
    %cst_14 = arith.constant dense<0.000000e+00> : vector<8x384xf32>
    %25 = tpu.matmul %24, %0, %cst_14 {dimension_numbers = #tpu.dot_dimension_numbers<[1], [0], [0], [1], [0, 0, 1, 1], [], []>} : vector<8x4xf32>, vector<4x384xf32>, vector<8x384xf32> -> vector<8x384xf32>
    %26 = arith.addf %25, %3 : vector<8x384xf32>
    %27 = arith.index_cast %c2_i32 : i32 to index
    %c0_15 = arith.constant 0 : index
    %c0_16 = arith.constant 0 : index
    %28 = vector.load %arg15[%27, %c0_15, %c0_16] : memref<16x8x384xf32, #tpu.memory_space<vmem>>, vector<1x8x384xf32>
    %29 = vector.shape_cast %28 : vector<1x8x384xf32> to vector<8x384xf32>
    %30 = vector.shape_cast %26 : vector<8x384xf32> to vector<1x8x384xf32>
    tpu.vector_store %arg15[%27, %c0_15, %c0_16], %30 {strides = array<i32>} : memref<16x8x384xf32, #tpu.memory_space<vmem>>, vector<1x8x384xf32>,
    %c3_i32 = arith.constant 3 : i32
    %31 = arith.index_cast %c3_i32 : i32 to index
    %c0_17 = arith.constant 0 : index
    %c0_18 = arith.constant 0 : index
    %32 = vector.load %arg1[%31, %c0_17, %c0_18] : memref<16x8x4xf32, #tpu.memory_space<vmem>>, vector<1x8x4xf32>
    %33 = vector.shape_cast %32 : vector<1x8x4xf32> to vector<8x4xf32>
    %cst_19 = arith.constant dense<0.000000e+00> : vector<8x384xf32>
    %34 = tpu.matmul %33, %0, %cst_19 {dimension_numbers = #tpu.dot_dimension_numbers<[1], [0], [0], [1], [0, 0, 1, 1], [], []>} : vector<8x4xf32>, vector<4x384xf32>, vector<8x384xf32> -> vector<8x384xf32>
    %35 = arith.addf %34, %3 : vector<8x384xf32>
    %36 = arith.index_cast %c3_i32 : i32 to index
    %c0_20 = arith.constant 0 : index
    %c0_21 = arith.constant 0 : index
    %37 = vector.load %arg15[%36, %c0_20, %c0_21] : memref<16x8x384xf32, #tpu.memory_space<vmem>>, vector<1x8x384xf32>
    %38 = vector.shape_cast %37 : vector<1x8x384xf32> to vector<8x384xf32>
    %39 = vector.shape_cast %35 : vector<8x384xf32> to vector<1x8x384xf32>
    tpu.vector_store %arg15[%36, %c0_20, %c0_21], %39 {strides = array<i32>} : memref<16x8x384xf32, #tpu.memory_space<vmem>>, vector<1x8x384xf32>,
    %c4_i32 = arith.constant 4 : i32
    %40 = arith.index_cast %c4_i32 : i32 to index
    %c0_22 = arith.constant 0 : index
    %c0_23 = arith.constant 0 : index
    %41 = vector.load %arg1[%40, %c0_22, %c0_23] : memref<16x8x4xf32, #tpu.memory_space<vmem>>, vector<1x8x4xf32>
    %42 = vector.shape_cast %41 : vector<1x8x4xf32> to vector<8x4xf32>
    %cst_24 = arith.constant dense<0.000000e+00> : vector<8x384xf32>
    %43 = tpu.matmul %42, %0, %cst_24 {dimension_numbers = #tpu.dot_dimension_numbers<[1], [0], [0], [1], [0, 0, 1, 1], [], []>} : vector<8x4xf32>, vector<4x384xf32>, vector<8x384xf32> -> vector<8x384xf32>
    %44 = arith.addf %43, %3 : vector<8x384xf32>
    %45 = arith.index_cast %c4_i32 : i32 to index
    %c0_25 = arith.constant 0 : index
    %c0_26 = arith.constant 0 : index
    %46 = vector.load %arg15[%45, %c0_25, %c0_26] : memref<16x8x384xf32, #tpu.memory_space<vmem>>, vector<1x8x384xf32>
    %47 = vector.shape_cast %46 : vector<1x8x384xf32> to vector<8x384xf32>
    %48 = vector.shape_cast %44 : vector<8x384xf32> to vector<1x8x384xf32>
    tpu.vector_store %arg15[%45, %c0_25, %c0_26], %48 {strides = array<i32>} : memref<16x8x384xf32, #tpu.memory_space<vmem>>, vector<1x8x384xf32>,
    %c5_i32 = arith.constant 5 : i32
    %49 = arith.index_cast %c5_i32 : i32 to index
    %c0_27 = arith.constant 0 : index
    %c0_28 = arith.constant 0 : index
    %50 = vector.load %arg1[%49, %c0_27, %c0_28] : memref<16x8x4xf32, #tpu.memory_space<vmem>>, vector<1x8x4xf32>
    %51 = vector.shape_cast %50 : vector<1x8x4xf32> to vector<8x4xf32>
    %cst_29 = arith.constant dense<0.000000e+00> : vector<8x384xf32>
    %52 = tpu.matmul %51, %0, %cst_29 {dimension_numbers = #tpu.dot_dimension_numbers<[1], [0], [0], [1], [0, 0, 1, 1], [], []>} : vector<8x4xf32>, vector<4x384xf32>, vector<8x384xf32> -> vector<8x384xf32>
    %53 = arith.addf %52, %3 : vector<8x384xf32>
    %54 = arith.index_cast %c5_i32 : i32 to index
    %c0_30 = arith.constant 0 : index
    %c0_31 = arith.constant 0 : index
    %55 = vector.load %arg15[%54, %c0_30, %c0_31] : memref<16x8x384xf32, #tpu.memory_space<vmem>>, vector<1x8x384xf32>
    %56 = vector.shape_cast %55 : vector<1x8x384xf32> to vector<8x384xf32>
    %57 = vector.shape_cast %53 : vector<8x384xf32> to vector<1x8x384xf32>
    tpu.vector_store %arg15[%54, %c0_30, %c0_31], %57 {strides = array<i32>} : memref<16x8x384xf32, #tpu.memory_space<vmem>>, vector<1x8x384xf32>,
    %c6_i32 = arith.constant 6 : i32
    %58 = arith.index_cast %c6_i32 : i32 to index
    %c0_32 = arith.constant 0 : index
    %c0_33 = arith.constant 0 : index
    %59 = vector.load %arg1[%58, %c0_32, %c0_33] : memref<16x8x4xf32, #tpu.memory_space<vmem>>, vector<1x8x4xf32>
    %60 = vector.shape_cast %59 : vector<1x8x4xf32> to vector<8x4xf32>
    %cst_34 = arith.constant dense<0.000000e+00> : vector<8x384xf32>
    %61 = tpu.matmul %60, %0, %cst_34 {dimension_numbers = #tpu.dot_dimension_numbers<[1], [0], [0], [1], [0, 0, 1, 1], [], []>} : vector<8x4xf32>, vector<4x384xf32>, vector<8x384xf32> -> vector<8x384xf32>
    %62 = arith.addf %61, %3 : vector<8x384xf32>
    %63 = arith.index_cast %c6_i32 : i32 to index
    %c0_35 = arith.constant 0 : index
    %c0_36 = arith.constant 0 : index
    %64 = vector.load %arg15[%63, %c0_35, %c0_36] : memref<16x8x384xf32, #tpu.memory_space<vmem>>, vector<1x8x384xf32>
    %65 = vector.shape_cast %64 : vector<1x8x384xf32> to vector<8x384xf32>
    %66 = vector.shape_cast %62 : vector<8x384xf32> to vector<1x8x384xf32>
    tpu.vector_store %arg15[%63, %c0_35, %c0_36], %66 {strides = array<i32>} : memref<16x8x384xf32, #tpu.memory_space<vmem>>, vector<1x8x384xf32>,
    %c7_i32 = arith.constant 7 : i32
    %67 = arith.index_cast %c7_i32 : i32 to index
    %c0_37 = arith.constant 0 : index
    %c0_38 = arith.constant 0 : index
    %68 = vector.load %arg1[%67, %c0_37, %c0_38] : memref<16x8x4xf32, #tpu.memory_space<vmem>>, vector<1x8x4xf32>
    %69 = vector.shape_cast %68 : vector<1x8x4xf32> to vector<8x4xf32>
    %cst_39 = arith.constant dense<0.000000e+00> : vector<8x384xf32>
    %70 = tpu.matmul %69, %0, %cst_39 {dimension_numbers = #tpu.dot_dimension_numbers<[1], [0], [0], [1], [0, 0, 1, 1], [], []>} : vector<8x4xf32>, vector<4x384xf32>, vector<8x384xf32> -> vector<8x384xf32>
    %71 = arith.addf %70, %3 : vector<8x384xf32>
    %72 = arith.index_cast %c7_i32 : i32 to index
    %c0_40 = arith.constant 0 : index
    %c0_41 = arith.constant 0 : index
    %73 = vector.load %arg15[%72, %c0_40, %c0_41] : memref<16x8x384xf32, #tpu.memory_space<vmem>>, vector<1x8x384xf32>
    %74 = vector.shape_cast %73 : vector<1x8x384xf32> to vector<8x384xf32>
    %75 = vector.shape_cast %71 : vector<8x384xf32> to vector<1x8x384xf32>
    tpu.vector_store %arg15[%72, %c0_40, %c0_41], %75 {strides = array<i32>} : memref<16x8x384xf32, #tpu.memory_space<vmem>>, vector<1x8x384xf32>,
    %c8_i32 = arith.constant 8 : i32
    %76 = arith.index_cast %c8_i32 : i32 to index
    %c0_42 = arith.constant 0 : index
    %c0_43 = arith.constant 0 : index
    %77 = vector.load %arg1[%76, %c0_42, %c0_43] : memref<16x8x4xf32, #tpu.memory_space<vmem>>, vector<1x8x4xf32>
    %78 = vector.shape_cast %77 : vector<1x8x4xf32> to vector<8x4xf32>
    %cst_44 = arith.constant dense<0.000000e+00> : vector<8x384xf32>
    %79 = tpu.matmul %78, %0, %cst_44 {dimension_numbers = #tpu.dot_dimension_numbers<[1], [0], [0], [1], [0, 0, 1, 1], [], []>} : vector<8x4xf32>, vector<4x384xf32>, vector<8x384xf32> -> vector<8x384xf32>
    %80 = arith.addf %79, %3 : vector<8x384xf32>
    %81 = arith.index_cast %c8_i32 : i32 to index
    %c0_45 = arith.constant 0 : index
    %c0_46 = arith.constant 0 : index
    %82 = vector.load %arg15[%81, %c0_45, %c0_46] : memref<16x8x384xf32, #tpu.memory_space<vmem>>, vector<1x8x384xf32>
    %83 = vector.shape_cast %82 : vector<1x8x384xf32> to vector<8x384xf32>
    %84 = vector.shape_cast %80 : vector<8x384xf32> to vector<1x8x384xf32>
    tpu.vector_store %arg15[%81, %c0_45, %c0_46], %84 {strides = array<i32>} : memref<16x8x384xf32, #tpu.memory_space<vmem>>, vector<1x8x384xf32>,
    %c9_i32 = arith.constant 9 : i32
    %85 = arith.index_cast %c9_i32 : i32 to index
    %c0_47 = arith.constant 0 : index
    %c0_48 = arith.constant 0 : index
    %86 = vector.load %arg1[%85, %c0_47, %c0_48] : memref<16x8x4xf32, #tpu.memory_space<vmem>>, vector<1x8x4xf32>
    %87 = vector.shape_cast %86 : vector<1x8x4xf32> to vector<8x4xf32>
    %cst_49 = arith.constant dense<0.000000e+00> : vector<8x384xf32>
    %88 = tpu.matmul %87, %0, %cst_49 {dimension_numbers = #tpu.dot_dimension_numbers<[1], [0], [0], [1], [0, 0, 1, 1], [], []>} : vector<8x4xf32>, vector<4x384xf32>, vector<8x384xf32> -> vector<8x384xf32>
    %89 = arith.addf %88, %3 : vector<8x384xf32>
    %90 = arith.index_cast %c9_i32 : i32 to index
    %c0_50 = arith.constant 0 : index
    %c0_51 = arith.constant 0 : index
    %91 = vector.load %arg15[%90, %c0_50, %c0_51] : memref<16x8x384xf32, #tpu.memory_space<vmem>>, vector<1x8x384xf32>
    %92 = vector.shape_cast %91 : vector<1x8x384xf32> to vector<8x384xf32>
    %93 = vector.shape_cast %89 : vector<8x384xf32> to vector<1x8x384xf32>
    tpu.vector_store %arg15[%90, %c0_50, %c0_51], %93 {strides = array<i32>} : memref<16x8x384xf32, #tpu.memory_space<vmem>>, vector<1x8x384xf32>,
    %c10_i32 = arith.constant 10 : i32
    %94 = arith.index_cast %c10_i32 : i32 to index
    %c0_52 = arith.constant 0 : index
    %c0_53 = arith.constant 0 : index
    %95 = vector.load %arg1[%94, %c0_52, %c0_53] : memref<16x8x4xf32, #tpu.memory_space<vmem>>, vector<1x8x4xf32>
    %96 = vector.shape_cast %95 : vector<1x8x4xf32> to vector<8x4xf32>
    %cst_54 = arith.constant dense<0.000000e+00> : vector<8x384xf32>
    %97 = tpu.matmul %96, %0, %cst_54 {dimension_numbers = #tpu.dot_dimension_numbers<[1], [0], [0], [1], [0, 0, 1, 1], [], []>} : vector<8x4xf32>, vector<4x384xf32>, vector<8x384xf32> -> vector<8x384xf32>
    %98 = arith.addf %97, %3 : vector<8x384xf32>
    %99 = arith.index_cast %c10_i32 : i32 to index
    %c0_55 = arith.constant 0 : index
    %c0_56 = arith.constant 0 : index
    %100 = vector.load %arg15[%99, %c0_55, %c0_56] : memref<16x8x384xf32, #tpu.memory_space<vmem>>, vector<1x8x384xf32>
    %101 = vector.shape_cast %100 : vector<1x8x384xf32> to vector<8x384xf32>
    %102 = vector.shape_cast %98 : vector<8x384xf32> to vector<1x8x384xf32>
    tpu.vector_store %arg15[%99, %c0_55, %c0_56], %102 {strides = array<i32>} : memref<16x8x384xf32, #tpu.memory_space<vmem>>, vector<1x8x384xf32>,
    %c11_i32 = arith.constant 11 : i32
    %103 = arith.index_cast %c11_i32 : i32 to index
    %c0_57 = arith.constant 0 : index
    %c0_58 = arith.constant 0 : index
    %104 = vector.load %arg1[%103, %c0_57, %c0_58] : memref<16x8x4xf32, #tpu.memory_space<vmem>>, vector<1x8x4xf32>
    %105 = vector.shape_cast %104 : vector<1x8x4xf32> to vector<8x4xf32>
    %cst_59 = arith.constant dense<0.000000e+00> : vector<8x384xf32>
    %106 = tpu.matmul %105, %0, %cst_59 {dimension_numbers = #tpu.dot_dimension_numbers<[1], [0], [0], [1], [0, 0, 1, 1], [], []>} : vector<8x4xf32>, vector<4x384xf32>, vector<8x384xf32> -> vector<8x384xf32>
    %107 = arith.addf %106, %3 : vector<8x384xf32>
    %108 = arith.index_cast %c11_i32 : i32 to index
    %c0_60 = arith.constant 0 : index
    %c0_61 = arith.constant 0 : index
    %109 = vector.load %arg15[%108, %c0_60, %c0_61] : memref<16x8x384xf32, #tpu.memory_space<vmem>>, vector<1x8x384xf32>
    %110 = vector.shape_cast %109 : vector<1x8x384xf32> to vector<8x384xf32>
    %111 = vector.shape_cast %107 : vector<8x384xf32> to vector<1x8x384xf32>
    tpu.vector_store %arg15[%108, %c0_60, %c0_61], %111 {strides = array<i32>} : memref<16x8x384xf32, #tpu.memory_space<vmem>>, vector<1x8x384xf32>,
    %c12_i32 = arith.constant 12 : i32
    %112 = arith.index_cast %c12_i32 : i32 to index
    %c0_62 = arith.constant 0 : index
    %c0_63 = arith.constant 0 : index
    %113 = vector.load %arg1[%112, %c0_62, %c0_63] : memref<16x8x4xf32, #tpu.memory_space<vmem>>, vector<1x8x4xf32>
    %114 = vector.shape_cast %113 : vector<1x8x4xf32> to vector<8x4xf32>
    %cst_64 = arith.constant dense<0.000000e+00> : vector<8x384xf32>
    %115 = tpu.matmul %114, %0, %cst_64 {dimension_numbers = #tpu.dot_dimension_numbers<[1], [0], [0], [1], [0, 0, 1, 1], [], []>} : vector<8x4xf32>, vector<4x384xf32>, vector<8x384xf32> -> vector<8x384xf32>
    %116 = arith.addf %115, %3 : vector<8x384xf32>
    %117 = arith.index_cast %c12_i32 : i32 to index
    %c0_65 = arith.constant 0 : index
    %c0_66 = arith.constant 0 : index
    %118 = vector.load %arg15[%117, %c0_65, %c0_66] : memref<16x8x384xf32, #tpu.memory_space<vmem>>, vector<1x8x384xf32>
    %119 = vector.shape_cast %118 : vector<1x8x384xf32> to vector<8x384xf32>
    %120 = vector.shape_cast %116 : vector<8x384xf32> to vector<1x8x384xf32>
    tpu.vector_store %arg15[%117, %c0_65, %c0_66], %120 {strides = array<i32>} : memref<16x8x384xf32, #tpu.memory_space<vmem>>, vector<1x8x384xf32>,
    %c13_i32 = arith.constant 13 : i32
    %121 = arith.index_cast %c13_i32 : i32 to index
    %c0_67 = arith.constant 0 : index
    %c0_68 = arith.constant 0 : index
    %122 = vector.load %arg1[%121, %c0_67, %c0_68] : memref<16x8x4xf32, #tpu.memory_space<vmem>>, vector<1x8x4xf32>
    %123 = vector.shape_cast %122 : vector<1x8x4xf32> to vector<8x4xf32>
    %cst_69 = arith.constant dense<0.000000e+00> : vector<8x384xf32>
    %124 = tpu.matmul %123, %0, %cst_69 {dimension_numbers = #tpu.dot_dimension_numbers<[1], [0], [0], [1], [0, 0, 1, 1], [], []>} : vector<8x4xf32>, vector<4x384xf32>, vector<8x384xf32> -> vector<8x384xf32>
    %125 = arith.addf %124, %3 : vector<8x384xf32>
    %126 = arith.index_cast %c13_i32 : i32 to index
    %c0_70 = arith.constant 0 : index
    %c0_71 = arith.constant 0 : index
    %127 = vector.load %arg15[%126, %c0_70, %c0_71] : memref<16x8x384xf32, #tpu.memory_space<vmem>>, vector<1x8x384xf32>
    %128 = vector.shape_cast %127 : vector<1x8x384xf32> to vector<8x384xf32>
    %129 = vector.shape_cast %125 : vector<8x384xf32> to vector<1x8x384xf32>
    tpu.vector_store %arg15[%126, %c0_70, %c0_71], %129 {strides = array<i32>} : memref<16x8x384xf32, #tpu.memory_space<vmem>>, vector<1x8x384xf32>,
    %c14_i32 = arith.constant 14 : i32
    %130 = arith.index_cast %c14_i32 : i32 to index
    %c0_72 = arith.constant 0 : index
    %c0_73 = arith.constant 0 : index
    %131 = vector.load %arg1[%130, %c0_72, %c0_73] : memref<16x8x4xf32, #tpu.memory_space<vmem>>, vector<1x8x4xf32>
    %132 = vector.shape_cast %131 : vector<1x8x4xf32> to vector<8x4xf32>
    %cst_74 = arith.constant dense<0.000000e+00> : vector<8x384xf32>
    %133 = tpu.matmul %132, %0, %cst_74 {dimension_numbers = #tpu.dot_dimension_numbers<[1], [0], [0], [1], [0, 0, 1, 1], [], []>} : vector<8x4xf32>, vector<4x384xf32>, vector<8x384xf32> -> vector<8x384xf32>
    %134 = arith.addf %133, %3 : vector<8x384xf32>
    %135 = arith.index_cast %c14_i32 : i32 to index
    %c0_75 = arith.constant 0 : index
    %c0_76 = arith.constant 0 : index
    %136 = vector.load %arg15[%135, %c0_75, %c0_76] : memref<16x8x384xf32, #tpu.memory_space<vmem>>, vector<1x8x384xf32>
    %137 = vector.shape_cast %136 : vector<1x8x384xf32> to vector<8x384xf32>
    %138 = vector.shape_cast %134 : vector<8x384xf32> to vector<1x8x384xf32>
    tpu.vector_store %arg15[%135, %c0_75, %c0_76], %138 {strides = array<i32>} : memref<16x8x384xf32, #tpu.memory_space<vmem>>, vector<1x8x384xf32>,
    %c15_i32 = arith.constant 15 : i32
    %139 = arith.index_cast %c15_i32 : i32 to index
    %c0_77 = arith.constant 0 : index
    %c0_78 = arith.constant 0 : index
    %140 = vector.load %arg1[%139, %c0_77, %c0_78] : memref<16x8x4xf32, #tpu.memory_space<vmem>>, vector<1x8x4xf32>
    %141 = vector.shape_cast %140 : vector<1x8x4xf32> to vector<8x4xf32>
    %cst_79 = arith.constant dense<0.000000e+00> : vector<8x384xf32>
    %142 = tpu.matmul %141, %0, %cst_79 {dimension_numbers = #tpu.dot_dimension_numbers<[1], [0], [0], [1], [0, 0, 1, 1], [], []>} : vector<8x4xf32>, vector<4x384xf32>, vector<8x384xf32> -> vector<8x384xf32>
    %143 = arith.addf %142, %3 : vector<8x384xf32>
    %144 = arith.index_cast %c15_i32 : i32 to index
    %c0_80 = arith.constant 0 : index
    %c0_81 = arith.constant 0 : index
    %145 = vector.load %arg15[%144, %c0_80, %c0_81] : memref<16x8x384xf32, #tpu.memory_space<vmem>>, vector<1x8x384xf32>
    %146 = vector.shape_cast %145 : vector<1x8x384xf32> to vector<8x384xf32>
    %147 = vector.shape_cast %143 : vector<8x384xf32> to vector<1x8x384xf32>
    tpu.vector_store %arg15[%144, %c0_80, %c0_81], %147 {strides = array<i32>} : memref<16x8x384xf32, #tpu.memory_space<vmem>>, vector<1x8x384xf32>,
    %c16_i32 = arith.constant 16 : i32
    %c0_82 = arith.constant 0 : index
    %c0_83 = arith.constant 0 : index
    %148 = vector.load %arg4[%c0_82, %c0_83] : memref<128x384xf32, #tpu.memory_space<vmem>>, vector<128x384xf32>
    %c0_84 = arith.constant 0 : index
    %c0_85 = arith.constant 0 : index
    %149 = vector.load %arg6[%c0_84, %c0_85] : memref<1x128xf32, #tpu.memory_space<vmem>>, vector<1x128xf32>
    %150 = vector.shape_cast %149 : vector<1x128xf32> to vector<1x128xf32>
    %151 = vector.broadcast %150 : vector<1x128xf32> to vector<8x128xf32>
    %cst_86 = arith.constant 0.000000e+00 : f32
    %152 = vector.broadcast %cst_86 : f32 to vector<8x128xf32>
    %c0_i32_87 = arith.constant 0 : i32
    %153 = arith.index_cast %c0_i32_87 : i32 to index
    %c0_88 = arith.constant 0 : index
    %c0_89 = arith.constant 0 : index
    %154 = vector.load %arg15[%153, %c0_88, %c0_89] : memref<16x8x384xf32, #tpu.memory_space<vmem>>, vector<1x8x384xf32>
    %155 = vector.shape_cast %154 : vector<1x8x384xf32> to vector<8x384xf32>
    %cst_90 = arith.constant dense<0.000000e+00> : vector<8x384xf32>
    %156 = tpu.matmul %152, %148, %cst_90 {dimension_numbers = #tpu.dot_dimension_numbers<[1], [0], [0], [1], [0, 0, 1, 1], [], []>} : vector<8x128xf32>, vector<128x384xf32>, vector<8x384xf32> -> vector<8x384xf32>
    %157 = vector.extract_strided_slice %155 {offsets = [0, 0], sizes = [8, 256], strides = [1, 1]} : vector<8x384xf32> to vector<8x256xf32>
    %158 = vector.extract_strided_slice %156 {offsets = [0, 0], sizes = [8, 256], strides = [1, 1]} : vector<8x384xf32> to vector<8x256xf32>
    %159 = arith.addf %157, %158 : vector<8x256xf32>
    %160 = arith.negf %159 : vector<8x256xf32>
    %161 = math.exp %160 : vector<8x256xf32>
    %cst_91 = arith.constant 1.000000e+00 : f32
    %162 = vector.broadcast %cst_91 : f32 to vector<8x256xf32>
    %163 = arith.addf %162, %161 : vector<8x256xf32>
    %164 = arith.divf %162, %163 : vector<8x256xf32>
    %165 = vector.extract_strided_slice %164 {offsets = [0, 0], sizes = [8, 128], strides = [1, 1]} : vector<8x256xf32> to vector<8x128xf32>
    %166 = vector.extract_strided_slice %164 {offsets = [0, 128], sizes = [8, 128], strides = [1, 1]} : vector<8x256xf32> to vector<8x128xf32>
    %167 = vector.extract_strided_slice %155 {offsets = [0, 256], sizes = [8, 128], strides = [1, 1]} : vector<8x384xf32> to vector<8x128xf32>
    %168 = vector.extract_strided_slice %156 {offsets = [0, 256], sizes = [8, 128], strides = [1, 1]} : vector<8x384xf32> to vector<8x128xf32>
    %169 = arith.addf %168, %151 : vector<8x128xf32>
    %170 = arith.mulf %165, %169 : vector<8x128xf32>
    %171 = arith.addf %167, %170 : vector<8x128xf32>
    %172 = math.tanh %171 : vector<8x128xf32>
    %cst_92 = arith.constant 1.000000e+00 : f32
    %173 = vector.broadcast %cst_92 : f32 to vector<8x128xf32>
    %174 = arith.subf %173, %166 : vector<8x128xf32>
    %175 = arith.mulf %174, %172 : vector<8x128xf32>
    %176 = arith.mulf %166, %152 : vector<8x128xf32>
    %177 = arith.addf %175, %176 : vector<8x128xf32>
    %c1_i32_93 = arith.constant 1 : i32
    %178 = arith.index_cast %c1_i32_93 : i32 to index
    %c0_94 = arith.constant 0 : index
    %c0_95 = arith.constant 0 : index
    %179 = vector.load %arg15[%178, %c0_94, %c0_95] : memref<16x8x384xf32, #tpu.memory_space<vmem>>, vector<1x8x384xf32>
    %180 = vector.shape_cast %179 : vector<1x8x384xf32> to vector<8x384xf32>
    %cst_96 = arith.constant dense<0.000000e+00> : vector<8x384xf32>
    %181 = tpu.matmul %177, %148, %cst_96 {dimension_numbers = #tpu.dot_dimension_numbers<[1], [0], [0], [1], [0, 0, 1, 1], [], []>} : vector<8x128xf32>, vector<128x384xf32>, vector<8x384xf32> -> vector<8x384xf32>
    %182 = vector.extract_strided_slice %180 {offsets = [0, 0], sizes = [8, 256], strides = [1, 1]} : vector<8x384xf32> to vector<8x256xf32>
    %183 = vector.extract_strided_slice %181 {offsets = [0, 0], sizes = [8, 256], strides = [1, 1]} : vector<8x384xf32> to vector<8x256xf32>
    %184 = arith.addf %182, %183 : vector<8x256xf32>
    %185 = arith.negf %184 : vector<8x256xf32>
    %186 = math.exp %185 : vector<8x256xf32>
    %cst_97 = arith.constant 1.000000e+00 : f32
    %187 = vector.broadcast %cst_97 : f32 to vector<8x256xf32>
    %188 = arith.addf %187, %186 : vector<8x256xf32>
    %189 = arith.divf %187, %188 : vector<8x256xf32>
    %190 = vector.extract_strided_slice %189 {offsets = [0, 0], sizes = [8, 128], strides = [1, 1]} : vector<8x256xf32> to vector<8x128xf32>
    %191 = vector.extract_strided_slice %189 {offsets = [0, 128], sizes = [8, 128], strides = [1, 1]} : vector<8x256xf32> to vector<8x128xf32>
    %192 = vector.extract_strided_slice %180 {offsets = [0, 256], sizes = [8, 128], strides = [1, 1]} : vector<8x384xf32> to vector<8x128xf32>
    %193 = vector.extract_strided_slice %181 {offsets = [0, 256], sizes = [8, 128], strides = [1, 1]} : vector<8x384xf32> to vector<8x128xf32>
    %194 = arith.addf %193, %151 : vector<8x128xf32>
    %195 = arith.mulf %190, %194 : vector<8x128xf32>
    %196 = arith.addf %192, %195 : vector<8x128xf32>
    %197 = math.tanh %196 : vector<8x128xf32>
    %cst_98 = arith.constant 1.000000e+00 : f32
    %198 = vector.broadcast %cst_98 : f32 to vector<8x128xf32>
    %199 = arith.subf %198, %191 : vector<8x128xf32>
    %200 = arith.mulf %199, %197 : vector<8x128xf32>
    %201 = arith.mulf %191, %177 : vector<8x128xf32>
    %202 = arith.addf %200, %201 : vector<8x128xf32>
    %c2_i32_99 = arith.constant 2 : i32
    %203 = arith.index_cast %c2_i32_99 : i32 to index
    %c0_100 = arith.constant 0 : index
    %c0_101 = arith.constant 0 : index
    %204 = vector.load %arg15[%203, %c0_100, %c0_101] : memref<16x8x384xf32, #tpu.memory_space<vmem>>, vector<1x8x384xf32>
    %205 = vector.shape_cast %204 : vector<1x8x384xf32> to vector<8x384xf32>
    %cst_102 = arith.constant dense<0.000000e+00> : vector<8x384xf32>
    %206 = tpu.matmul %202, %148, %cst_102 {dimension_numbers = #tpu.dot_dimension_numbers<[1], [0], [0], [1], [0, 0, 1, 1], [], []>} : vector<8x128xf32>, vector<128x384xf32>, vector<8x384xf32> -> vector<8x384xf32>
    %207 = vector.extract_strided_slice %205 {offsets = [0, 0], sizes = [8, 256], strides = [1, 1]} : vector<8x384xf32> to vector<8x256xf32>
    %208 = vector.extract_strided_slice %206 {offsets = [0, 0], sizes = [8, 256], strides = [1, 1]} : vector<8x384xf32> to vector<8x256xf32>
    %209 = arith.addf %207, %208 : vector<8x256xf32>
    %210 = arith.negf %209 : vector<8x256xf32>
    %211 = math.exp %210 : vector<8x256xf32>
    %cst_103 = arith.constant 1.000000e+00 : f32
    %212 = vector.broadcast %cst_103 : f32 to vector<8x256xf32>
    %213 = arith.addf %212, %211 : vector<8x256xf32>
    %214 = arith.divf %212, %213 : vector<8x256xf32>
    %215 = vector.extract_strided_slice %214 {offsets = [0, 0], sizes = [8, 128], strides = [1, 1]} : vector<8x256xf32> to vector<8x128xf32>
    %216 = vector.extract_strided_slice %214 {offsets = [0, 128], sizes = [8, 128], strides = [1, 1]} : vector<8x256xf32> to vector<8x128xf32>
    %217 = vector.extract_strided_slice %205 {offsets = [0, 256], sizes = [8, 128], strides = [1, 1]} : vector<8x384xf32> to vector<8x128xf32>
    %218 = vector.extract_strided_slice %206 {offsets = [0, 256], sizes = [8, 128], strides = [1, 1]} : vector<8x384xf32> to vector<8x128xf32>
    %219 = arith.addf %218, %151 : vector<8x128xf32>
    %220 = arith.mulf %215, %219 : vector<8x128xf32>
    %221 = arith.addf %217, %220 : vector<8x128xf32>
    %222 = math.tanh %221 : vector<8x128xf32>
    %cst_104 = arith.constant 1.000000e+00 : f32
    %223 = vector.broadcast %cst_104 : f32 to vector<8x128xf32>
    %224 = arith.subf %223, %216 : vector<8x128xf32>
    %225 = arith.mulf %224, %222 : vector<8x128xf32>
    %226 = arith.mulf %216, %202 : vector<8x128xf32>
    %227 = arith.addf %225, %226 : vector<8x128xf32>
    %c3_i32_105 = arith.constant 3 : i32
    %228 = arith.index_cast %c3_i32_105 : i32 to index
    %c0_106 = arith.constant 0 : index
    %c0_107 = arith.constant 0 : index
    %229 = vector.load %arg15[%228, %c0_106, %c0_107] : memref<16x8x384xf32, #tpu.memory_space<vmem>>, vector<1x8x384xf32>
    %230 = vector.shape_cast %229 : vector<1x8x384xf32> to vector<8x384xf32>
    %cst_108 = arith.constant dense<0.000000e+00> : vector<8x384xf32>
    %231 = tpu.matmul %227, %148, %cst_108 {dimension_numbers = #tpu.dot_dimension_numbers<[1], [0], [0], [1], [0, 0, 1, 1], [], []>} : vector<8x128xf32>, vector<128x384xf32>, vector<8x384xf32> -> vector<8x384xf32>
    %232 = vector.extract_strided_slice %230 {offsets = [0, 0], sizes = [8, 256], strides = [1, 1]} : vector<8x384xf32> to vector<8x256xf32>
    %233 = vector.extract_strided_slice %231 {offsets = [0, 0], sizes = [8, 256], strides = [1, 1]} : vector<8x384xf32> to vector<8x256xf32>
    %234 = arith.addf %232, %233 : vector<8x256xf32>
    %235 = arith.negf %234 : vector<8x256xf32>
    %236 = math.exp %235 : vector<8x256xf32>
    %cst_109 = arith.constant 1.000000e+00 : f32
    %237 = vector.broadcast %cst_109 : f32 to vector<8x256xf32>
    %238 = arith.addf %237, %236 : vector<8x256xf32>
    %239 = arith.divf %237, %238 : vector<8x256xf32>
    %240 = vector.extract_strided_slice %239 {offsets = [0, 0], sizes = [8, 128], strides = [1, 1]} : vector<8x256xf32> to vector<8x128xf32>
    %241 = vector.extract_strided_slice %239 {offsets = [0, 128], sizes = [8, 128], strides = [1, 1]} : vector<8x256xf32> to vector<8x128xf32>
    %242 = vector.extract_strided_slice %230 {offsets = [0, 256], sizes = [8, 128], strides = [1, 1]} : vector<8x384xf32> to vector<8x128xf32>
    %243 = vector.extract_strided_slice %231 {offsets = [0, 256], sizes = [8, 128], strides = [1, 1]} : vector<8x384xf32> to vector<8x128xf32>
    %244 = arith.addf %243, %151 : vector<8x128xf32>
    %245 = arith.mulf %240, %244 : vector<8x128xf32>
    %246 = arith.addf %242, %245 : vector<8x128xf32>
    %247 = math.tanh %246 : vector<8x128xf32>
    %cst_110 = arith.constant 1.000000e+00 : f32
    %248 = vector.broadcast %cst_110 : f32 to vector<8x128xf32>
    %249 = arith.subf %248, %241 : vector<8x128xf32>
    %250 = arith.mulf %249, %247 : vector<8x128xf32>
    %251 = arith.mulf %241, %227 : vector<8x128xf32>
    %252 = arith.addf %250, %251 : vector<8x128xf32>
    %c4_i32_111 = arith.constant 4 : i32
    %253 = arith.index_cast %c4_i32_111 : i32 to index
    %c0_112 = arith.constant 0 : index
    %c0_113 = arith.constant 0 : index
    %254 = vector.load %arg15[%253, %c0_112, %c0_113] : memref<16x8x384xf32, #tpu.memory_space<vmem>>, vector<1x8x384xf32>
    %255 = vector.shape_cast %254 : vector<1x8x384xf32> to vector<8x384xf32>
    %cst_114 = arith.constant dense<0.000000e+00> : vector<8x384xf32>
    %256 = tpu.matmul %252, %148, %cst_114 {dimension_numbers = #tpu.dot_dimension_numbers<[1], [0], [0], [1], [0, 0, 1, 1], [], []>} : vector<8x128xf32>, vector<128x384xf32>, vector<8x384xf32> -> vector<8x384xf32>
    %257 = vector.extract_strided_slice %255 {offsets = [0, 0], sizes = [8, 256], strides = [1, 1]} : vector<8x384xf32> to vector<8x256xf32>
    %258 = vector.extract_strided_slice %256 {offsets = [0, 0], sizes = [8, 256], strides = [1, 1]} : vector<8x384xf32> to vector<8x256xf32>
    %259 = arith.addf %257, %258 : vector<8x256xf32>
    %260 = arith.negf %259 : vector<8x256xf32>
    %261 = math.exp %260 : vector<8x256xf32>
    %cst_115 = arith.constant 1.000000e+00 : f32
    %262 = vector.broadcast %cst_115 : f32 to vector<8x256xf32>
    %263 = arith.addf %262, %261 : vector<8x256xf32>
    %264 = arith.divf %262, %263 : vector<8x256xf32>
    %265 = vector.extract_strided_slice %264 {offsets = [0, 0], sizes = [8, 128], strides = [1, 1]} : vector<8x256xf32> to vector<8x128xf32>
    %266 = vector.extract_strided_slice %264 {offsets = [0, 128], sizes = [8, 128], strides = [1, 1]} : vector<8x256xf32> to vector<8x128xf32>
    %267 = vector.extract_strided_slice %255 {offsets = [0, 256], sizes = [8, 128], strides = [1, 1]} : vector<8x384xf32> to vector<8x128xf32>
    %268 = vector.extract_strided_slice %256 {offsets = [0, 256], sizes = [8, 128], strides = [1, 1]} : vector<8x384xf32> to vector<8x128xf32>
    %269 = arith.addf %268, %151 : vector<8x128xf32>
    %270 = arith.mulf %265, %269 : vector<8x128xf32>
    %271 = arith.addf %267, %270 : vector<8x128xf32>
    %272 = math.tanh %271 : vector<8x128xf32>
    %cst_116 = arith.constant 1.000000e+00 : f32
    %273 = vector.broadcast %cst_116 : f32 to vector<8x128xf32>
    %274 = arith.subf %273, %266 : vector<8x128xf32>
    %275 = arith.mulf %274, %272 : vector<8x128xf32>
    %276 = arith.mulf %266, %252 : vector<8x128xf32>
    %277 = arith.addf %275, %276 : vector<8x128xf32>
    %c5_i32_117 = arith.constant 5 : i32
    %278 = arith.index_cast %c5_i32_117 : i32 to index
    %c0_118 = arith.constant 0 : index
    %c0_119 = arith.constant 0 : index
    %279 = vector.load %arg15[%278, %c0_118, %c0_119] : memref<16x8x384xf32, #tpu.memory_space<vmem>>, vector<1x8x384xf32>
    %280 = vector.shape_cast %279 : vector<1x8x384xf32> to vector<8x384xf32>
    %cst_120 = arith.constant dense<0.000000e+00> : vector<8x384xf32>
    %281 = tpu.matmul %277, %148, %cst_120 {dimension_numbers = #tpu.dot_dimension_numbers<[1], [0], [0], [1], [0, 0, 1, 1], [], []>} : vector<8x128xf32>, vector<128x384xf32>, vector<8x384xf32> -> vector<8x384xf32>
    %282 = vector.extract_strided_slice %280 {offsets = [0, 0], sizes = [8, 256], strides = [1, 1]} : vector<8x384xf32> to vector<8x256xf32>
    %283 = vector.extract_strided_slice %281 {offsets = [0, 0], sizes = [8, 256], strides = [1, 1]} : vector<8x384xf32> to vector<8x256xf32>
    %284 = arith.addf %282, %283 : vector<8x256xf32>
    %285 = arith.negf %284 : vector<8x256xf32>
    %286 = math.exp %285 : vector<8x256xf32>
    %cst_121 = arith.constant 1.000000e+00 : f32
    %287 = vector.broadcast %cst_121 : f32 to vector<8x256xf32>
    %288 = arith.addf %287, %286 : vector<8x256xf32>
    %289 = arith.divf %287, %288 : vector<8x256xf32>
    %290 = vector.extract_strided_slice %289 {offsets = [0, 0], sizes = [8, 128], strides = [1, 1]} : vector<8x256xf32> to vector<8x128xf32>
    %291 = vector.extract_strided_slice %289 {offsets = [0, 128], sizes = [8, 128], strides = [1, 1]} : vector<8x256xf32> to vector<8x128xf32>
    %292 = vector.extract_strided_slice %280 {offsets = [0, 256], sizes = [8, 128], strides = [1, 1]} : vector<8x384xf32> to vector<8x128xf32>
    %293 = vector.extract_strided_slice %281 {offsets = [0, 256], sizes = [8, 128], strides = [1, 1]} : vector<8x384xf32> to vector<8x128xf32>
    %294 = arith.addf %293, %151 : vector<8x128xf32>
    %295 = arith.mulf %290, %294 : vector<8x128xf32>
    %296 = arith.addf %292, %295 : vector<8x128xf32>
    %297 = math.tanh %296 : vector<8x128xf32>
    %cst_122 = arith.constant 1.000000e+00 : f32
    %298 = vector.broadcast %cst_122 : f32 to vector<8x128xf32>
    %299 = arith.subf %298, %291 : vector<8x128xf32>
    %300 = arith.mulf %299, %297 : vector<8x128xf32>
    %301 = arith.mulf %291, %277 : vector<8x128xf32>
    %302 = arith.addf %300, %301 : vector<8x128xf32>
    %c6_i32_123 = arith.constant 6 : i32
    %303 = arith.index_cast %c6_i32_123 : i32 to index
    %c0_124 = arith.constant 0 : index
    %c0_125 = arith.constant 0 : index
    %304 = vector.load %arg15[%303, %c0_124, %c0_125] : memref<16x8x384xf32, #tpu.memory_space<vmem>>, vector<1x8x384xf32>
    %305 = vector.shape_cast %304 : vector<1x8x384xf32> to vector<8x384xf32>
    %cst_126 = arith.constant dense<0.000000e+00> : vector<8x384xf32>
    %306 = tpu.matmul %302, %148, %cst_126 {dimension_numbers = #tpu.dot_dimension_numbers<[1], [0], [0], [1], [0, 0, 1, 1], [], []>} : vector<8x128xf32>, vector<128x384xf32>, vector<8x384xf32> -> vector<8x384xf32>
    %307 = vector.extract_strided_slice %305 {offsets = [0, 0], sizes = [8, 256], strides = [1, 1]} : vector<8x384xf32> to vector<8x256xf32>
    %308 = vector.extract_strided_slice %306 {offsets = [0, 0], sizes = [8, 256], strides = [1, 1]} : vector<8x384xf32> to vector<8x256xf32>
    %309 = arith.addf %307, %308 : vector<8x256xf32>
    %310 = arith.negf %309 : vector<8x256xf32>
    %311 = math.exp %310 : vector<8x256xf32>
    %cst_127 = arith.constant 1.000000e+00 : f32
    %312 = vector.broadcast %cst_127 : f32 to vector<8x256xf32>
    %313 = arith.addf %312, %311 : vector<8x256xf32>
    %314 = arith.divf %312, %313 : vector<8x256xf32>
    %315 = vector.extract_strided_slice %314 {offsets = [0, 0], sizes = [8, 128], strides = [1, 1]} : vector<8x256xf32> to vector<8x128xf32>
    %316 = vector.extract_strided_slice %314 {offsets = [0, 128], sizes = [8, 128], strides = [1, 1]} : vector<8x256xf32> to vector<8x128xf32>
    %317 = vector.extract_strided_slice %305 {offsets = [0, 256], sizes = [8, 128], strides = [1, 1]} : vector<8x384xf32> to vector<8x128xf32>
    %318 = vector.extract_strided_slice %306 {offsets = [0, 256], sizes = [8, 128], strides = [1, 1]} : vector<8x384xf32> to vector<8x128xf32>
    %319 = arith.addf %318, %151 : vector<8x128xf32>
    %320 = arith.mulf %315, %319 : vector<8x128xf32>
    %321 = arith.addf %317, %320 : vector<8x128xf32>
    %322 = math.tanh %321 : vector<8x128xf32>
    %cst_128 = arith.constant 1.000000e+00 : f32
    %323 = vector.broadcast %cst_128 : f32 to vector<8x128xf32>
    %324 = arith.subf %323, %316 : vector<8x128xf32>
    %325 = arith.mulf %324, %322 : vector<8x128xf32>
    %326 = arith.mulf %316, %302 : vector<8x128xf32>
    %327 = arith.addf %325, %326 : vector<8x128xf32>
    %c7_i32_129 = arith.constant 7 : i32
    %328 = arith.index_cast %c7_i32_129 : i32 to index
    %c0_130 = arith.constant 0 : index
    %c0_131 = arith.constant 0 : index
    %329 = vector.load %arg15[%328, %c0_130, %c0_131] : memref<16x8x384xf32, #tpu.memory_space<vmem>>, vector<1x8x384xf32>
    %330 = vector.shape_cast %329 : vector<1x8x384xf32> to vector<8x384xf32>
    %cst_132 = arith.constant dense<0.000000e+00> : vector<8x384xf32>
    %331 = tpu.matmul %327, %148, %cst_132 {dimension_numbers = #tpu.dot_dimension_numbers<[1], [0], [0], [1], [0, 0, 1, 1], [], []>} : vector<8x128xf32>, vector<128x384xf32>, vector<8x384xf32> -> vector<8x384xf32>
    %332 = vector.extract_strided_slice %330 {offsets = [0, 0], sizes = [8, 256], strides = [1, 1]} : vector<8x384xf32> to vector<8x256xf32>
    %333 = vector.extract_strided_slice %331 {offsets = [0, 0], sizes = [8, 256], strides = [1, 1]} : vector<8x384xf32> to vector<8x256xf32>
    %334 = arith.addf %332, %333 : vector<8x256xf32>
    %335 = arith.negf %334 : vector<8x256xf32>
    %336 = math.exp %335 : vector<8x256xf32>
    %cst_133 = arith.constant 1.000000e+00 : f32
    %337 = vector.broadcast %cst_133 : f32 to vector<8x256xf32>
    %338 = arith.addf %337, %336 : vector<8x256xf32>
    %339 = arith.divf %337, %338 : vector<8x256xf32>
    %340 = vector.extract_strided_slice %339 {offsets = [0, 0], sizes = [8, 128], strides = [1, 1]} : vector<8x256xf32> to vector<8x128xf32>
    %341 = vector.extract_strided_slice %339 {offsets = [0, 128], sizes = [8, 128], strides = [1, 1]} : vector<8x256xf32> to vector<8x128xf32>
    %342 = vector.extract_strided_slice %330 {offsets = [0, 256], sizes = [8, 128], strides = [1, 1]} : vector<8x384xf32> to vector<8x128xf32>
    %343 = vector.extract_strided_slice %331 {offsets = [0, 256], sizes = [8, 128], strides = [1, 1]} : vector<8x384xf32> to vector<8x128xf32>
    %344 = arith.addf %343, %151 : vector<8x128xf32>
    %345 = arith.mulf %340, %344 : vector<8x128xf32>
    %346 = arith.addf %342, %345 : vector<8x128xf32>
    %347 = math.tanh %346 : vector<8x128xf32>
    %cst_134 = arith.constant 1.000000e+00 : f32
    %348 = vector.broadcast %cst_134 : f32 to vector<8x128xf32>
    %349 = arith.subf %348, %341 : vector<8x128xf32>
    %350 = arith.mulf %349, %347 : vector<8x128xf32>
    %351 = arith.mulf %341, %327 : vector<8x128xf32>
    %352 = arith.addf %350, %351 : vector<8x128xf32>
    %c8_i32_135 = arith.constant 8 : i32
    %353 = arith.index_cast %c8_i32_135 : i32 to index
    %c0_136 = arith.constant 0 : index
    %c0_137 = arith.constant 0 : index
    %354 = vector.load %arg15[%353, %c0_136, %c0_137] : memref<16x8x384xf32, #tpu.memory_space<vmem>>, vector<1x8x384xf32>
    %355 = vector.shape_cast %354 : vector<1x8x384xf32> to vector<8x384xf32>
    %cst_138 = arith.constant dense<0.000000e+00> : vector<8x384xf32>
    %356 = tpu.matmul %352, %148, %cst_138 {dimension_numbers = #tpu.dot_dimension_numbers<[1], [0], [0], [1], [0, 0, 1, 1], [], []>} : vector<8x128xf32>, vector<128x384xf32>, vector<8x384xf32> -> vector<8x384xf32>
    %357 = vector.extract_strided_slice %355 {offsets = [0, 0], sizes = [8, 256], strides = [1, 1]} : vector<8x384xf32> to vector<8x256xf32>
    %358 = vector.extract_strided_slice %356 {offsets = [0, 0], sizes = [8, 256], strides = [1, 1]} : vector<8x384xf32> to vector<8x256xf32>
    %359 = arith.addf %357, %358 : vector<8x256xf32>
    %360 = arith.negf %359 : vector<8x256xf32>
    %361 = math.exp %360 : vector<8x256xf32>
    %cst_139 = arith.constant 1.000000e+00 : f32
    %362 = vector.broadcast %cst_139 : f32 to vector<8x256xf32>
    %363 = arith.addf %362, %361 : vector<8x256xf32>
    %364 = arith.divf %362, %363 : vector<8x256xf32>
    %365 = vector.extract_strided_slice %364 {offsets = [0, 0], sizes = [8, 128], strides = [1, 1]} : vector<8x256xf32> to vector<8x128xf32>
    %366 = vector.extract_strided_slice %364 {offsets = [0, 128], sizes = [8, 128], strides = [1, 1]} : vector<8x256xf32> to vector<8x128xf32>
    %367 = vector.extract_strided_slice %355 {offsets = [0, 256], sizes = [8, 128], strides = [1, 1]} : vector<8x384xf32> to vector<8x128xf32>
    %368 = vector.extract_strided_slice %356 {offsets = [0, 256], sizes = [8, 128], strides = [1, 1]} : vector<8x384xf32> to vector<8x128xf32>
    %369 = arith.addf %368, %151 : vector<8x128xf32>
    %370 = arith.mulf %365, %369 : vector<8x128xf32>
    %371 = arith.addf %367, %370 : vector<8x128xf32>
    %372 = math.tanh %371 : vector<8x128xf32>
    %cst_140 = arith.constant 1.000000e+00 : f32
    %373 = vector.broadcast %cst_140 : f32 to vector<8x128xf32>
    %374 = arith.subf %373, %366 : vector<8x128xf32>
    %375 = arith.mulf %374, %372 : vector<8x128xf32>
    %376 = arith.mulf %366, %352 : vector<8x128xf32>
    %377 = arith.addf %375, %376 : vector<8x128xf32>
    %c9_i32_141 = arith.constant 9 : i32
    %378 = arith.index_cast %c9_i32_141 : i32 to index
    %c0_142 = arith.constant 0 : index
    %c0_143 = arith.constant 0 : index
    %379 = vector.load %arg15[%378, %c0_142, %c0_143] : memref<16x8x384xf32, #tpu.memory_space<vmem>>, vector<1x8x384xf32>
    %380 = vector.shape_cast %379 : vector<1x8x384xf32> to vector<8x384xf32>
    %cst_144 = arith.constant dense<0.000000e+00> : vector<8x384xf32>
    %381 = tpu.matmul %377, %148, %cst_144 {dimension_numbers = #tpu.dot_dimension_numbers<[1], [0], [0], [1], [0, 0, 1, 1], [], []>} : vector<8x128xf32>, vector<128x384xf32>, vector<8x384xf32> -> vector<8x384xf32>
    %382 = vector.extract_strided_slice %380 {offsets = [0, 0], sizes = [8, 256], strides = [1, 1]} : vector<8x384xf32> to vector<8x256xf32>
    %383 = vector.extract_strided_slice %381 {offsets = [0, 0], sizes = [8, 256], strides = [1, 1]} : vector<8x384xf32> to vector<8x256xf32>
    %384 = arith.addf %382, %383 : vector<8x256xf32>
    %385 = arith.negf %384 : vector<8x256xf32>
    %386 = math.exp %385 : vector<8x256xf32>
    %cst_145 = arith.constant 1.000000e+00 : f32
    %387 = vector.broadcast %cst_145 : f32 to vector<8x256xf32>
    %388 = arith.addf %387, %386 : vector<8x256xf32>
    %389 = arith.divf %387, %388 : vector<8x256xf32>
    %390 = vector.extract_strided_slice %389 {offsets = [0, 0], sizes = [8, 128], strides = [1, 1]} : vector<8x256xf32> to vector<8x128xf32>
    %391 = vector.extract_strided_slice %389 {offsets = [0, 128], sizes = [8, 128], strides = [1, 1]} : vector<8x256xf32> to vector<8x128xf32>
    %392 = vector.extract_strided_slice %380 {offsets = [0, 256], sizes = [8, 128], strides = [1, 1]} : vector<8x384xf32> to vector<8x128xf32>
    %393 = vector.extract_strided_slice %381 {offsets = [0, 256], sizes = [8, 128], strides = [1, 1]} : vector<8x384xf32> to vector<8x128xf32>
    %394 = arith.addf %393, %151 : vector<8x128xf32>
    %395 = arith.mulf %390, %394 : vector<8x128xf32>
    %396 = arith.addf %392, %395 : vector<8x128xf32>
    %397 = math.tanh %396 : vector<8x128xf32>
    %cst_146 = arith.constant 1.000000e+00 : f32
    %398 = vector.broadcast %cst_146 : f32 to vector<8x128xf32>
    %399 = arith.subf %398, %391 : vector<8x128xf32>
    %400 = arith.mulf %399, %397 : vector<8x128xf32>
    %401 = arith.mulf %391, %377 : vector<8x128xf32>
    %402 = arith.addf %400, %401 : vector<8x128xf32>
    %c10_i32_147 = arith.constant 10 : i32
    %403 = arith.index_cast %c10_i32_147 : i32 to index
    %c0_148 = arith.constant 0 : index
    %c0_149 = arith.constant 0 : index
    %404 = vector.load %arg15[%403, %c0_148, %c0_149] : memref<16x8x384xf32, #tpu.memory_space<vmem>>, vector<1x8x384xf32>
    %405 = vector.shape_cast %404 : vector<1x8x384xf32> to vector<8x384xf32>
    %cst_150 = arith.constant dense<0.000000e+00> : vector<8x384xf32>
    %406 = tpu.matmul %402, %148, %cst_150 {dimension_numbers = #tpu.dot_dimension_numbers<[1], [0], [0], [1], [0, 0, 1, 1], [], []>} : vector<8x128xf32>, vector<128x384xf32>, vector<8x384xf32> -> vector<8x384xf32>
    %407 = vector.extract_strided_slice %405 {offsets = [0, 0], sizes = [8, 256], strides = [1, 1]} : vector<8x384xf32> to vector<8x256xf32>
    %408 = vector.extract_strided_slice %406 {offsets = [0, 0], sizes = [8, 256], strides = [1, 1]} : vector<8x384xf32> to vector<8x256xf32>
    %409 = arith.addf %407, %408 : vector<8x256xf32>
    %410 = arith.negf %409 : vector<8x256xf32>
    %411 = math.exp %410 : vector<8x256xf32>
    %cst_151 = arith.constant 1.000000e+00 : f32
    %412 = vector.broadcast %cst_151 : f32 to vector<8x256xf32>
    %413 = arith.addf %412, %411 : vector<8x256xf32>
    %414 = arith.divf %412, %413 : vector<8x256xf32>
    %415 = vector.extract_strided_slice %414 {offsets = [0, 0], sizes = [8, 128], strides = [1, 1]} : vector<8x256xf32> to vector<8x128xf32>
    %416 = vector.extract_strided_slice %414 {offsets = [0, 128], sizes = [8, 128], strides = [1, 1]} : vector<8x256xf32> to vector<8x128xf32>
    %417 = vector.extract_strided_slice %405 {offsets = [0, 256], sizes = [8, 128], strides = [1, 1]} : vector<8x384xf32> to vector<8x128xf32>
    %418 = vector.extract_strided_slice %406 {offsets = [0, 256], sizes = [8, 128], strides = [1, 1]} : vector<8x384xf32> to vector<8x128xf32>
    %419 = arith.addf %418, %151 : vector<8x128xf32>
    %420 = arith.mulf %415, %419 : vector<8x128xf32>
    %421 = arith.addf %417, %420 : vector<8x128xf32>
    %422 = math.tanh %421 : vector<8x128xf32>
    %cst_152 = arith.constant 1.000000e+00 : f32
    %423 = vector.broadcast %cst_152 : f32 to vector<8x128xf32>
    %424 = arith.subf %423, %416 : vector<8x128xf32>
    %425 = arith.mulf %424, %422 : vector<8x128xf32>
    %426 = arith.mulf %416, %402 : vector<8x128xf32>
    %427 = arith.addf %425, %426 : vector<8x128xf32>
    %c11_i32_153 = arith.constant 11 : i32
    %428 = arith.index_cast %c11_i32_153 : i32 to index
    %c0_154 = arith.constant 0 : index
    %c0_155 = arith.constant 0 : index
    %429 = vector.load %arg15[%428, %c0_154, %c0_155] : memref<16x8x384xf32, #tpu.memory_space<vmem>>, vector<1x8x384xf32>
    %430 = vector.shape_cast %429 : vector<1x8x384xf32> to vector<8x384xf32>
    %cst_156 = arith.constant dense<0.000000e+00> : vector<8x384xf32>
    %431 = tpu.matmul %427, %148, %cst_156 {dimension_numbers = #tpu.dot_dimension_numbers<[1], [0], [0], [1], [0, 0, 1, 1], [], []>} : vector<8x128xf32>, vector<128x384xf32>, vector<8x384xf32> -> vector<8x384xf32>
    %432 = vector.extract_strided_slice %430 {offsets = [0, 0], sizes = [8, 256], strides = [1, 1]} : vector<8x384xf32> to vector<8x256xf32>
    %433 = vector.extract_strided_slice %431 {offsets = [0, 0], sizes = [8, 256], strides = [1, 1]} : vector<8x384xf32> to vector<8x256xf32>
    %434 = arith.addf %432, %433 : vector<8x256xf32>
    %435 = arith.negf %434 : vector<8x256xf32>
    %436 = math.exp %435 : vector<8x256xf32>
    %cst_157 = arith.constant 1.000000e+00 : f32
    %437 = vector.broadcast %cst_157 : f32 to vector<8x256xf32>
    %438 = arith.addf %437, %436 : vector<8x256xf32>
    %439 = arith.divf %437, %438 : vector<8x256xf32>
    %440 = vector.extract_strided_slice %439 {offsets = [0, 0], sizes = [8, 128], strides = [1, 1]} : vector<8x256xf32> to vector<8x128xf32>
    %441 = vector.extract_strided_slice %439 {offsets = [0, 128], sizes = [8, 128], strides = [1, 1]} : vector<8x256xf32> to vector<8x128xf32>
    %442 = vector.extract_strided_slice %430 {offsets = [0, 256], sizes = [8, 128], strides = [1, 1]} : vector<8x384xf32> to vector<8x128xf32>
    %443 = vector.extract_strided_slice %431 {offsets = [0, 256], sizes = [8, 128], strides = [1, 1]} : vector<8x384xf32> to vector<8x128xf32>
    %444 = arith.addf %443, %151 : vector<8x128xf32>
    %445 = arith.mulf %440, %444 : vector<8x128xf32>
    %446 = arith.addf %442, %445 : vector<8x128xf32>
    %447 = math.tanh %446 : vector<8x128xf32>
    %cst_158 = arith.constant 1.000000e+00 : f32
    %448 = vector.broadcast %cst_158 : f32 to vector<8x128xf32>
    %449 = arith.subf %448, %441 : vector<8x128xf32>
    %450 = arith.mulf %449, %447 : vector<8x128xf32>
    %451 = arith.mulf %441, %427 : vector<8x128xf32>
    %452 = arith.addf %450, %451 : vector<8x128xf32>
    %c12_i32_159 = arith.constant 12 : i32
    %453 = arith.index_cast %c12_i32_159 : i32 to index
    %c0_160 = arith.constant 0 : index
    %c0_161 = arith.constant 0 : index
    %454 = vector.load %arg15[%453, %c0_160, %c0_161] : memref<16x8x384xf32, #tpu.memory_space<vmem>>, vector<1x8x384xf32>
    %455 = vector.shape_cast %454 : vector<1x8x384xf32> to vector<8x384xf32>
    %cst_162 = arith.constant dense<0.000000e+00> : vector<8x384xf32>
    %456 = tpu.matmul %452, %148, %cst_162 {dimension_numbers = #tpu.dot_dimension_numbers<[1], [0], [0], [1], [0, 0, 1, 1], [], []>} : vector<8x128xf32>, vector<128x384xf32>, vector<8x384xf32> -> vector<8x384xf32>
    %457 = vector.extract_strided_slice %455 {offsets = [0, 0], sizes = [8, 256], strides = [1, 1]} : vector<8x384xf32> to vector<8x256xf32>
    %458 = vector.extract_strided_slice %456 {offsets = [0, 0], sizes = [8, 256], strides = [1, 1]} : vector<8x384xf32> to vector<8x256xf32>
    %459 = arith.addf %457, %458 : vector<8x256xf32>
    %460 = arith.negf %459 : vector<8x256xf32>
    %461 = math.exp %460 : vector<8x256xf32>
    %cst_163 = arith.constant 1.000000e+00 : f32
    %462 = vector.broadcast %cst_163 : f32 to vector<8x256xf32>
    %463 = arith.addf %462, %461 : vector<8x256xf32>
    %464 = arith.divf %462, %463 : vector<8x256xf32>
    %465 = vector.extract_strided_slice %464 {offsets = [0, 0], sizes = [8, 128], strides = [1, 1]} : vector<8x256xf32> to vector<8x128xf32>
    %466 = vector.extract_strided_slice %464 {offsets = [0, 128], sizes = [8, 128], strides = [1, 1]} : vector<8x256xf32> to vector<8x128xf32>
    %467 = vector.extract_strided_slice %455 {offsets = [0, 256], sizes = [8, 128], strides = [1, 1]} : vector<8x384xf32> to vector<8x128xf32>
    %468 = vector.extract_strided_slice %456 {offsets = [0, 256], sizes = [8, 128], strides = [1, 1]} : vector<8x384xf32> to vector<8x128xf32>
    %469 = arith.addf %468, %151 : vector<8x128xf32>
    %470 = arith.mulf %465, %469 : vector<8x128xf32>
    %471 = arith.addf %467, %470 : vector<8x128xf32>
    %472 = math.tanh %471 : vector<8x128xf32>
    %cst_164 = arith.constant 1.000000e+00 : f32
    %473 = vector.broadcast %cst_164 : f32 to vector<8x128xf32>
    %474 = arith.subf %473, %466 : vector<8x128xf32>
    %475 = arith.mulf %474, %472 : vector<8x128xf32>
    %476 = arith.mulf %466, %452 : vector<8x128xf32>
    %477 = arith.addf %475, %476 : vector<8x128xf32>
    %c13_i32_165 = arith.constant 13 : i32
    %478 = arith.index_cast %c13_i32_165 : i32 to index
    %c0_166 = arith.constant 0 : index
    %c0_167 = arith.constant 0 : index
    %479 = vector.load %arg15[%478, %c0_166, %c0_167] : memref<16x8x384xf32, #tpu.memory_space<vmem>>, vector<1x8x384xf32>
    %480 = vector.shape_cast %479 : vector<1x8x384xf32> to vector<8x384xf32>
    %cst_168 = arith.constant dense<0.000000e+00> : vector<8x384xf32>
    %481 = tpu.matmul %477, %148, %cst_168 {dimension_numbers = #tpu.dot_dimension_numbers<[1], [0], [0], [1], [0, 0, 1, 1], [], []>} : vector<8x128xf32>, vector<128x384xf32>, vector<8x384xf32> -> vector<8x384xf32>
    %482 = vector.extract_strided_slice %480 {offsets = [0, 0], sizes = [8, 256], strides = [1, 1]} : vector<8x384xf32> to vector<8x256xf32>
    %483 = vector.extract_strided_slice %481 {offsets = [0, 0], sizes = [8, 256], strides = [1, 1]} : vector<8x384xf32> to vector<8x256xf32>
    %484 = arith.addf %482, %483 : vector<8x256xf32>
    %485 = arith.negf %484 : vector<8x256xf32>
    %486 = math.exp %485 : vector<8x256xf32>
    %cst_169 = arith.constant 1.000000e+00 : f32
    %487 = vector.broadcast %cst_169 : f32 to vector<8x256xf32>
    %488 = arith.addf %487, %486 : vector<8x256xf32>
    %489 = arith.divf %487, %488 : vector<8x256xf32>
    %490 = vector.extract_strided_slice %489 {offsets = [0, 0], sizes = [8, 128], strides = [1, 1]} : vector<8x256xf32> to vector<8x128xf32>
    %491 = vector.extract_strided_slice %489 {offsets = [0, 128], sizes = [8, 128], strides = [1, 1]} : vector<8x256xf32> to vector<8x128xf32>
    %492 = vector.extract_strided_slice %480 {offsets = [0, 256], sizes = [8, 128], strides = [1, 1]} : vector<8x384xf32> to vector<8x128xf32>
    %493 = vector.extract_strided_slice %481 {offsets = [0, 256], sizes = [8, 128], strides = [1, 1]} : vector<8x384xf32> to vector<8x128xf32>
    %494 = arith.addf %493, %151 : vector<8x128xf32>
    %495 = arith.mulf %490, %494 : vector<8x128xf32>
    %496 = arith.addf %492, %495 : vector<8x128xf32>
    %497 = math.tanh %496 : vector<8x128xf32>
    %cst_170 = arith.constant 1.000000e+00 : f32
    %498 = vector.broadcast %cst_170 : f32 to vector<8x128xf32>
    %499 = arith.subf %498, %491 : vector<8x128xf32>
    %500 = arith.mulf %499, %497 : vector<8x128xf32>
    %501 = arith.mulf %491, %477 : vector<8x128xf32>
    %502 = arith.addf %500, %501 : vector<8x128xf32>
    %c14_i32_171 = arith.constant 14 : i32
    %503 = arith.index_cast %c14_i32_171 : i32 to index
    %c0_172 = arith.constant 0 : index
    %c0_173 = arith.constant 0 : index
    %504 = vector.load %arg15[%503, %c0_172, %c0_173] : memref<16x8x384xf32, #tpu.memory_space<vmem>>, vector<1x8x384xf32>
    %505 = vector.shape_cast %504 : vector<1x8x384xf32> to vector<8x384xf32>
    %cst_174 = arith.constant dense<0.000000e+00> : vector<8x384xf32>
    %506 = tpu.matmul %502, %148, %cst_174 {dimension_numbers = #tpu.dot_dimension_numbers<[1], [0], [0], [1], [0, 0, 1, 1], [], []>} : vector<8x128xf32>, vector<128x384xf32>, vector<8x384xf32> -> vector<8x384xf32>
    %507 = vector.extract_strided_slice %505 {offsets = [0, 0], sizes = [8, 256], strides = [1, 1]} : vector<8x384xf32> to vector<8x256xf32>
    %508 = vector.extract_strided_slice %506 {offsets = [0, 0], sizes = [8, 256], strides = [1, 1]} : vector<8x384xf32> to vector<8x256xf32>
    %509 = arith.addf %507, %508 : vector<8x256xf32>
    %510 = arith.negf %509 : vector<8x256xf32>
    %511 = math.exp %510 : vector<8x256xf32>
    %cst_175 = arith.constant 1.000000e+00 : f32
    %512 = vector.broadcast %cst_175 : f32 to vector<8x256xf32>
    %513 = arith.addf %512, %511 : vector<8x256xf32>
    %514 = arith.divf %512, %513 : vector<8x256xf32>
    %515 = vector.extract_strided_slice %514 {offsets = [0, 0], sizes = [8, 128], strides = [1, 1]} : vector<8x256xf32> to vector<8x128xf32>
    %516 = vector.extract_strided_slice %514 {offsets = [0, 128], sizes = [8, 128], strides = [1, 1]} : vector<8x256xf32> to vector<8x128xf32>
    %517 = vector.extract_strided_slice %505 {offsets = [0, 256], sizes = [8, 128], strides = [1, 1]} : vector<8x384xf32> to vector<8x128xf32>
    %518 = vector.extract_strided_slice %506 {offsets = [0, 256], sizes = [8, 128], strides = [1, 1]} : vector<8x384xf32> to vector<8x128xf32>
    %519 = arith.addf %518, %151 : vector<8x128xf32>
    %520 = arith.mulf %515, %519 : vector<8x128xf32>
    %521 = arith.addf %517, %520 : vector<8x128xf32>
    %522 = math.tanh %521 : vector<8x128xf32>
    %cst_176 = arith.constant 1.000000e+00 : f32
    %523 = vector.broadcast %cst_176 : f32 to vector<8x128xf32>
    %524 = arith.subf %523, %516 : vector<8x128xf32>
    %525 = arith.mulf %524, %522 : vector<8x128xf32>
    %526 = arith.mulf %516, %502 : vector<8x128xf32>
    %527 = arith.addf %525, %526 : vector<8x128xf32>
    %c15_i32_177 = arith.constant 15 : i32
    %528 = arith.index_cast %c15_i32_177 : i32 to index
    %c0_178 = arith.constant 0 : index
    %c0_179 = arith.constant 0 : index
    %529 = vector.load %arg15[%528, %c0_178, %c0_179] : memref<16x8x384xf32, #tpu.memory_space<vmem>>, vector<1x8x384xf32>
    %530 = vector.shape_cast %529 : vector<1x8x384xf32> to vector<8x384xf32>
    %cst_180 = arith.constant dense<0.000000e+00> : vector<8x384xf32>
    %531 = tpu.matmul %527, %148, %cst_180 {dimension_numbers = #tpu.dot_dimension_numbers<[1], [0], [0], [1], [0, 0, 1, 1], [], []>} : vector<8x128xf32>, vector<128x384xf32>, vector<8x384xf32> -> vector<8x384xf32>
    %532 = vector.extract_strided_slice %530 {offsets = [0, 0], sizes = [8, 256], strides = [1, 1]} : vector<8x384xf32> to vector<8x256xf32>
    %533 = vector.extract_strided_slice %531 {offsets = [0, 0], sizes = [8, 256], strides = [1, 1]} : vector<8x384xf32> to vector<8x256xf32>
    %534 = arith.addf %532, %533 : vector<8x256xf32>
    %535 = arith.negf %534 : vector<8x256xf32>
    %536 = math.exp %535 : vector<8x256xf32>
    %cst_181 = arith.constant 1.000000e+00 : f32
    %537 = vector.broadcast %cst_181 : f32 to vector<8x256xf32>
    %538 = arith.addf %537, %536 : vector<8x256xf32>
    %539 = arith.divf %537, %538 : vector<8x256xf32>
    %540 = vector.extract_strided_slice %539 {offsets = [0, 0], sizes = [8, 128], strides = [1, 1]} : vector<8x256xf32> to vector<8x128xf32>
    %541 = vector.extract_strided_slice %539 {offsets = [0, 128], sizes = [8, 128], strides = [1, 1]} : vector<8x256xf32> to vector<8x128xf32>
    %542 = vector.extract_strided_slice %530 {offsets = [0, 256], sizes = [8, 128], strides = [1, 1]} : vector<8x384xf32> to vector<8x128xf32>
    %543 = vector.extract_strided_slice %531 {offsets = [0, 256], sizes = [8, 128], strides = [1, 1]} : vector<8x384xf32> to vector<8x128xf32>
    %544 = arith.addf %543, %151 : vector<8x128xf32>
    %545 = arith.mulf %540, %544 : vector<8x128xf32>
    %546 = arith.addf %542, %545 : vector<8x128xf32>
    %547 = math.tanh %546 : vector<8x128xf32>
    %cst_182 = arith.constant 1.000000e+00 : f32
    %548 = vector.broadcast %cst_182 : f32 to vector<8x128xf32>
    %549 = arith.subf %548, %541 : vector<8x128xf32>
    %550 = arith.mulf %549, %547 : vector<8x128xf32>
    %551 = arith.mulf %541, %527 : vector<8x128xf32>
    %552 = arith.addf %550, %551 : vector<8x128xf32>
    %c16_i32_183 = arith.constant 16 : i32
    %c0_184 = arith.constant 0 : index
    %c0_185 = arith.constant 0 : index
    %553 = vector.load %arg7[%c0_184, %c0_185] : memref<128x256xf32, #tpu.memory_space<vmem>>, vector<128x256xf32>
    %cst_186 = arith.constant dense<0.000000e+00> : vector<8x256xf32>
    %554 = tpu.matmul %552, %553, %cst_186 {dimension_numbers = #tpu.dot_dimension_numbers<[1], [0], [0], [1], [0, 0, 1, 1], [], []>} : vector<8x128xf32>, vector<128x256xf32>, vector<8x256xf32> -> vector<8x256xf32>
    %c0_187 = arith.constant 0 : index
    %c0_188 = arith.constant 0 : index
    %555 = vector.load %arg2[%c0_187, %c0_188] : memref<8x3xf32, #tpu.memory_space<vmem>>, vector<8x3xf32>
    %c0_189 = arith.constant 0 : index
    %c0_190 = arith.constant 0 : index
    %556 = vector.load %arg8[%c0_189, %c0_190] : memref<3x256xf32, #tpu.memory_space<vmem>>, vector<3x256xf32>
    %cst_191 = arith.constant dense<0.000000e+00> : vector<8x256xf32>
    %557 = tpu.matmul %555, %556, %cst_191 {dimension_numbers = #tpu.dot_dimension_numbers<[1], [0], [0], [1], [0, 0, 1, 1], [], []>} : vector<8x3xf32>, vector<3x256xf32>, vector<8x256xf32> -> vector<8x256xf32>
    %558 = arith.addf %554, %557 : vector<8x256xf32>
    %c0_192 = arith.constant 0 : index
    %c0_193 = arith.constant 0 : index
    %559 = vector.load %arg9[%c0_192, %c0_193] : memref<1x256xf32, #tpu.memory_space<vmem>>, vector<1x256xf32>
    %560 = vector.broadcast %559 : vector<1x256xf32> to vector<8x256xf32>
    %561 = arith.addf %558, %560 : vector<8x256xf32>
    %cst_194 = arith.constant 0.000000e+00 : f32
    %562 = vector.broadcast %cst_194 : f32 to vector<8x256xf32>
    %563 = arith.maximumf %561, %562 : vector<8x256xf32>
    %c0_195 = arith.constant 0 : index
    %c0_196 = arith.constant 0 : index
    %564 = vector.load %arg10[%c0_195, %c0_196] : memref<1x256xf32, #tpu.memory_space<vmem>>, vector<1x256xf32>
    %565 = vector.broadcast %564 : vector<1x256xf32> to vector<8x256xf32>
    %566 = arith.mulf %563, %565 : vector<8x256xf32>
    %c0_197 = arith.constant 0 : index
    %c0_198 = arith.constant 0 : index
    %567 = vector.load %arg11[%c0_197, %c0_198] : memref<1x256xf32, #tpu.memory_space<vmem>>, vector<1x256xf32>
    %568 = vector.broadcast %567 : vector<1x256xf32> to vector<8x256xf32>
    %569 = arith.addf %566, %568 : vector<8x256xf32>
    %c0_199 = arith.constant 0 : index
    %c0_200 = arith.constant 0 : index
    %570 = vector.load %arg12[%c0_199, %c0_200] : memref<256x128xf32, #tpu.memory_space<vmem>>, vector<256x128xf32>
    %cst_201 = arith.constant dense<0.000000e+00> : vector<8x128xf32>
    %571 = tpu.matmul %569, %570, %cst_201 {dimension_numbers = #tpu.dot_dimension_numbers<[1], [0], [0], [1], [0, 0, 1, 1], [], []>} : vector<8x256xf32>, vector<256x128xf32>, vector<8x128xf32> -> vector<8x128xf32>
    %c0_202 = arith.constant 0 : index
    %c0_203 = arith.constant 0 : index
    %572 = vector.load %arg13[%c0_202, %c0_203] : memref<1x128xf32, #tpu.memory_space<vmem>>, vector<1x128xf32>
    %573 = vector.broadcast %572 : vector<1x128xf32> to vector<8x128xf32>
    %574 = arith.addf %571, %573 : vector<8x128xf32>
    %c0_204 = arith.constant 0 : index
    %c0_205 = arith.constant 0 : index
    %575 = vector.load %arg14[%c0_204, %c0_205] : memref<8x128xf32, #tpu.memory_space<vmem>>, vector<8x128xf32>
    tpu.vector_store %arg14[%c0_204, %c0_205], %574 {strides = array<i32>} : memref<8x128xf32, #tpu.memory_space<vmem>>, vector<8x128xf32>,
    return
  }
  func.func @transform_0(%arg0: i32) -> (i32, i32, i32) {
    %c0_i32 = arith.constant 0 : i32
    %c0_i32_0 = arith.constant 0 : i32
    %c0_i32_1 = arith.constant 0 : i32
    return %c0_i32, %arg0, %c0_i32_0 : i32, i32, i32
  }
  func.func @transform_1(%arg0: i32) -> (i32, i32) {
    %c0_i32 = arith.constant 0 : i32
    %c0_i32_0 = arith.constant 0 : i32
    return %arg0, %c0_i32 : i32, i32
  }
  func.func @transform_2(%arg0: i32) -> (i32, i32) {
    %c0_i32 = arith.constant 0 : i32
    %c0_i32_0 = arith.constant 0 : i32
    %c0_i32_1 = arith.constant 0 : i32
    return %c0_i32, %c0_i32_0 : i32, i32
  }
  func.func @transform_3(%arg0: i32) -> (i32, i32) {
    %c0_i32 = arith.constant 0 : i32
    %c0_i32_0 = arith.constant 0 : i32
    %c0_i32_1 = arith.constant 0 : i32
    return %c0_i32, %c0_i32_0 : i32, i32
  }
  func.func @transform_4(%arg0: i32) -> (i32, i32) {
    %c0_i32 = arith.constant 0 : i32
    %c0_i32_0 = arith.constant 0 : i32
    %c0_i32_1 = arith.constant 0 : i32
    return %c0_i32, %c0_i32_0 : i32, i32
  }
  func.func @transform_5(%arg0: i32) -> (i32, i32) {
    %c0_i32 = arith.constant 0 : i32
    %c0_i32_0 = arith.constant 0 : i32
    %c0_i32_1 = arith.constant 0 : i32
    return %c0_i32, %c0_i32_0 : i32, i32
  }
  func.func @transform_6(%arg0: i32) -> (i32, i32) {
    %c0_i32 = arith.constant 0 : i32
    %c0_i32_0 = arith.constant 0 : i32
    %c0_i32_1 = arith.constant 0 : i32
    return %c0_i32, %c0_i32_0 : i32, i32
  }
  func.func @transform_7(%arg0: i32) -> (i32, i32) {
    %c0_i32 = arith.constant 0 : i32
    %c0_i32_0 = arith.constant 0 : i32
    %c0_i32_1 = arith.constant 0 : i32
    return %c0_i32, %c0_i32_0 : i32, i32
  }
  func.func @transform_8(%arg0: i32) -> (i32, i32) {
    %c0_i32 = arith.constant 0 : i32
    %c0_i32_0 = arith.constant 0 : i32
    %c0_i32_1 = arith.constant 0 : i32
    return %c0_i32, %c0_i32_0 : i32, i32
  }
  func.func @transform_9(%arg0: i32) -> (i32, i32) {
    %c0_i32 = arith.constant 0 : i32
    %c0_i32_0 = arith.constant 0 : i32
    %c0_i32_1 = arith.constant 0 : i32
    return %c0_i32, %c0_i32_0 : i32, i32
  }
  func.func @transform_10(%arg0: i32) -> (i32, i32) {
    %c0_i32 = arith.constant 0 : i32
    %c0_i32_0 = arith.constant 0 : i32
    %c0_i32_1 = arith.constant 0 : i32
    return %c0_i32, %c0_i32_0 : i32, i32
  }
  func.func @transform_11(%arg0: i32) -> (i32, i32) {
    %c0_i32 = arith.constant 0 : i32
    %c0_i32_0 = arith.constant 0 : i32
    %c0_i32_1 = arith.constant 0 : i32
    return %c0_i32, %c0_i32_0 : i32, i32
  }
  func.func @transform_12(%arg0: i32) -> (i32, i32) {
    %c0_i32 = arith.constant 0 : i32
    %c0_i32_0 = arith.constant 0 : i32
    %c0_i32_1 = arith.constant 0 : i32
    return %c0_i32, %c0_i32_0 : i32, i32
  }
  func.func @transform_13(%arg0: i32) -> (i32, i32) {
    %c0_i32 = arith.constant 0 : i32
    %c0_i32_0 = arith.constant 0 : i32
    return %arg0, %c0_i32 : i32, i32
  }
}

</mosaic_0001>

<bundles_post_ra>
// kernel: individual_feature_generator_forward.1
= control target key start
LH: loop header
LB: loop body
LE: loop exit
PB: predicated region body
PF: predicated region fallthrough
CT: control target
= control target key end

     0   :  { %s6447_s0 = inlined_call_operand.vmem [shape: f32[16,16,4], index: 0, kind: input, shape index: {}]   ;;  %s6448_s1 = inlined_call_operand.vmem [shape: f32[16,3], index: 1, kind: input, shape index: {}]   ;;  %s6449_s2 = inlined_call_operand.vmem [shape: f32[4,384], index: 2, kind: input, shape index: {}]   ;;  %s6450_s3 = inlined_call_operand.hbm [shape: f32[128,384], index: 3, kind: input, shape index: {}]   ;;  %s6451_s4 = inlined_call_operand.vmem [shape: f32[1,384], index: 4, kind: input, shape index: {}]   ;;  %s6452_s5 = inlined_call_operand.vmem [shape: f32[1,128], index: 5, kind: input, shape index: {}]   ;;  %s6453_s6 = inlined_call_operand.vmem [shape: f32[128,256], index: 6, kind: input, shape index: {}]   ;;  %s6454_s7 = inlined_call_operand.vmem [shape: f32[3,256], index: 7, kind: input, shape index: {}]   ;;  %s6455_s8 = inlined_call_operand.vmem [shape: f32[1,256], index: 8, kind: input, shape index: {}]   ;;  %s6456_s9 = inlined_call_operand.vmem [shape: f32[1,256], index: 9, kind: input, shape index: {}]   ;;  %s6457_s10 = inlined_call_operand.vmem [shape: f32[1,256], index: 10, kind: input, shape index: {}]   ;;  %s6458_s11 = inlined_call_operand.hbm [shape: f32[256,128], index: 11, kind: input, shape index: {}]   ;;  %s6459_s12 = inlined_call_operand.vmem [shape: f32[1,128], index: 12, kind: input, shape index: {}]   ;;  %s6460_s13 = inlined_call_operand.vmem [shape: f32[16,128], index: 13, kind: output, shape index: {}]  }
   0x1   :  { %6519 = sst [smem:[#allocation66_spill]] %s6450_s3 }
   0x2   :  { %6520 = sst [smem:[#allocation67_spill]] %s6458_s11 }
   0x3   :  { %6521 = sst [smem:[#allocation68_spill]] %s6460_s13 }
   0x4   :  { %18 = vsyncpa [#allocation5], 0 }
   0x5   :  { %19 = vsyncpa [#allocation7], 0  ;;  %s4696_s25 = smov 0   ;;  %s4698_s26 = smov 0  }
   0x6   :  { %s4700_s27 = smov 0  }
   0x7 LB: > { %s4712_s28 = sadd.s32 4294967295, %s4617_s27   ;;  %s4715_s29 = sadd.s32 1, %s4617_s27   ;;  %s4617_s27 = sphi %s4700_s27, %s6731_s27   ;;  %s4613_s26 = sphi %s4698_s26, %s6734_s26   ;;  %s4609_s25 = sphi %s4696_s25, %s6733_s25  }
   0x8   : > { %6522 = sst [smem:[#allocation10_spill]] %s4715_s29  ;;  %s29_s30 = ssub.s32 %s4617_s27, %s4715_s29 }
   0x9   : > { %s32_s14 = sadd.s32 1, %s4613_s26  ;;  %p30_p0 = scmp.eq.s32.totalorder %s29_s30, 0 }
   0xa   : > { %p39_p1 = scmp.ne.s32.totalorder %s4613_s26, %s4609_s25  ;;  %p40_p2 = scmp.eq.s32.totalorder %s4617_s27, 0 }
   0xb   : > { %p4046_p3 = scmp.ge.s32.totalorder %s4617_s27, 1  ;;  %p339_p5 = scmp.lt.s32.totalorder %s4617_s27, 3 }
   0xc   : > { %s4725_s15 = scalar_select %p30_p0, %s4613_s26, %s32_s14  }
   0xd   : > { %p4727_p4 = por %p40_p2, %p39_p1  ;;  %p4222_p6 = scmp.eq.s32.totalorder %s4712_s28, 0 }
   0xe   : > { %6523 = sst [smem:[#allocation11_spill]] %s4725_s15  ;;  %p4733_p7 = pnand %p4046_p3, %p339_p5 }
   0xf   : > { %s6526_s3 = sld [smem:[#allocation66_spill]]  ;;  %s4619_s21 = smov [#allocation4]  }
  0x10   : > { %p4215_p8 = pneg %p4733_p7  ;;  %s355_s22 = sshll.u32 %s4619_s21, 4  ;;  %s356_s22 = int_to_ptr.vmem [resolvable:$true] %s355_s22 }
  0x11   : > { %s6527_s11 = sld [smem:[#allocation67_spill]]  ;;  %s4620_s14 = smov 384  }
  0x12   : > { %p4216_p9 = pnand %p4222_p6, %p4215_p8  ;;  %s4621_s15 = smov 24  }
  0x13   : > { %s4622_s29 = smov [#allocation6]   ;;  %s4623_s19 = smov 128  }
  0x14   : > { %s390_s18 = sshll.u32 %s4622_s29, 4  ;;  %p4049_p10 = scmp.ge.s32.totalorder %s4617_s27, 2  ;;  %s391_s18 = int_to_ptr.vmem [resolvable:$true] %s390_s18 }
  0x15   : > { %s353_s20 = sshll.u32 %s6526_s3, 4  ;;  %s4624_s3 = smov 8   ;;  %s354_s20 = int_to_ptr.hbm [resolvable:$true] %s353_s20 }
  0x16   : > { %4218 = dma.hbm_to_vmem [thread:$0]  (!%p4216_p9), %s354_s20, 6144, %s356_s22, [#allocation5], %s4620_s14, %s4620_s14, %s4621_s15  }
  0x17   : > { %s388_s30 = sshll.u32 %s6527_s11, 4  ;;  %403 = sbr.rel (%p4049_p10) target bundleno = 48 (0x30), region = 60  ;;  %s389_s30 = int_to_ptr.hbm [resolvable:$true] %s388_s30 }
  0x18   : > { %4221 = dma.hbm_to_vmem [thread:$0]  (!%p4216_p9), %s389_s30, 4096, %s391_s18, [#allocation7], %s4623_s19, %s4623_s19, %s4624_s3  }
  0x1c   : > { %406 = sbr.rel (!%p4727_p4) target bundleno = 48 (0x30), region = 64  ;;  %s408_s21 = sand.u32 (%p4727_p4), 1, %s4613_s26  }
  0x1d   : > { %s4051_s23 = sshll.u32 (%p4727_p4), %s4617_s27, 3  ;;  %s4050_s24 = sshll.u32 (%p4727_p4), %s408_s21, 7 }
  0x1e   : > { %s4755_s15 = scalar_lea.vmem (%p4727_p4), %s6447_s0, %s4051_s23  ;;  %s410_s3 = scalar_lea.vmem (%p4727_p4), [#allocation3], %s4050_s24 }
  0x1f   : > { %v471_v0 = vld [vmem:[%s4755_s15] sm:$0xff] (%p4727_p4)  ;;  %v473_v1 = vld [vmem:[%s4755_s15 + $0x10] sm:$0xff] (%p4727_p4) }
  0x20   : > { %v475_v2 = vld [vmem:[%s4755_s15 + $0x20] sm:$0xff] (%p4727_p4)  ;;  %472 = vst [vmem:[%s410_s3] sm:$0xff] (%p4727_p4), %v471_v0  ;;  %v477_v3 = vld [vmem:[%s4755_s15 + $0x30] sm:$0xff] (%p4727_p4) }
  0x21   : > { %474 = vst [vmem:[%s410_s3 + $0x8] sm:$0xff] %v473_v1  ;;  %v479_v4 = vld [vmem:[%s4755_s15 + $0x40] sm:$0xff]  ;;  %v481_v5 = vld [vmem:[%s4755_s15 + $0x50] sm:$0xff] }
  0x22   : > { %476 = vst [vmem:[%s410_s3 + $0x10] sm:$0xff] %v475_v2  ;;  %v483_v6 = vld [vmem:[%s4755_s15 + $0x60] sm:$0xff]  ;;  %v485_v7 = vld [vmem:[%s4755_s15 + $0x70] sm:$0xff] }
  0x23   : > { %478 = vst [vmem:[%s410_s3 + $0x18] sm:$0xff] %v477_v3  ;;  %v487_v8 = vld [vmem:[%s4755_s15 + $0x80] sm:$0xff]  ;;  %v489_v9 = vld [vmem:[%s4755_s15 + $0x90] sm:$0xff] }
  0x24   : > { %480 = vst [vmem:[%s410_s3 + $0x20] sm:$0xff] %v479_v4  ;;  %v491_v10 = vld [vmem:[%s4755_s15 + $0xa0] sm:$0xff]  ;;  %v493_v11 = vld [vmem:[%s4755_s15 + $0xb0] sm:$0xff] }
  0x25   : > { %482 = vst [vmem:[%s410_s3 + $0x28] sm:$0xff] %v481_v5  ;;  %v495_v12 = vld [vmem:[%s4755_s15 + $0xc0] sm:$0xff]  ;;  %v497_v13 = vld [vmem:[%s4755_s15 + $0xd0] sm:$0xff] }
  0x26   : > { %484 = vst [vmem:[%s410_s3 + $0x30] sm:$0xff] %v483_v6  ;;  %v499_v14 = vld [vmem:[%s4755_s15 + $0xe0] sm:$0xff]  ;;  %v501_v15 = vld [vmem:[%s4755_s15 + $0xf0] sm:$0xff] }
  0x27   : > { %486 = vst [vmem:[%s410_s3 + $0x38] sm:$0xff] %v485_v7 }
  0x28   : > { %488 = vst [vmem:[%s410_s3 + $0x40] sm:$0xff] %v487_v8 }
  0x29   : > { %490 = vst [vmem:[%s410_s3 + $0x48] sm:$0xff] %v489_v9 }
  0x2a   : > { %492 = vst [vmem:[%s410_s3 + $0x50] sm:$0xff] %v491_v10 }
  0x2b   : > { %494 = vst [vmem:[%s410_s3 + $0x58] sm:$0xff] %v493_v11 }
  0x2c   : > { %496 = vst [vmem:[%s410_s3 + $0x60] sm:$0xff] %v495_v12 }
  0x2d   : > { %498 = vst [vmem:[%s410_s3 + $0x68] sm:$0xff] %v497_v13 }
  0x2e   : > { %500 = vst [vmem:[%s410_s3 + $0x70] sm:$0xff] %v499_v14 }
  0x2f   : > { %502 = vst [vmem:[%s410_s3 + $0x78] sm:$0xff] %v501_v15 }
  0x30 PF: > { %518 = sbr.rel (%p4733_p7) target bundleno = 3271 (0xcc7), region = 106 }
  0x35   : > { %s521_s11 = sand.u32 1, %s4609_s25  }
  0x36   : > { %s4053_s13 = sshll.u32 %s521_s11, 7 }
  0x37   : > { %s4776_s27 = scalar_lea.vmem [#allocation3], %s4053_s13 }
  0x38   : > { %4600 = dma.done.wait (%p4222_p6), [#allocation5], 6144  }
  0x39   : > { %4602 = vsyncadd (%p4222_p6), [#allocation5], 4294961152 }
  0x3a   : > { %4604 = dma.done.wait (%p4222_p6), [#allocation7], 4096  }
  0x3b   : > { %4606 = vsyncadd (%p4222_p6), [#allocation7], 4294963200  ;;  %v4789_v16 = vld [vmem:[%s6449_s2] sm:$0xff]  ;;  %v4795_v17 = vld [vmem:[%s6449_s2 + $0x8] sm:$0xf]  ;;  %vm608_vm0 = vcmask 1043456  }
  0x3c   : > { %598 = vst [vmem:[#allocation1] ss:$2 sm:$0xff] %v4789_v16  ;;  %v595_v18 = vld [vmem:[%s4776_s27] sm:$0xff]  ;;  %vm604_vm1 = vcmask 31744   ;;  %v4064_v22 = vld [vmem:[%s4776_s27 + $0x8] sm:$0xff]  ;;  %v4071_v26 = vld [vmem:[%s4776_s27 + $0x10] sm:$0xff] }
  0x3d   : > { %600 = vst [vmem:[#allocation1 + $0x10] ss:$2 sm:$0xff] %v4795_v17  ;;  %v4078_v30 = vld [vmem:[%s4776_s27 + $0x18] sm:$0xff]  ;;  %v4085_v34 = vld [vmem:[%s4776_s27 + $0x20] sm:$0xff]  ;;  %v4092_v38 = vld [vmem:[%s4776_s27 + $0x28] sm:$0xff]  ;;  %p577_p11 = scmp.lt.s32.totalorder %s4712_s28, 1 }
  0x3e   : > { %v4099_v42 = vld [vmem:[%s4776_s27 + $0x30] sm:$0xff]  ;;  %v4106_v46 = vld [vmem:[%s4776_s27 + $0x38] sm:$0xff]  ;;  %v4113_v50 = vld [vmem:[%s4776_s27 + $0x40] sm:$0xff]  ;;  %s6730_s25 = sld [smem:[#allocation68_spill]] }
  0x3f   : > { %v4120_v54 = vld [vmem:[%s4776_s27 + $0x48] sm:$0xff]  ;;  %v4127_v58 = vld [vmem:[%s4776_s27 + $0x50] sm:$0xff]  ;;  %v4134_v62 = vld [vmem:[%s4776_s27 + $0x58] sm:$0xff]  ;;  %s6736_s28 = smov (!%p577_p11, %s4712_s28), 1 }
  0x40   : > { %v4141_v2 = vld [vmem:[%s4776_s27 + $0x60] sm:$0xff]  ;;  %v4148_v6 = vld [vmem:[%s4776_s27 + $0x68] sm:$0xff]  ;;  %v4155_v11 = vld [vmem:[%s4776_s27 + $0x70] sm:$0xff]  ;;  %s4056_s30 = sshll.u32 %s6736_s28, 3 }
  0x41   : > { %v4924_v10 = vld [vmem:[#allocation4 + $0x168] sm:$0xff]  ;;  %v4932_v15 = vld [vmem:[#allocation4 + $0x150] sm:$0xff]  ;;  %s580_s19 = scalar_lea.vmem %s6448_s1, %s4056_s30 }
  0x43   : > { %v601_v19 = vld.sshfl [vmem:[#allocation1] sm:$0xff pattern:$0x75316420]  ;;  %v602_v20 = vld.sshfl [vmem:[#allocation1 + $0x8] sm:$0xff pattern:$0x75316420] }
  0x44   : > { %4058 = vmatpush.msk.msra.mxu0 %vm608_vm0, %v601_v19  ;;  %680 = vst [vmem:[#allocation1] ss:$2 sm:$0xff] %v4789_v16  ;;  %4060 = vmatpush.msk.msra.mxu1 %vm608_vm0, %v602_v20  ;;  %v603_v21 = vld.sshfl [vmem:[#allocation1 + $0x10] sm:$0xff pattern:$0x75316420]  ;;  %v4946_v19 = vld [vmem:[#allocation4 + $0x170] sm:$0xff]  ;;  %s584_s17 = scalar_lea.vmem %s6730_s25, %s4056_s30 }
  0x45   : > { %4059 = vmatmul.msk.f32.vlgmr.msra.gmra.mxu0 %vm604_vm1, %v595_v18  ;;  %4061 = vmatmul.msk.f32.vlgmr.msra.gmra.mxu1 %vm604_vm1, %v595_v18  ;;  %682 = vst [vmem:[#allocation1 + $0x10] ss:$2 sm:$0xff] %v4795_v17  ;;  %v4948_v20 = vld [vmem:[#allocation4 + $0x178] sm:$0xff] }
  0x46   : > { %4062 = vmatpush.msk.msra.mxu2 %vm608_vm0, %v603_v21 }
  0x47   : > { %4063 = vmatmul.msk.f32.vlgmr.msra.gmra.mxu2 %vm604_vm1, %v595_v18  ;;  %v4937_v18 = vld [vmem:[#allocation4 + $0x138] sm:$0xff] }
  0x4b   : > { %v683_v23 = vld.sshfl [vmem:[#allocation1] sm:$0xff pattern:$0x75316420]  ;;  %v684_v24 = vld.sshfl [vmem:[#allocation1 + $0x8] sm:$0xff pattern:$0x75316420] }
  0x4c   : > { %4067 = vmatpush.msk.msrb.mxu0 %vm608_vm0, %v684_v24  ;;  %761 = vst [vmem:[#allocation1] ss:$2 sm:$0xff] %v4789_v16  ;;  %v685_v25 = vld.sshfl [vmem:[#allocation1 + $0x10] sm:$0xff pattern:$0x75316420]  ;;  %4065 = vmatpush.msk.msra.mxu3 %vm608_vm0, %v683_v23  ;;  %v4952_v23 = vld [vmem:[#allocation4 + $0x158] sm:$0xff] }
  0x4d   : > { %4068 = vmatmul.msk.f32.vlgmr.msrb.gmra.mxu0 %vm604_vm1, %v4064_v22  ;;  %763 = vst [vmem:[#allocation1 + $0x10] ss:$2 sm:$0xff] %v4795_v17  ;;  %4069 = vmatpush.msk.msrb.mxu1 %vm608_vm0, %v685_v25  ;;  %v4955_v24 = vld [vmem:[#allocation4 + $0xf0] sm:$0xff]  ;;  %v4958_v25 = vld [vmem:[#allocation4 + $0x160] sm:$0xff] }
  0x4e   : > { %4070 = vmatmul.msk.f32.vlgmr.msrb.gmra.mxu1 %vm604_vm1, %v4064_v22  ;;  %4066 = vmatmul.msk.f32.vlgmr.msra.gmra.mxu3 %vm604_vm1, %v4064_v22 }
  0x53   : > { %v764_v27 = vld.sshfl [vmem:[#allocation1] sm:$0xff pattern:$0x75316420]  ;;  %v765_v28 = vld.sshfl [vmem:[#allocation1 + $0x8] sm:$0xff pattern:$0x75316420] }
  0x54   : > { %v766_v29 = vld.sshfl [vmem:[#allocation1 + $0x10] sm:$0xff pattern:$0x75316420]  ;;  %842 = vst [vmem:[#allocation1] ss:$2 sm:$0xff] %v4789_v16  ;;  %4072 = vmatpush.msk.msrb.mxu2 %vm608_vm0, %v764_v27  ;;  %4074 = vmatpush.msk.msrb.mxu3 %vm608_vm0, %v765_v28  ;;  %v4965_v27 = vld [vmem:[%s4776_s27 + $0x78] sm:$0xff] }
  0x55   : > { %4076 = vmatpush.msk.msra.mxu0 %vm608_vm0, %v766_v29  ;;  %844 = vst [vmem:[#allocation1 + $0x10] ss:$2 sm:$0xff] %v4795_v17  ;;  %4073 = vmatmul.msk.f32.vlgmr.msrb.gmra.mxu2 %vm604_vm1, %v4071_v26  ;;  %v4968_v28 = vld [vmem:[#allocation4 + $0xd8] sm:$0xff]  ;;  %v4970_v29 = vld [vmem:[#allocation4 + $0x148] sm:$0xff] }
  0x56   : > { %4077 = vmatmul.msk.f32.vlgmr.msra.gmra.mxu0 %vm604_vm1, %v4071_v26  ;;  %4075 = vmatmul.msk.f32.vlgmr.msrb.gmra.mxu3 %vm604_vm1, %v4071_v26  ;;  %v4961_v26 = vld [vmem:[#allocation4 + $0x140] sm:$0xff] }
  0x5b   : > { %v845_v31 = vld.sshfl [vmem:[#allocation1] sm:$0xff pattern:$0x75316420]  ;;  %v846_v32 = vld.sshfl [vmem:[#allocation1 + $0x8] sm:$0xff pattern:$0x75316420] }
  0x5c   : > { %923 = vst [vmem:[#allocation1] ss:$2 sm:$0xff] %v4789_v16  ;;  %4079 = vmatpush.msk.msra.mxu1 %vm608_vm0, %v845_v31  ;;  %4081 = vmatpush.msk.msra.mxu2 %vm608_vm0, %v846_v32  ;;  %v847_v33 = vld.sshfl [vmem:[#allocation1 + $0x10] sm:$0xff pattern:$0x75316420]  ;;  %v4979_v31 = vld [vmem:[#allocation4 + $0xc0] sm:$0xff] }
  0x5d   : > { %4080 = vmatmul.msk.f32.vlgmr.msra.gmra.mxu1 %vm604_vm1, %v4078_v30  ;;  %925 = vst [vmem:[#allocation1 + $0x10] ss:$2 sm:$0xff] %v4795_v17  ;;  %4082 = vmatmul.msk.f32.vlgmr.msra.gmra.mxu2 %vm604_vm1, %v4078_v30  ;;  %v4981_v32 = vld [vmem:[#allocation4 + $0x130] sm:$0xff] }
  0x5e   : > { %4083 = vmatpush.msk.msra.mxu3 %vm608_vm0, %v847_v33  ;;  %v4984_v33 = vld [vmem:[#allocation4 + $0x110] sm:$0xff] }
  0x5f   : > { %4084 = vmatmul.msk.f32.vlgmr.msra.gmra.mxu3 %vm604_vm1, %v4078_v30  ;;  %v4975_v30 = vld [vmem:[#allocation4 + $0x128] sm:$0xff] }
  0x63   : > { %v926_v35 = vld.sshfl [vmem:[#allocation1] sm:$0xff pattern:$0x75316420]  ;;  %v927_v36 = vld.sshfl [vmem:[#allocation1 + $0x8] sm:$0xff pattern:$0x75316420] }
  0x64   : > { %4086 = vmatpush.msk.msrb.mxu0 %vm608_vm0, %v926_v35  ;;  %1004 = vst [vmem:[#allocation1] ss:$2 sm:$0xff] %v4789_v16  ;;  %4088 = vmatpush.msk.msrb.mxu1 %vm608_vm0, %v927_v36  ;;  %v928_v37 = vld.sshfl [vmem:[#allocation1 + $0x10] sm:$0xff pattern:$0x75316420]  ;;  %v4990_v35 = vld [vmem:[#allocation4 + $0x118] sm:$0xff] }
  0x65   : > { %4087 = vmatmul.msk.f32.vlgmr.msrb.gmra.mxu0 %vm604_vm1, %v4085_v34  ;;  %4089 = vmatmul.msk.f32.vlgmr.msrb.gmra.mxu1 %vm604_vm1, %v4085_v34  ;;  %1006 = vst [vmem:[#allocation1 + $0x10] ss:$2 sm:$0xff] %v4795_v17  ;;  %v4993_v36 = vld [vmem:[#allocation4 + $0xf8] sm:$0xff] }
  0x66   : > { %4090 = vmatpush.msk.msrb.mxu2 %vm608_vm0, %v928_v37  ;;  %v4997_v37 = vld [vmem:[#allocation4 + $0x90] sm:$0xff] }
  0x67   : > { %4091 = vmatmul.msk.f32.vlgmr.msrb.gmra.mxu2 %vm604_vm1, %v4085_v34  ;;  %v4988_v34 = vld [vmem:[#allocation4 + $0xa8] sm:$0xff] }
  0x6b   : > { %v1007_v39 = vld.sshfl [vmem:[#allocation1] sm:$0xff pattern:$0x75316420]  ;;  %v1008_v40 = vld.sshfl [vmem:[#allocation1 + $0x8] sm:$0xff pattern:$0x75316420] }
  0x6c   : > { %4095 = vmatpush.msk.msra.mxu0 %vm608_vm0, %v1008_v40  ;;  %1085 = vst [vmem:[#allocation1] ss:$2 sm:$0xff] %v4789_v16  ;;  %v1009_v41 = vld.sshfl [vmem:[#allocation1 + $0x10] sm:$0xff pattern:$0x75316420]  ;;  %4093 = vmatpush.msk.msrb.mxu3 %vm608_vm0, %v1007_v39  ;;  %v5003_v39 = vld [vmem:[#allocation4 + $0x100] sm:$0xff] }
  0x6d   : > { %4096 = vmatmul.msk.f32.vlgmr.msra.gmra.mxu0 %vm604_vm1, %v4092_v38  ;;  %1087 = vst [vmem:[#allocation1 + $0x10] ss:$2 sm:$0xff] %v4795_v17  ;;  %4097 = vmatpush.msk.msra.mxu1 %vm608_vm0, %v1009_v41  ;;  %v5006_v40 = vld [vmem:[#allocation4 + $0x78] sm:$0xff]  ;;  %v5009_v41 = vld [vmem:[#allocation4 + $0xc8] sm:$0xff] }
  0x6e   : > { %4098 = vmatmul.msk.f32.vlgmr.msra.gmra.mxu1 %vm604_vm1, %v4092_v38  ;;  %4094 = vmatmul.msk.f32.vlgmr.msrb.gmra.mxu3 %vm604_vm1, %v4092_v38  ;;  %v5000_v38 = vld [vmem:[#allocation4 + $0xe0] sm:$0xff] }
  0x73   : > { %v1088_v43 = vld.sshfl [vmem:[#allocation1] sm:$0xff pattern:$0x75316420]  ;;  %v1089_v44 = vld.sshfl [vmem:[#allocation1 + $0x8] sm:$0xff pattern:$0x75316420] }
  0x74   : > { %1166 = vst [vmem:[#allocation1] ss:$2 sm:$0xff] %v4789_v16  ;;  %v1090_v45 = vld.sshfl [vmem:[#allocation1 + $0x10] sm:$0xff pattern:$0x75316420]  ;;  %4100 = vmatpush.msk.msra.mxu2 %vm608_vm0, %v1088_v43  ;;  %4102 = vmatpush.msk.msra.mxu3 %vm608_vm0, %v1089_v44  ;;  %v5016_v43 = vld [vmem:[#allocation4 + $0x60] sm:$0xff] }
  0x75   : > { %4104 = vmatpush.msk.msrb.mxu0 %vm608_vm0, %v1090_v45  ;;  %1168 = vst [vmem:[#allocation1 + $0x10] ss:$2 sm:$0xff] %v4795_v17  ;;  %4101 = vmatmul.msk.f32.vlgmr.msra.gmra.mxu2 %vm604_vm1, %v4099_v42  ;;  %v5020_v44 = vld [vmem:[#allocation4 + $0xb0] sm:$0xff] }
  0x76   : > { %4105 = vmatmul.msk.f32.vlgmr.msrb.gmra.mxu0 %vm604_vm1, %v4099_v42  ;;  %4103 = vmatmul.msk.f32.vlgmr.msra.gmra.mxu3 %vm604_vm1, %v4099_v42  ;;  %v5013_v42 = vld [vmem:[#allocation4 + $0xe8] sm:$0xff]  ;;  %v5022_v45 = vld [vmem:[#allocation4 + $0xd0] sm:$0xff] }
  0x7b   : > { %v1169_v47 = vld.sshfl [vmem:[#allocation1] sm:$0xff pattern:$0x75316420]  ;;  %v1170_v48 = vld.sshfl [vmem:[#allocation1 + $0x8] sm:$0xff pattern:$0x75316420] }
  0x7c   : > { %1247 = vst [vmem:[#allocation1] ss:$2 sm:$0xff] %v4789_v16  ;;  %v1171_v49 = vld.sshfl [vmem:[#allocation1 + $0x10] sm:$0xff pattern:$0x75316420]  ;;  %4107 = vmatpush.msk.msrb.mxu1 %vm608_vm0, %v1169_v47  ;;  %4109 = vmatpush.msk.msrb.mxu2 %vm608_vm0, %v1170_v48  ;;  %v5029_v47 = vld [vmem:[#allocation4 + $0x98] sm:$0xff] }
  0x7d   : > { %1249 = vst [vmem:[#allocation1 + $0x10] ss:$2 sm:$0xff] %v4795_v17  ;;  %4108 = vmatmul.msk.f32.vlgmr.msrb.gmra.mxu1 %vm604_vm1, %v4106_v46  ;;  %4110 = vmatmul.msk.f32.vlgmr.msrb.gmra.mxu2 %vm604_vm1, %v4106_v46  ;;  %v5031_v48 = vld [vmem:[#allocation4 + $0xb8] sm:$0xff] }
  0x7e   : > { %4111 = vmatpush.msk.msrb.mxu3 %vm608_vm0, %v1171_v49  ;;  %v5034_v49 = vld [vmem:[#allocation4 + $0x30] sm:$0xff] }
  0x7f   : > { %4112 = vmatmul.msk.f32.vlgmr.msrb.gmra.mxu3 %vm604_vm1, %v4106_v46  ;;  %v5025_v46 = vld [vmem:[#allocation4 + $0x48] sm:$0xff]  ;;  %6528 = vst [vmem:[#allocation12_spill] sm:$0xff] %v5034_v49 }
  0x83   : > { %v1250_v51 = vld.sshfl [vmem:[#allocation1] sm:$0xff pattern:$0x75316420]  ;;  %v1251_v52 = vld.sshfl [vmem:[#allocation1 + $0x8] sm:$0xff pattern:$0x75316420] }
  0x84   : > { %v1252_v53 = vld.sshfl [vmem:[#allocation1 + $0x10] sm:$0xff pattern:$0x75316420]  ;;  %4114 = vmatpush.msk.msra.mxu0 %vm608_vm0, %v1250_v51  ;;  %1328 = vst [vmem:[#allocation1] ss:$2 sm:$0xff] %v4789_v16  ;;  %4116 = vmatpush.msk.msra.mxu1 %vm608_vm0, %v1251_v52  ;;  %v5040_v51 = vld [vmem:[#allocation4 + $0xa0] sm:$0xff] }
  0x85   : > { %1330 = vst [vmem:[#allocation1 + $0x10] ss:$2 sm:$0xff] %v4795_v17  ;;  %4115 = vmatmul.msk.f32.vlgmr.msra.gmra.mxu0 %vm604_vm1, %v4113_v50  ;;  %4117 = vmatmul.msk.f32.vlgmr.msra.gmra.mxu1 %vm604_vm1, %v4113_v50  ;;  %v5043_v52 = vld [vmem:[#allocation4 + $0x18] sm:$0xff] }
  0x86   : > { %4118 = vmatpush.msk.msra.mxu2 %vm608_vm0, %v1252_v53  ;;  %6529 = vst [vmem:[#allocation13_spill] sm:$0xff] %v5043_v52  ;;  %v5047_v53 = vld [vmem:[#allocation4 + $0x68] sm:$0xff] }
  0x87   : > { %4119 = vmatmul.msk.f32.vlgmr.msra.gmra.mxu2 %vm604_vm1, %v4113_v50  ;;  %v5038_v50 = vld [vmem:[#allocation4 + $0x80] sm:$0xff] }
  0x8b   : > { %v1331_v55 = vld.sshfl [vmem:[#allocation1] sm:$0xff pattern:$0x75316420]  ;;  %v1332_v56 = vld.sshfl [vmem:[#allocation1 + $0x8] sm:$0xff pattern:$0x75316420] }
  0x8c   : > { %4123 = vmatpush.msk.msrb.mxu0 %vm608_vm0, %v1332_v56  ;;  %1409 = vst [vmem:[#allocation1] ss:$2 sm:$0xff] %v4789_v16  ;;  %v1333_v57 = vld.sshfl [vmem:[#allocation1 + $0x10] sm:$0xff pattern:$0x75316420]  ;;  %4121 = vmatpush.msk.msra.mxu3 %vm608_vm0, %v1331_v55  ;;  %v5052_v55 = vld [vmem:[#allocation4] sm:$0xff] }
  0x8d   : > { %4124 = vmatmul.msk.f32.vlgmr.msrb.gmra.mxu0 %vm604_vm1, %v4120_v54  ;;  %1411 = vst [vmem:[#allocation1 + $0x10] ss:$2 sm:$0xff] %v4795_v17  ;;  %4125 = vmatpush.msk.msrb.mxu1 %vm608_vm0, %v1333_v57  ;;  %v5056_v56 = vld [vmem:[#allocation4 + $0x50] sm:$0xff] }
  0x8e   : > { %4126 = vmatmul.msk.f32.vlgmr.msrb.gmra.mxu1 %vm604_vm1, %v4120_v54  ;;  %4122 = vmatmul.msk.f32.vlgmr.msra.gmra.mxu3 %vm604_vm1, %v4120_v54  ;;  %v5049_v54 = vld [vmem:[#allocation4 + $0x88] sm:$0xff]  ;;  %6530 = vst [vmem:[#allocation14_spill] sm:$0xff] %v5052_v55  ;;  %v5060_v57 = vld [vmem:[#allocation4 + $0x70] sm:$0xff] }
  0x93   : > { %v1412_v59 = vld.sshfl [vmem:[#allocation1] sm:$0xff pattern:$0x75316420]  ;;  %v1413_v60 = vld.sshfl [vmem:[#allocation1 + $0x8] sm:$0xff pattern:$0x75316420] }
  0x94   : > { %1490 = vst [vmem:[#allocation1] ss:$2 sm:$0xff] %v4789_v16  ;;  %v1414_v61 = vld.sshfl [vmem:[#allocation1 + $0x10] sm:$0xff pattern:$0x75316420]  ;;  %4128 = vmatpush.msk.msrb.mxu2 %vm608_vm0, %v1412_v59  ;;  %4130 = vmatpush.msk.msrb.mxu3 %vm608_vm0, %v1413_v60  ;;  %v4625_v59 = vmov 0.0  }
  0x95   : > { %4132 = vmatpush.msk.msra.mxu0 %vm608_vm0, %v1414_v61  ;;  %1492 = vst [vmem:[#allocation1 + $0x10] ss:$2 sm:$0xff] %v4795_v17  ;;  %4129 = vmatmul.msk.f32.vlgmr.msrb.gmra.mxu2 %vm604_vm1, %v4127_v58  ;;  %v5066_v60 = vld [vmem:[#allocation4 + $0x58] sm:$0xff]  ;;  %v5068_v61 = vld [vmem:[#allocation4 + $0x20] sm:$0xff] }
  0x96   : > { %4133 = vmatmul.msk.f32.vlgmr.msra.gmra.mxu0 %vm604_vm1, %v4127_v58  ;;  %4131 = vmatmul.msk.f32.vlgmr.msrb.gmra.mxu3 %vm604_vm1, %v4127_v58  ;;  %v5063_v58 = vld [vmem:[#allocation4 + $0x38] sm:$0xff]  ;;  %6532 = vst [vmem:[#allocation16_spill] sm:$0xff] %v5068_v61 }
  0x97   : > { %6531 = vst [vmem:[#allocation15_spill] sm:$0xff] %v5063_v58 }
  0x9b   : > { %v1493_v63 = vld.sshfl [vmem:[#allocation1] sm:$0xff pattern:$0x75316420]  ;;  %v1494_v0 = vld.sshfl [vmem:[#allocation1 + $0x8] sm:$0xff pattern:$0x75316420] }
  0x9c   : > { %1571 = vst [vmem:[#allocation1] ss:$2 sm:$0xff] %v4789_v16  ;;  %v1495_v1 = vld.sshfl [vmem:[#allocation1 + $0x10] sm:$0xff pattern:$0x75316420]  ;;  %4135 = vmatpush.msk.msra.mxu1 %vm608_vm0, %v1493_v63  ;;  %4137 = vmatpush.msk.msra.mxu2 %vm608_vm0, %v1494_v0 }
  0x9d   : > { %1573 = vst [vmem:[#allocation1 + $0x10] ss:$2 sm:$0xff] %v4795_v17  ;;  %4136 = vmatmul.msk.f32.vlgmr.msra.gmra.mxu1 %vm604_vm1, %v4134_v62  ;;  %4138 = vmatmul.msk.f32.vlgmr.msra.gmra.mxu2 %vm604_vm1, %v4134_v62  ;;  %v5075_v63 = vld [vmem:[#allocation4 + $0x8] sm:$0xff] }
  0x9e   : > { %4139 = vmatpush.msk.msra.mxu3 %vm608_vm0, %v1495_v1  ;;  %6533 = vst [vmem:[#allocation17_spill] sm:$0xff] %v5075_v63  ;;  %v5080_v0 = vld [vmem:[#allocation4 + $0x28] sm:$0xff]  ;;  %v5085_v1 = vld [vmem:[#allocation4 + $0x10] sm:$0xff] }
  0x9f   : > { %4140 = vmatmul.msk.f32.vlgmr.msra.gmra.mxu3 %vm604_vm1, %v4134_v62  ;;  %v5073_v62 = vld [vmem:[#allocation4 + $0x40] sm:$0xff]  ;;  %6534 = vst [vmem:[#allocation18_spill] sm:$0xff] %v5080_v0 }
  0xa0   : > { %6535 = vst [vmem:[#allocation19_spill] sm:$0xff] %v5085_v1 }
  0xa3   : > { %v1575_v3 = vld.sshfl [vmem:[#allocation1 + $0x8] sm:$0xff pattern:$0x75316420]  ;;  %v1574_v4 = vld.sshfl [vmem:[#allocation1] sm:$0xff pattern:$0x75316420] }
  0xa4   : > { %v1576_v5 = vld.sshfl [vmem:[#allocation1 + $0x10] sm:$0xff pattern:$0x75316420]  ;;  %4142 = vmatpush.msk.msrb.mxu0 %vm608_vm0, %v1574_v4  ;;  %1652 = vst [vmem:[#allocation1] ss:$2 sm:$0xff] %v4789_v16  ;;  %4144 = vmatpush.msk.msrb.mxu1 %vm608_vm0, %v1575_v3 }
  0xa5   : > { %1654 = vst [vmem:[#allocation1 + $0x10] ss:$2 sm:$0xff] %v4795_v17  ;;  %4143 = vmatmul.msk.f32.vlgmr.msrb.gmra.mxu0 %vm604_vm1, %v4141_v2  ;;  %4145 = vmatmul.msk.f32.vlgmr.msrb.gmra.mxu1 %vm604_vm1, %v4141_v2 }
  0xa6   : > { %4146 = vmatpush.msk.msrb.mxu2 %vm608_vm0, %v1576_v5 }
  0xa7   : > { %4147 = vmatmul.msk.f32.vlgmr.msrb.gmra.mxu2 %vm604_vm1, %v4141_v2 }
  0xab   : > { %v1655_v7 = vld.sshfl [vmem:[#allocation1] sm:$0xff pattern:$0x75316420]  ;;  %v1656_v8 = vld.sshfl [vmem:[#allocation1 + $0x8] sm:$0xff pattern:$0x75316420] }
  0xac   : > { %v1657_v9 = vld.sshfl [vmem:[#allocation1 + $0x10] sm:$0xff pattern:$0x75316420]  ;;  %4151 = vmatpush.msk.msra.mxu0 %vm608_vm0, %v1656_v8  ;;  %1733 = vst [vmem:[#allocation1] ss:$2 sm:$0xff] %v4789_v16  ;;  %4149 = vmatpush.msk.msrb.mxu3 %vm608_vm0, %v1655_v7 }
  0xad   : > { %1735 = vst [vmem:[#allocation1 + $0x10] ss:$2 sm:$0xff] %v4795_v17  ;;  %4152 = vmatmul.msk.f32.vlgmr.msra.gmra.mxu0 %vm604_vm1, %v4148_v6  ;;  %4153 = vmatpush.msk.msra.mxu1 %vm608_vm0, %v1657_v9 }
  0xae   : > { %4154 = vmatmul.msk.f32.vlgmr.msra.gmra.mxu1 %vm604_vm1, %v4148_v6  ;;  %4150 = vmatmul.msk.f32.vlgmr.msrb.gmra.mxu3 %vm604_vm1, %v4148_v6 }
  0xb3   : > { %v1736_v12 = vld.sshfl [vmem:[#allocation1] sm:$0xff pattern:$0x75316420]  ;;  %v1737_v13 = vld.sshfl [vmem:[#allocation1 + $0x8] sm:$0xff pattern:$0x75316420] }
  0xb4   : > { %v1738_v14 = vld.sshfl [vmem:[#allocation1 + $0x10] sm:$0xff pattern:$0x75316420]  ;;  %1814 = vst [vmem:[#allocation1] ss:$2 sm:$0xff] %v4789_v16  ;;  %4156 = vmatpush.msk.msra.mxu2 %vm608_vm0, %v1736_v12  ;;  %4158 = vmatpush.msk.msra.mxu3 %vm608_vm0, %v1737_v13  ;;  %v4941_v16 = vld [vmem:[#allocation4 + $0x120] sm:$0xff] }
  0xb5   : > { %4160 = vmatpush.msk.msrb.mxu0 %vm608_vm0, %v1738_v14  ;;  %1816 = vst [vmem:[#allocation1 + $0x10] ss:$2 sm:$0xff] %v4795_v17  ;;  %4157 = vmatmul.msk.f32.vlgmr.msra.gmra.mxu2 %vm604_vm1, %v4155_v11  ;;  %v4944_v17 = vld [vmem:[#allocation4 + $0x108] sm:$0xff] }
  0xb6   : > { %4159 = vmatmul.msk.f32.vlgmr.msra.gmra.mxu3 %vm604_vm1, %v4155_v11  ;;  %4161 = vmatmul.msk.f32.vlgmr.msrb.gmra.mxu0 %vm604_vm1, %v4155_v11 }
  0xb7   : > { %1948 = vmatpush.msra.mxu0 %v4924_v10 }
  0xb9   : > { %1949 = vmatpush.msra.mxu0 %v4932_v15 }
  0xbb   : > { %1950 = vmatpush.msra.mxu0 %v4937_v18  ;;  %v1817_v21 = vld.sshfl [vmem:[#allocation1] sm:$0xff pattern:$0x75316420]  ;;  %v1818_v22 = vld.sshfl [vmem:[#allocation1 + $0x8] sm:$0xff pattern:$0x75316420] }
  0xbc   : > { %4163 = vmatpush.msk.msrb.mxu1 %vm608_vm0, %v1817_v21  ;;  %4165 = vmatpush.msk.msrb.mxu2 %vm608_vm0, %v1818_v22 }
  0xbd   : > { %1951 = vmatpush.msra.mxu0 %v4941_v16  ;;  %4166 = vmatmul.msk.f32.vlgmr.msrb.gmra.mxu2 %vm604_vm1, %v4965_v27 }
  0xbe   : > { %1968 = vmatpush.msra.mxu1 %v4946_v19  ;;  %1988 = vmatpush.msra.mxu2 %v4948_v20 }
  0xbf   : > { %1952 = vmatpush.msra.mxu0 %v4944_v17  ;;  %4164 = vmatmul.msk.f32.vlgmr.msrb.gmra.mxu1 %vm604_vm1, %v4965_v27 }
  0xc0   : > { %1969 = vmatpush.msra.mxu1 %v4952_v23  ;;  %1989 = vmatpush.msra.mxu2 %v4958_v25 }
  0xc1   : > { %1953 = vmatpush.msra.mxu0 %v4955_v24 }
  0xc2   : > { %1970 = vmatpush.msra.mxu1 %v4961_v26  ;;  %1990 = vmatpush.msra.mxu2 %v4970_v29  ;;  %v5087_v2 = vpop.f32.mrf.mxu0  ;;  %v5099_v3 = vpop.f32.mrf.mxu1 }
  0xc3   : > { %1954 = vmatpush.msra.mxu0 %v4968_v28 }
  0xc4   : > { %1971 = vmatpush.msra.mxu1 %v4975_v30  ;;  %1991 = vmatpush.msra.mxu2 %v4981_v32 }
  0xc5   : > { %1955 = vmatpush.msra.mxu0 %v4979_v31 }
  0xc6   : > { %1972 = vmatpush.msra.mxu1 %v4984_v33  ;;  %1992 = vmatpush.msra.mxu2 %v4990_v35 }
  0xc7   : > { %1956 = vmatpush.msra.mxu0 %v4988_v34 }
  0xc8   : > { %1973 = vmatpush.msra.mxu1 %v4993_v36  ;;  %1993 = vmatpush.msra.mxu2 %v5003_v39 }
  0xc9   : > { %1957 = vmatpush.msra.mxu0 %v4997_v37 }
  0xca   : > { %1974 = vmatpush.msra.mxu1 %v5000_v38  ;;  %1994 = vmatpush.msra.mxu2 %v5013_v42  ;;  %v5105_v4 = vpop.f32.mrf.mxu0  ;;  %v5132_v7 = vpop.f32.mrf.mxu2 }
  0xcb   : > { %1958 = vmatpush.msra.mxu0 %v5006_v40  ;;  %6536 = vst [vmem:[#allocation20_spill] sm:$0xff] %v5105_v4  ;;  %v5118_v5 = vpop.f32.mrf.mxu1 }
  0xcc   : > { %1975 = vmatpush.msra.mxu1 %v5009_v41  ;;  %1995 = vmatpush.msra.mxu2 %v5022_v45  ;;  %6537 = vst [vmem:[#allocation21_spill] sm:$0xff] %v5118_v5  ;;  %v1819_v5 = vld.sshfl [vmem:[#allocation1 + $0x10] sm:$0xff pattern:$0x75316420] }
  0xcd   : > { %1959 = vmatpush.msra.mxu0 %v5016_v43  ;;  %4167 = vmatpush.msk.msrb.mxu3 %vm608_vm0, %v1819_v5  ;;  %v587_v5 = vld [vmem:[%s6451_s4] sm:$0x7] }
  0xce   : > { %1976 = vmatpush.msra.mxu1 %v5020_v44  ;;  %1996 = vmatpush.msra.mxu2 %v5031_v48 }
  0xcf   : > { %1960 = vmatpush.msra.mxu0 %v5025_v46  ;;  %2059 = vmatpush.msra.mxu3 %v4924_v10 }
  0xd0   : > { %1977 = vmatpush.msra.mxu1 %v5029_v47  ;;  %1997 = vmatpush.msra.mxu2 %v5040_v51 }
  0xd1   : > { %1961 = vmatpush.msra.mxu0 %v5034_v49  ;;  %4168 = vmatmul.msk.f32.vlgmr.msrb.gmra.mxu3 %vm604_vm1, %v4965_v27  ;;  %v5258_v27 = vperm.slane %v587_v5, 0 }
  0xd2   : > { %1978 = vmatpush.msra.mxu1 %v5038_v50  ;;  %1998 = vmatpush.msra.mxu2 %v5049_v54 }
  0xd3   : > { %1962 = vmatpush.msra.mxu0 %v5043_v52  ;;  %v5124_v6 = vpop.f32.mrf.mxu0  ;;  %2060 = vmatpush.msra.mxu3 %v4932_v15  ;;  %6565 = vst [vmem:[#allocation49_spill] sm:$0xff] %v5258_v27 }
  0xd4   : > { %1979 = vmatpush.msra.mxu1 %v5047_v53  ;;  %1999 = vmatpush.msra.mxu2 %v5060_v57  ;;  %6538 = vst [vmem:[#allocation22_spill] sm:$0xff] %v5124_v6 }
  0xd5   : > { %1963 = vmatpush.msra.mxu0 %v5052_v55  ;;  %2061 = vmatpush.msra.mxu3 %v4937_v18 }
  0xd6   : > { %1964 = vmatmul.f32.vlgmr.msra.gmra.mxu0 %v4625_v59  ;;  %1980 = vmatpush.msra.mxu1 %v5056_v56 }
  0xd7   : > { %2079 = vmatpush.msrb.mxu0 %v4946_v19  ;;  %2000 = vmatpush.msra.mxu2 %v5066_v60 }
  0xd8   : > { %1981 = vmatpush.msra.mxu1 %v5063_v58  ;;  %v5154_v11 = vpop.f32.mrf.mxu2  ;;  %2062 = vmatpush.msra.mxu3 %v4941_v16 }
  0xd9   : > { %2080 = vmatpush.msrb.mxu0 %v4952_v23  ;;  %2001 = vmatpush.msra.mxu2 %v5073_v62  ;;  %6541 = vst [vmem:[#allocation25_spill] sm:$0xff] %v5154_v11 }
  0xda   : > { %1982 = vmatpush.msra.mxu1 %v5068_v61  ;;  %v5139_v8 = vpop.f32.mrf.mxu1  ;;  %2063 = vmatpush.msra.mxu3 %v4944_v17 }
  0xdb   : > { %2081 = vmatpush.msrb.mxu0 %v4961_v26  ;;  %2002 = vmatpush.msra.mxu2 %v5080_v0  ;;  %6539 = vst [vmem:[#allocation23_spill] sm:$0xff] %v5139_v8 }
  0xdc   : > { %1983 = vmatpush.msra.mxu1 %v5075_v63  ;;  %2064 = vmatpush.msra.mxu3 %v4955_v24 }
  0xdd   : > { %1984 = vmatmul.f32.vlgmr.msra.gmra.mxu1 %v4625_v59  ;;  %2082 = vmatpush.msrb.mxu0 %v4975_v30 }
  0xde   : > { %2099 = vmatpush.msrb.mxu1 %v4948_v20  ;;  %2003 = vmatpush.msra.mxu2 %v5085_v1 }
  0xdf   : > { %2004 = vmatmul.f32.vlgmr.msra.gmra.mxu2 %v4625_v59  ;;  %2083 = vmatpush.msrb.mxu0 %v4984_v33 }
  0xe0   : > { %2100 = vmatpush.msrb.mxu1 %v4958_v25  ;;  %2170 = vmatpush.msrb.mxu2 %v4924_v10  ;;  %v5176_v14 = vpop.f32.mrf.mxu2 }
  0xe1   : > { %2084 = vmatpush.msrb.mxu0 %v4993_v36  ;;  %6544 = vst [vmem:[#allocation28_spill] sm:$0xff] %v5176_v14  ;;  %2065 = vmatpush.msra.mxu3 %v4968_v28 }
  0xe2   : > { %2101 = vmatpush.msrb.mxu1 %v4970_v29  ;;  %2171 = vmatpush.msrb.mxu2 %v4932_v15  ;;  %v5146_v9 = vpop.f32.mrf.mxu0  ;;  %v5161_v12 = vpop.f32.mrf.mxu1 }
  0xe3   : > { %2085 = vmatpush.msrb.mxu0 %v5000_v38  ;;  %6540 = vst [vmem:[#allocation24_spill] sm:$0xff] %v5146_v9  ;;  %2066 = vmatpush.msra.mxu3 %v4979_v31 }
  0xe4   : > { %2102 = vmatpush.msrb.mxu1 %v4981_v32  ;;  %2172 = vmatpush.msrb.mxu2 %v4937_v18  ;;  %6542 = vst [vmem:[#allocation26_spill] sm:$0xff] %v5161_v12 }
  0xe5   : > { %2086 = vmatpush.msrb.mxu0 %v5009_v41  ;;  %2067 = vmatpush.msra.mxu3 %v4988_v34 }
  0xe6   : > { %2103 = vmatpush.msrb.mxu1 %v4990_v35  ;;  %2173 = vmatpush.msrb.mxu2 %v4941_v16 }
  0xe7   : > { %2087 = vmatpush.msrb.mxu0 %v5020_v44  ;;  %2068 = vmatpush.msra.mxu3 %v4997_v37 }
  0xe8   : > { %2104 = vmatpush.msrb.mxu1 %v5003_v39  ;;  %2174 = vmatpush.msrb.mxu2 %v4944_v17 }
  0xe9   : > { %2088 = vmatpush.msrb.mxu0 %v5029_v47  ;;  %2069 = vmatpush.msra.mxu3 %v5006_v40 }
  0xea   : > { %2105 = vmatpush.msrb.mxu1 %v5013_v42  ;;  %2175 = vmatpush.msrb.mxu2 %v4955_v24  ;;  %v5168_v13 = vpop.f32.mrf.mxu0  ;;  %v5197_v59 = vpop.f32.mrf.mxu2 }
  0xeb   : > { %2089 = vmatpush.msrb.mxu0 %v5038_v50  ;;  %6543 = vst [vmem:[#allocation27_spill] sm:$0xff] %v5168_v13  ;;  %v5182_v21 = vpop.f32.mrf.mxu1  ;;  %2070 = vmatpush.msra.mxu3 %v5016_v43 }
  0xec   : > { %2106 = vmatpush.msrb.mxu1 %v5022_v45  ;;  %2176 = vmatpush.msrb.mxu2 %v4968_v28  ;;  %6545 = vst [vmem:[#allocation29_spill] sm:$0xff] %v5182_v21 }
  0xed   : > { %2090 = vmatpush.msrb.mxu0 %v5047_v53  ;;  %6547 = vst [vmem:[#allocation31_spill] sm:$0xff] %v5197_v59  ;;  %2071 = vmatpush.msra.mxu3 %v5025_v46 }
  0xee   : > { %2107 = vmatpush.msrb.mxu1 %v5031_v48  ;;  %2177 = vmatpush.msrb.mxu2 %v4979_v31 }
  0xef   : > { %2091 = vmatpush.msrb.mxu0 %v5056_v56  ;;  %2072 = vmatpush.msra.mxu3 %v5034_v49 }
  0xf0   : > { %2108 = vmatpush.msrb.mxu1 %v5040_v51  ;;  %2178 = vmatpush.msrb.mxu2 %v4988_v34 }
  0xf1   : > { %2092 = vmatpush.msrb.mxu0 %v5063_v58  ;;  %2073 = vmatpush.msra.mxu3 %v5043_v52 }
  0xf2   : > { %2109 = vmatpush.msrb.mxu1 %v5049_v54  ;;  %2179 = vmatpush.msrb.mxu2 %v4997_v37 }
  0xf3   : > { %2093 = vmatpush.msrb.mxu0 %v5068_v61  ;;  %v5189_v22 = vpop.f32.mrf.mxu0  ;;  %2074 = vmatpush.msra.mxu3 %v5052_v55 }
  0xf4   : > { %2110 = vmatpush.msrb.mxu1 %v5060_v57  ;;  %2180 = vmatpush.msrb.mxu2 %v5006_v40  ;;  %6546 = vst [vmem:[#allocation30_spill] sm:$0xff] %v5189_v22 }
  0xf5   : > { %2094 = vmatpush.msrb.mxu0 %v5075_v63  ;;  %2190 = vmatpush.msrb.mxu3 %v4946_v19 }
  0xf6   : > { %2111 = vmatpush.msrb.mxu1 %v5066_v60  ;;  %2181 = vmatpush.msrb.mxu2 %v5016_v43 }
  0xf7   : > { %2210 = vmatpush.msra.mxu0 %v4948_v20  ;;  %2191 = vmatpush.msrb.mxu3 %v4952_v23 }
  0xf8   : > { %2112 = vmatpush.msrb.mxu1 %v5073_v62  ;;  %2182 = vmatpush.msrb.mxu2 %v5025_v46  ;;  %v5215_v13 = vpop.f32.mrf.mxu2 }
  0xf9   : > { %2211 = vmatpush.msra.mxu0 %v4958_v25  ;;  %6550 = vst [vmem:[#allocation34_spill] sm:$0xff] %v5215_v13  ;;  %2192 = vmatpush.msrb.mxu3 %v4961_v26 }
  0xfa   : > { %2113 = vmatpush.msrb.mxu1 %v5080_v0  ;;  %2183 = vmatpush.msrb.mxu2 %v5034_v49  ;;  %v5203_v22 = vpop.f32.mrf.mxu1 }
  0xfb   : > { %2212 = vmatpush.msra.mxu0 %v4970_v29  ;;  %6548 = vst [vmem:[#allocation32_spill] sm:$0xff] %v5203_v22  ;;  %2193 = vmatpush.msrb.mxu3 %v4975_v30 }
  0xfc   : > { %2114 = vmatpush.msrb.mxu1 %v5085_v1  ;;  %2184 = vmatpush.msrb.mxu2 %v5043_v52 }
  0xfd   : > { %2213 = vmatpush.msra.mxu0 %v4981_v32  ;;  %2194 = vmatpush.msrb.mxu3 %v4984_v33 }
  0xfe   : > { %2281 = vmatpush.msra.mxu1 %v4924_v10  ;;  %2185 = vmatpush.msrb.mxu2 %v5052_v55 }
  0xff   : > { %2214 = vmatpush.msra.mxu0 %v4990_v35  ;;  %2195 = vmatpush.msrb.mxu3 %v4993_v36 }
 0x100   : > { %2282 = vmatpush.msra.mxu1 %v4932_v15  ;;  %2301 = vmatpush.msra.mxu2 %v4946_v19  ;;  %v5222_v12 = vpop.f32.mrf.mxu2 }
 0x101   : > { %2215 = vmatpush.msra.mxu0 %v5003_v39  ;;  %6553 = vst [vmem:[#allocation37_spill] sm:$0xff] %v5222_v12  ;;  %2196 = vmatpush.msrb.mxu3 %v5000_v38 }
 0x102   : > { %2283 = vmatpush.msra.mxu1 %v4937_v18  ;;  %2302 = vmatpush.msra.mxu2 %v4952_v23  ;;  %v5209_v21 = vpop.f32.mrf.mxu0  ;;  %v5218_v22 = vpop.f32.mrf.mxu1 }
 0x103   : > { %2216 = vmatpush.msra.mxu0 %v5013_v42  ;;  %6549 = vst [vmem:[#allocation33_spill] sm:$0xff] %v5209_v21  ;;  %2197 = vmatpush.msrb.mxu3 %v5009_v41 }
 0x104   : > { %2284 = vmatpush.msra.mxu1 %v4941_v16  ;;  %2303 = vmatpush.msra.mxu2 %v4961_v26  ;;  %6551 = vst [vmem:[#allocation35_spill] sm:$0xff] %v5218_v22 }
 0x105   : > { %2217 = vmatpush.msra.mxu0 %v5022_v45  ;;  %2198 = vmatpush.msrb.mxu3 %v5020_v44 }
 0x106   : > { %2285 = vmatpush.msra.mxu1 %v4944_v17  ;;  %2304 = vmatpush.msra.mxu2 %v4975_v30 }
 0x107   : > { %2218 = vmatpush.msra.mxu0 %v5031_v48  ;;  %2199 = vmatpush.msrb.mxu3 %v5029_v47 }
 0x108   : > { %2286 = vmatpush.msra.mxu1 %v4955_v24  ;;  %2305 = vmatpush.msra.mxu2 %v4984_v33 }
 0x109   : > { %2219 = vmatpush.msra.mxu0 %v5040_v51  ;;  %2200 = vmatpush.msrb.mxu3 %v5038_v50 }
 0x10a   : > { %2287 = vmatpush.msra.mxu1 %v4968_v28  ;;  %2306 = vmatpush.msra.mxu2 %v4993_v36  ;;  %v5220_v59 = vpop.f32.mrf.mxu0  ;;  %v5228_v14 = vpop.f32.mrf.mxu2 }
 0x10b   : > { %2220 = vmatpush.msra.mxu0 %v5049_v54  ;;  %6552 = vst [vmem:[#allocation36_spill] sm:$0xff] %v5220_v59  ;;  %v5224_v9 = vpop.f32.mrf.mxu1  ;;  %2201 = vmatpush.msrb.mxu3 %v5047_v53 }
 0x10c   : > { %2288 = vmatpush.msra.mxu1 %v4979_v31  ;;  %2307 = vmatpush.msra.mxu2 %v5000_v38  ;;  %6554 = vst [vmem:[#allocation38_spill] sm:$0xff] %v5224_v9 }
 0x10d   : > { %2221 = vmatpush.msra.mxu0 %v5060_v57  ;;  %6556 = vst [vmem:[#allocation40_spill] sm:$0xff] %v5228_v14  ;;  %2202 = vmatpush.msrb.mxu3 %v5056_v56 }
 0x10e   : > { %2289 = vmatpush.msra.mxu1 %v4988_v34  ;;  %2308 = vmatpush.msra.mxu2 %v5009_v41 }
 0x10f   : > { %2222 = vmatpush.msra.mxu0 %v5066_v60  ;;  %2203 = vmatpush.msrb.mxu3 %v5063_v58 }
 0x110   : > { %2290 = vmatpush.msra.mxu1 %v4997_v37  ;;  %2309 = vmatpush.msra.mxu2 %v5020_v44 }
 0x111   : > { %2223 = vmatpush.msra.mxu0 %v5073_v62  ;;  %2204 = vmatpush.msrb.mxu3 %v5068_v61 }
 0x112   : > { %2291 = vmatpush.msra.mxu1 %v5006_v40  ;;  %2310 = vmatpush.msra.mxu2 %v5029_v47 }
 0x113   : > { %2224 = vmatpush.msra.mxu0 %v5080_v0  ;;  %v5226_v21 = vpop.f32.mrf.mxu0  ;;  %2205 = vmatpush.msrb.mxu3 %v5075_v63 }
 0x114   : > { %2292 = vmatpush.msra.mxu1 %v5016_v43  ;;  %2311 = vmatpush.msra.mxu2 %v5038_v50  ;;  %6555 = vst [vmem:[#allocation39_spill] sm:$0xff] %v5226_v21 }
 0x115   : > { %2225 = vmatpush.msra.mxu0 %v5085_v1 }
 0x116   : > { %2293 = vmatpush.msra.mxu1 %v5025_v46  ;;  %2312 = vmatpush.msra.mxu2 %v5047_v53 }
 0x118   : > { %2294 = vmatpush.msra.mxu1 %v5034_v49  ;;  %2313 = vmatpush.msra.mxu2 %v5056_v56  ;;  %v5234_v11 = vpop.f32.mrf.mxu2 }
 0x119   : > { %6559 = vst [vmem:[#allocation43_spill] sm:$0xff] %v5234_v11  ;;  %v5270_v11 = vperm.slane %v587_v5, 1 }
 0x11a   : > { %2295 = vmatpush.msra.mxu1 %v5043_v52  ;;  %2314 = vmatpush.msra.mxu2 %v5063_v58  ;;  %v5230_v8 = vpop.f32.mrf.mxu1 }
 0x11b   : > { %6557 = vst [vmem:[#allocation41_spill] sm:$0xff] %v5230_v8 }
 0x11c   : > { %2296 = vmatpush.msra.mxu1 %v5052_v55  ;;  %2315 = vmatpush.msra.mxu2 %v5068_v61  ;;  %6568 = vst [vmem:[#allocation52_spill] sm:$0xff] %v5270_v11 }
 0x11e   : > { %2316 = vmatpush.msra.mxu2 %v5075_v63 }
 0x120   : > { %v5245_v21 = vpop.f32.mrf.mxu2 }
 0x121   : > { %6562 = vst [vmem:[#allocation46_spill] sm:$0xff] %v5245_v21 }
 0x122   : > { %v5232_v6 = vpop.f32.mrf.mxu0  ;;  %v5236_v13 = vpop.f32.mrf.mxu1 }
 0x123   : > { %6558 = vst [vmem:[#allocation42_spill] sm:$0xff] %v5232_v6 }
 0x124   : > { %6560 = vst [vmem:[#allocation44_spill] sm:$0xff] %v5236_v13 }
 0x12a   : > { %v5238_v22 = vpop.f32.mrf.mxu0 }
 0x12b   : > { %6561 = vst [vmem:[#allocation45_spill] sm:$0xff] %v5238_v22  ;;  %v5248_v6 = vpop.f32.mrf.mxu1  ;;  %v5261_v22 = vpop.f32.mrf.mxu2 }
 0x12c   : > { %6563 = vst [vmem:[#allocation47_spill] sm:$0xff] %v5248_v6 }
 0x12d   : > { %6566 = vst [vmem:[#allocation50_spill] sm:$0xff] %v5261_v22 }
 0x133   : > { %v5251_v13 = vpop.f32.mrf.mxu0 }
 0x134   : > { %6564 = vst [vmem:[#allocation48_spill] sm:$0xff] %v5251_v13  ;;  %v633_v13 = vadd.f32 %v5087_v2, %v5258_v27 }
 0x138   : > { %v5276_v22 = vpop.f32.mrf.mxu2 }
 0x139   : > { %6569 = vst [vmem:[#allocation53_spill] sm:$0xff] %v5276_v22 }
 0x13c   : > { %v5263_v21 = vpop.f32.mrf.mxu1 }
 0x13d   : > { %6567 = vst [vmem:[#allocation51_spill] sm:$0xff] %v5263_v21  ;;  %v653_v21 = vadd.f32 %v5099_v3, %v5270_v11 }
 0x153   : > { %v1965_v6 = vpop.f32.mrf.mxu0 }
 0x154   : > { %v2008_v8 = vadd.f32 %v1965_v6, %v633_v13 }
 0x156   : > { %v4169_v9 = vmul.f32 -1.442695, %v2008_v8 }
 0x158   : > { %4259 = vpow2.f32 %v4169_v9  ;;  %v5282_v9 = vpop.f32.mrf.mxu2 }
 0x159   : > { %6570 = vst [vmem:[#allocation54_spill] sm:$0xff] %v5282_v9 }
 0x15a   : > { %v1985_v2 = vpop.f32.mrf.mxu1 }
 0x15b   : > { %v2009_v59 = vadd.f32 %v1985_v2, %v653_v21 }
 0x15d   : > { %v4170_v6 = vmul.f32 -1.442695, %v2009_v59 }
 0x15e   : > { %v4260_v13 = vpop.eup %4259 }
 0x15f   : > { %v2016_v8 = vadd.f32 1.0, %v4260_v13  ;;  %4261 = vpow2.f32 %v4170_v6  ;;  %v5292_v6 = vld [vmem:[%s6452_s5] ss:$0 sm:$0xff] }
 0x161   : > { %4263 = vrcp.f32 %v2016_v8  ;;  %v2029_v22 = vand.u32 2147483648, %v2016_v8  ;;  %vm2023_vm3 = vweird.f32 %v2016_v8 }
 0x162   : > { %v2005_v9 = vpop.f32.mrf.mxu2 }
 0x163   : > { %v2048_v4 = vadd.f32 %v5292_v6, %v2005_v9  ;;  %v2030_v55 = vor.u32 1.1754944e-38, %v2029_v22 }
 0x165   : > { %v4262_v3 = vpop.eup %4261 }
 0x166   : > { %v2017_v21 = vadd.f32 1.0, %v4262_v3  ;;  %v2027_v3 = vand.u32 2147483647, %v2016_v8 }
 0x167   : > { %v4264_v2 = vpop.eup %4263 }
 0x168   : > { %4265 = vrcp.f32 %v2017_v21  ;;  %v2019_v59 = vmul.f32 %v4264_v2, %v2016_v8  ;;  %vm2024_vm2 = vweird.f32 %v4264_v2  ;;  %vm2028_vm5 = vcmp.eq.f32.partialorder %v2027_v3, 8.507059e+37  ;;  %v6574_v3 = vld [vmem:[#allocation13_spill] sm:$0xff] }
 0x169   : > { %vm2025_vm4 = vmor %vm2023_vm3, %vm2024_vm2  ;;  %v2044_v8 = vand.u32 2147483648, %v2017_v21  ;;  %v2042_v9 = vand.u32 2147483647, %v2017_v21  ;;  %vm2038_vm7 = vweird.f32 %v2017_v21 }
 0x16a   : > { %v2020_v13 = vsub.f32 1.0, %v2019_v59  ;;  %v5298_v59 = vperm.slane %v587_v5, 2 }
 0x16b   : > { %vm2043_vm9 = vcmp.eq.f32.partialorder %v2042_v9, 8.507059e+37 }
 0x16c   : > { %v2021_v14 = vmul.f32 %v4264_v2, %v2020_v13  ;;  %v673_v0 = vadd.f32 %v5132_v7, %v5298_v59 }
 0x16e   : > { %v4266_v12 = vpop.eup %4265  ;;  %v2022_v27 = vadd.f32 %v4264_v2, %v2021_v14 }
 0x16f   : > { %v2034_v11 = vmul.f32 %v4266_v12, %v2017_v21  ;;  %vm2039_vm6 = vweird.f32 %v4266_v12  ;;  %v6572_v21 = vld [vmem:[#allocation12_spill] sm:$0xff] }
 0x170   : > { %v2026_v1 = vsel %vm2025_vm4, %v4264_v2, %v2022_v27  ;;  %vm2040_vm8 = vmor %vm2038_vm7, %vm2039_vm6  ;;  %v6573_v2 = vld [vmem:[#allocation18_spill] sm:$0xff] }
 0x171   : > { %v2035_v52 = vsub.f32 1.0, %v2034_v11  ;;  %v2031_v13 = vsel %vm2028_vm5, %v2030_v55, %v2026_v1  ;;  %v2045_v55 = vor.u32 1.1754944e-38, %v2044_v8 }
 0x172   : > { %v2049_v14 = vmul.f32 %v2048_v4, %v2031_v13  ;;  %v6575_v13 = vld [vmem:[#allocation19_spill] sm:$0xff] }
 0x173   : > { %v2036_v49 = vmul.f32 %v4266_v12, %v2035_v52 }
 0x174   : > { %v2050_v22 = vadd.f32 %v2049_v14, %v673_v0  ;;  %v6576_v14 = vld [vmem:[#allocation14_spill] sm:$0xff] }
 0x175   : > { %v2037_v5 = vadd.f32 %v4266_v12, %v2036_v49 }
 0x176   : > { %4267 = vtanh.f32 %v2050_v22 }
 0x177   : > { %v2041_v1 = vsel %vm2040_vm8, %v4266_v12, %v2037_v5  ;;  %v712_v12 = vpop.f32.mrf.mxu3 }
 0x178   : > { %v2046_v7 = vsel %vm2043_vm9, %v2045_v55, %v2041_v1 }
 0x179   : > { %v2052_v4 = vsub.f32 1.0, %v2046_v7  ;;  %v2054_v0 = vmul.f32 0.0, %v2046_v7 }
 0x17c   : > { %v4268_v52 = vpop.eup %4267 }
 0x17d   : > { %v2053_v11 = vmul.f32 %v4268_v52, %v2052_v4 }
 0x17f   : > { %v5309_v49 = vadd.f32 %v2054_v0, %v2053_v11  ;;  %v5348_v27 = vpop.f32.mrf.mxu3  ;;  %v6587_v0 = vld [vmem:[#allocation52_spill] sm:$0xff] }
 0x180   : > { %6571 = vst [vmem:[#allocation55_spill] sm:$0xff] %v5348_v27 }
 0x181   : > { %2075 = vmatmul.f32.vlgmr.msra.gmra.mxu3 %v5309_v49  ;;  %2095 = vmatmul.f32.vlgmr.msrb.gmra.mxu0 %v5309_v49 }
 0x182   : > { %2115 = vmatmul.f32.vlgmr.msrb.gmra.mxu1 %v5309_v49  ;;  %2321 = vmatpush.msra.mxu3 %v4948_v20 }
 0x183   : > { %2392 = vmatpush.msrb.mxu0 %v4924_v10  ;;  %2412 = vmatpush.msrb.mxu1 %v4946_v19 }
 0x184   : > { %2322 = vmatpush.msra.mxu3 %v4958_v25 }
 0x185   : > { %2393 = vmatpush.msrb.mxu0 %v4932_v15  ;;  %2413 = vmatpush.msrb.mxu1 %v4952_v23 }
 0x186   : > { %2323 = vmatpush.msra.mxu3 %v4970_v29 }
 0x187   : > { %2394 = vmatpush.msrb.mxu0 %v4937_v18  ;;  %2414 = vmatpush.msrb.mxu1 %v4961_v26  ;;  %v5365_v8 = vpop.f32.mrf.mxu3 }
 0x188   : > { %2324 = vmatpush.msra.mxu3 %v4981_v32  ;;  %6577 = vst [vmem:[#allocation56_spill] sm:$0xff] %v5365_v8  ;;  %v6588_v8 = vld [vmem:[#allocation20_spill] sm:$0xff] }
 0x189   : > { %2395 = vmatpush.msrb.mxu0 %v4941_v16  ;;  %2415 = vmatpush.msrb.mxu1 %v4975_v30  ;;  %v733_v27 = vadd.f32 %v6588_v8, %v6587_v0 }
 0x18a   : > { %2325 = vmatpush.msra.mxu3 %v4990_v35 }
 0x18b   : > { %2396 = vmatpush.msrb.mxu0 %v4944_v17  ;;  %2416 = vmatpush.msrb.mxu1 %v4984_v33 }
 0x18c   : > { %2326 = vmatpush.msra.mxu3 %v5003_v39 }
 0x18d   : > { %2397 = vmatpush.msrb.mxu0 %v4955_v24  ;;  %2417 = vmatpush.msrb.mxu1 %v4993_v36 }
 0x18e   : > { %2327 = vmatpush.msra.mxu3 %v5013_v42 }
 0x18f   : > { %2398 = vmatpush.msrb.mxu0 %v4968_v28  ;;  %2418 = vmatpush.msrb.mxu1 %v5000_v38  ;;  %v5367_v9 = vpop.f32.mrf.mxu3 }
 0x190   : > { %2328 = vmatpush.msra.mxu3 %v5022_v45  ;;  %6578 = vst [vmem:[#allocation57_spill] sm:$0xff] %v5367_v9 }
 0x191   : > { %2399 = vmatpush.msrb.mxu0 %v4979_v31  ;;  %2419 = vmatpush.msrb.mxu1 %v5009_v41 }
 0x192   : > { %2329 = vmatpush.msra.mxu3 %v5031_v48 }
 0x193   : > { %2400 = vmatpush.msrb.mxu0 %v4988_v34  ;;  %2420 = vmatpush.msrb.mxu1 %v5020_v44 }
 0x194   : > { %2330 = vmatpush.msra.mxu3 %v5040_v51 }
 0x195   : > { %2401 = vmatpush.msrb.mxu0 %v4997_v37  ;;  %2421 = vmatpush.msrb.mxu1 %v5029_v47 }
 0x196   : > { %2331 = vmatpush.msra.mxu3 %v5049_v54 }
 0x197   : > { %2402 = vmatpush.msrb.mxu0 %v5006_v40  ;;  %2422 = vmatpush.msrb.mxu1 %v5038_v50  ;;  %v5369_v22 = vpop.f32.mrf.mxu3 }
 0x198   : > { %2332 = vmatpush.msra.mxu3 %v5060_v57  ;;  %6579 = vst [vmem:[#allocation58_spill] sm:$0xff] %v5369_v22 }
 0x199   : > { %2403 = vmatpush.msrb.mxu0 %v5016_v43  ;;  %2423 = vmatpush.msrb.mxu1 %v5047_v53 }
 0x19a   : > { %2333 = vmatpush.msra.mxu3 %v5066_v60 }
 0x19b   : > { %2404 = vmatpush.msrb.mxu0 %v5025_v46  ;;  %2424 = vmatpush.msrb.mxu1 %v5056_v56 }
 0x19c   : > { %2334 = vmatpush.msra.mxu3 %v5073_v62 }
 0x19d   : > { %2405 = vmatpush.msrb.mxu0 %v6572_v21  ;;  %2425 = vmatpush.msrb.mxu1 %v5063_v58 }
 0x19e   : > { %2335 = vmatpush.msra.mxu3 %v6573_v2 }
 0x19f   : > { %2406 = vmatpush.msrb.mxu0 %v6574_v3  ;;  %2426 = vmatpush.msrb.mxu1 %v5068_v61  ;;  %v5371_v5 = vpop.f32.mrf.mxu3 }
 0x1a0   : > { %2336 = vmatpush.msra.mxu3 %v6575_v13  ;;  %6580 = vst [vmem:[#allocation59_spill] sm:$0xff] %v5371_v5 }
 0x1a1   : > { %2407 = vmatpush.msrb.mxu0 %v6576_v14  ;;  %2427 = vmatpush.msrb.mxu1 %v5075_v63  ;;  %v6589_v14 = vld [vmem:[#allocation49_spill] sm:$0xff] }
 0x1a2   : > { %v713_v5 = vadd.f32 %v712_v12, %v6589_v14 }
 0x1a7   : > { %v5373_v55 = vpop.f32.mrf.mxu3 }
 0x1a8   : > { %6581 = vst [vmem:[#allocation60_spill] sm:$0xff] %v5373_v55 }
 0x1af   : > { %v5375_v1 = vpop.f32.mrf.mxu3 }
 0x1b0   : > { %6582 = vst [vmem:[#allocation61_spill] sm:$0xff] %v5375_v1 }
 0x1b7   : > { %v5377_v7 = vpop.f32.mrf.mxu3 }
 0x1b8   : > { %6583 = vst [vmem:[#allocation62_spill] sm:$0xff] %v5377_v7 }
 0x1bf   : > { %v5379_v4 = vpop.f32.mrf.mxu3 }
 0x1c0   : > { %6584 = vst [vmem:[#allocation63_spill] sm:$0xff] %v5379_v4 }
 0x1c7   : > { %v5381_v52 = vpop.f32.mrf.mxu3 }
 0x1c8   : > { %6585 = vst [vmem:[#allocation64_spill] sm:$0xff] %v5381_v52 }
 0x1cf   : > { %v5383_v11 = vpop.f32.mrf.mxu3 }
 0x1d0   : > { %6586 = vst [vmem:[#allocation65_spill] sm:$0xff] %v5383_v11 }
 0x1fe   : > { %v2096_v9 = vpop.f32.mrf.mxu0 }
 0x1ff   : > { %v2120_v63 = vadd.f32 %v2096_v9, %v733_v27 }
 0x201   : > { %v4172_v22 = vmul.f32 -1.442695, %v2120_v63 }
 0x203   : > { %4269 = vpow2.f32 %v4172_v22 }
 0x204   : > { %v2076_v55 = vpop.f32.mrf.mxu3 }
 0x205   : > { %v2119_v13 = vadd.f32 %v2076_v55, %v713_v5  ;;  %v2116_v5 = vpop.f32.mrf.mxu1 }
 0x206   : > { %v2159_v55 = vadd.f32 %v5292_v6, %v2116_v5 }
 0x207   : > { %v4171_v1 = vmul.f32 -1.442695, %v2119_v13 }
 0x209   : > { %v4270_v61 = vpop.eup %4269  ;;  %4271 = vpow2.f32 %v4171_v1 }
 0x20a   : > { %v2128_v7 = vadd.f32 1.0, %v4270_v61 }
 0x20c   : > { %4273 = vrcp.f32 %v2128_v7  ;;  %v2155_v58 = vand.u32 2147483648, %v2128_v7  ;;  %vm2149_vm15 = vweird.f32 %v2128_v7  ;;  %v2153_v21 = vand.u32 2147483647, %v2128_v7 }
 0x20e   : > { %vm2154_vm1 = vcmp.eq.f32.partialorder %v2153_v21, 8.507059e+37 }
 0x20f   : > { %v4272_v4 = vpop.eup %4271 }
 0x210   : > { %v2127_v52 = vadd.f32 1.0, %v4272_v4 }
 0x212   : > { %4275 = vrcp.f32 %v2127_v52  ;;  %v4274_v11 = vpop.eup %4273  ;;  %v2140_v63 = vand.u32 2147483648, %v2127_v52  ;;  %v2138_v12 = vand.u32 2147483647, %v2127_v52  ;;  %vm2134_vm11 = vweird.f32 %v2127_v52 }
 0x213   : > { %v2145_v3 = vmul.f32 %v4274_v11, %v2128_v7  ;;  %vm2150_vm14 = vweird.f32 %v4274_v11  ;;  %v6603_v7 = vld [vmem:[#allocation22_spill] sm:$0xff] }
 0x214   : > { %v2141_v61 = vor.u32 1.1754944e-38, %v2140_v63  ;;  %vm2139_vm13 = vcmp.eq.f32.partialorder %v2138_v12, 8.507059e+37  ;;  %vm2151_vm0 = vmor %vm2149_vm15, %vm2150_vm14 }
 0x215   : > { %v2146_v0 = vsub.f32 1.0, %v2145_v3  ;;  %v6590_v3 = vld [vmem:[#allocation21_spill] sm:$0xff] }
 0x217   : > { %v2147_v22 = vmul.f32 %v4274_v11, %v2146_v0 }
 0x218   : > { %v4276_v2 = vpop.eup %4275 }
 0x219   : > { %v2130_v8 = vmul.f32 %v4276_v2, %v2127_v52  ;;  %vm2135_vm10 = vweird.f32 %v4276_v2  ;;  %v2148_v14 = vadd.f32 %v4274_v11, %v2147_v22  ;;  %v2156_v52 = vor.u32 1.1754944e-38, %v2155_v58 }
 0x21a   : > { %vm2136_vm12 = vmor %vm2134_vm11, %vm2135_vm10 }
 0x21b   : > { %v2131_v27 = vsub.f32 1.0, %v2130_v8  ;;  %v753_v8 = vadd.f32 %v6590_v3, %v5298_v59 }
 0x21d   : > { %v2132_v9 = vmul.f32 %v4276_v2, %v2131_v27 }
 0x21f   : > { %v2133_v13 = vadd.f32 %v4276_v2, %v2132_v9  ;;  %v2152_v9 = vsel %vm2151_vm0, %v4274_v11, %v2148_v14  ;;  %v834_v11 = vadd.f32 %v6603_v7, %v5298_v59 }
 0x220   : > { %v2157_v63 = vsel %vm2154_vm1, %v2156_v52, %v2152_v9 }
 0x221   : > { %v2137_v1 = vsel %vm2136_vm12, %v4276_v2, %v2133_v13  ;;  %v2163_v5 = vsub.f32 1.0, %v2157_v63  ;;  %v2165_v22 = vmul.f32 %v2157_v63, %v5309_v49 }
 0x222   : > { %v2142_v4 = vsel %vm2139_vm13, %v2141_v61, %v2137_v1 }
 0x223   : > { %v2160_v27 = vmul.f32 %v2159_v55, %v2142_v4 }
 0x225   : > { %v2161_v0 = vadd.f32 %v2160_v27, %v753_v8 }
 0x227   : > { %4277 = vtanh.f32 %v2161_v0 }
 0x22d   : > { %v4278_v2 = vpop.eup %4277 }
 0x22e   : > { %v2164_v12 = vmul.f32 %v4278_v2, %v2163_v5  ;;  %v5458_v2 = vld [vmem:[#allocation4 + $0x178] sm:$0xff] }
 0x230   : > { %v5392_v13 = vadd.f32 %v2165_v22, %v2164_v12  ;;  %v5461_v12 = vld [vmem:[#allocation4 + $0x168] sm:$0xff]  ;;  %v5464_v22 = vld [vmem:[#allocation4 + $0x170] sm:$0xff] }
 0x232   : > { %2186 = vmatmul.f32.vlgmr.msrb.gmra.mxu2 %v5392_v13  ;;  %2206 = vmatmul.f32.vlgmr.msrb.gmra.mxu3 %v5392_v13 }
 0x233   : > { %2226 = vmatmul.f32.vlgmr.msra.gmra.mxu0 %v5392_v13  ;;  %2432 = vmatpush.msrb.mxu2 %v4948_v20  ;;  %v6597_v20 = vld [vmem:[#allocation14_spill] sm:$0xff] }
 0x234   : > { %2503 = vmatpush.msrb.mxu3 %v4924_v10  ;;  %2523 = vmatpush.msra.mxu0 %v4946_v19  ;;  %v6591_v10 = vld [vmem:[#allocation12_spill] sm:$0xff]  ;;  %v6596_v19 = vld [vmem:[#allocation19_spill] sm:$0xff] }
 0x235   : > { %2433 = vmatpush.msrb.mxu2 %v4958_v25  ;;  %v6600_v25 = vld [vmem:[#allocation25_spill] sm:$0xff] }
 0x236   : > { %2504 = vmatpush.msrb.mxu3 %v4932_v15  ;;  %2524 = vmatpush.msra.mxu0 %v4952_v23  ;;  %v6592_v15 = vld [vmem:[#allocation15_spill] sm:$0xff]  ;;  %v6598_v23 = vld [vmem:[#allocation17_spill] sm:$0xff] }
 0x237   : > { %2434 = vmatpush.msrb.mxu2 %v4970_v29  ;;  %v6602_v29 = vld [vmem:[#allocation55_spill] sm:$0xff] }
 0x238   : > { %2505 = vmatpush.msrb.mxu3 %v4937_v18  ;;  %2525 = vmatpush.msra.mxu0 %v4961_v26  ;;  %v6593_v18 = vld [vmem:[#allocation18_spill] sm:$0xff] }
 0x239   : > { %2435 = vmatpush.msrb.mxu2 %v4981_v32 }
 0x23a   : > { %2506 = vmatpush.msrb.mxu3 %v4941_v16  ;;  %2526 = vmatpush.msra.mxu0 %v4975_v30  ;;  %v6594_v16 = vld [vmem:[#allocation13_spill] sm:$0xff] }
 0x23b   : > { %2436 = vmatpush.msrb.mxu2 %v4990_v35 }
 0x23c   : > { %2507 = vmatpush.msrb.mxu3 %v4944_v17  ;;  %2527 = vmatpush.msra.mxu0 %v4984_v33  ;;  %v6595_v17 = vld [vmem:[#allocation16_spill] sm:$0xff] }
 0x23d   : > { %2437 = vmatpush.msrb.mxu2 %v5003_v39 }
 0x23e   : > { %2508 = vmatpush.msrb.mxu3 %v4955_v24  ;;  %2528 = vmatpush.msra.mxu0 %v4993_v36  ;;  %v6599_v24 = vld [vmem:[#allocation49_spill] sm:$0xff] }
 0x23f   : > { %2438 = vmatpush.msrb.mxu2 %v5013_v42  ;;  %v794_v26 = vadd.f32 %v6600_v25, %v6599_v24  ;;  %v5485_v25 = vld [vmem:[#allocation4 + $0x130] sm:$0xff] }
 0x240   : > { %2509 = vmatpush.msrb.mxu3 %v4968_v28  ;;  %2529 = vmatpush.msra.mxu0 %v5000_v38  ;;  %v6601_v28 = vld [vmem:[#allocation52_spill] sm:$0xff] }
 0x241   : > { %2439 = vmatpush.msrb.mxu2 %v5022_v45  ;;  %v814_v30 = vadd.f32 %v6602_v29, %v6601_v28  ;;  %v5491_v29 = vld [vmem:[#allocation4 + $0x128] sm:$0xff] }
 0x242   : > { %2510 = vmatpush.msrb.mxu3 %v4979_v31  ;;  %2530 = vmatpush.msra.mxu0 %v5009_v41 }
 0x243   : > { %2440 = vmatpush.msrb.mxu2 %v5031_v48 }
 0x244   : > { %2511 = vmatpush.msrb.mxu3 %v4988_v34  ;;  %2531 = vmatpush.msra.mxu0 %v5020_v44 }
 0x245   : > { %2441 = vmatpush.msrb.mxu2 %v5040_v51 }
 0x246   : > { %2512 = vmatpush.msrb.mxu3 %v4997_v37  ;;  %2532 = vmatpush.msra.mxu0 %v5029_v47 }
 0x247   : > { %2442 = vmatpush.msrb.mxu2 %v5049_v54 }
 0x248   : > { %2513 = vmatpush.msrb.mxu3 %v5006_v40  ;;  %2533 = vmatpush.msra.mxu0 %v5038_v50 }
 0x249   : > { %2443 = vmatpush.msrb.mxu2 %v5060_v57 }
 0x24a   : > { %2514 = vmatpush.msrb.mxu3 %v5016_v43  ;;  %2534 = vmatpush.msra.mxu0 %v5047_v53 }
 0x24b   : > { %2444 = vmatpush.msrb.mxu2 %v5066_v60 }
 0x24c   : > { %2515 = vmatpush.msrb.mxu3 %v5025_v46  ;;  %2535 = vmatpush.msra.mxu0 %v5056_v56 }
 0x24d   : > { %2445 = vmatpush.msrb.mxu2 %v5073_v62 }
 0x24e   : > { %2516 = vmatpush.msrb.mxu3 %v6591_v10  ;;  %2536 = vmatpush.msra.mxu0 %v6592_v15  ;;  %v5470_v10 = vld [vmem:[#allocation4 + $0x150] sm:$0xff]  ;;  %v5473_v15 = vld [vmem:[#allocation4 + $0x158] sm:$0xff] }
 0x24f   : > { %2446 = vmatpush.msrb.mxu2 %v6593_v18 }
 0x250   : > { %2517 = vmatpush.msrb.mxu3 %v6594_v16  ;;  %2537 = vmatpush.msra.mxu0 %v6595_v17  ;;  %v5476_v16 = vld [vmem:[#allocation4 + $0x148] sm:$0xff]  ;;  %v5479_v17 = vld [vmem:[#allocation4 + $0x138] sm:$0xff] }
 0x251   : > { %2447 = vmatpush.msrb.mxu2 %v6596_v19 }
 0x252   : > { %2518 = vmatpush.msrb.mxu3 %v6597_v20  ;;  %2538 = vmatpush.msra.mxu0 %v6598_v23  ;;  %v5482_v20 = vld [vmem:[#allocation4 + $0x140] sm:$0xff] }
 0x2b0   : > { %v2227_v51 = vpop.f32.mrf.mxu0 }
 0x2b1   : > { %v2270_v58 = vadd.f32 %v5292_v6, %v2227_v51  ;;  %v5554_v51 = vld [vmem:[#allocation4 + $0x80] sm:$0xff] }
 0x2b5   : > { %v2187_v31 = vpop.f32.mrf.mxu2  ;;  %v2207_v32 = vpop.f32.mrf.mxu3 }
 0x2b6   : > { %v2230_v33 = vadd.f32 %v2187_v31, %v794_v26  ;;  %v2231_v34 = vadd.f32 %v2207_v32, %v814_v30  ;;  %v5488_v26 = vld [vmem:[#allocation4 + $0x120] sm:$0xff]  ;;  %v5494_v30 = vld [vmem:[#allocation4 + $0x118] sm:$0xff]  ;;  %v5497_v31 = vld [vmem:[#allocation4 + $0x108] sm:$0xff] }
 0x2b7   : > { %v5500_v32 = vld [vmem:[#allocation4 + $0x110] sm:$0xff] }
 0x2b8   : > { %v4173_v35 = vmul.f32 -1.442695, %v2230_v33  ;;  %v4174_v36 = vmul.f32 -1.442695, %v2231_v34  ;;  %v5503_v33 = vld [vmem:[#allocation4 + $0x100] sm:$0xff]  ;;  %v5506_v34 = vld [vmem:[#allocation4 + $0xf0] sm:$0xff] }
 0x2ba   : > { %4279 = vpow2.f32 %v4173_v35  ;;  %v5509_v35 = vld [vmem:[#allocation4 + $0xf8] sm:$0xff] }
 0x2bb   : > { %4281 = vpow2.f32 %v4174_v36  ;;  %v5512_v36 = vld [vmem:[#allocation4 + $0xe8] sm:$0xff] }
 0x2c0   : > { %v4280_v37 = vpop.eup %4279 }
 0x2c1   : > { %v4282_v38 = vpop.eup %4281  ;;  %v2238_v39 = vadd.f32 1.0, %v4280_v37  ;;  %v5515_v37 = vld [vmem:[#allocation4 + $0xd8] sm:$0xff] }
 0x2c2   : > { %v2239_v40 = vadd.f32 1.0, %v4282_v38  ;;  %v5518_v38 = vld [vmem:[#allocation4 + $0xe0] sm:$0xff] }
 0x2c3   : > { %4283 = vrcp.f32 %v2238_v39  ;;  %v2251_v46 = vand.u32 2147483648, %v2238_v39  ;;  %v2249_v50 = vand.u32 2147483647, %v2238_v39  ;;  %vm2245_vm3 = vweird.f32 %v2238_v39 }
 0x2c4   : > { %4285 = vrcp.f32 %v2239_v40  ;;  %v2266_v61 = vand.u32 2147483648, %v2239_v40  ;;  %vm2260_vm7 = vweird.f32 %v2239_v40  ;;  %v2264_v1 = vand.u32 2147483647, %v2239_v40 }
 0x2c5   : > { %v2252_v56 = vor.u32 1.1754944e-38, %v2251_v46  ;;  %vm2250_vm5 = vcmp.eq.f32.partialorder %v2249_v50, 8.507059e+37  ;;  %v5542_v46 = vld [vmem:[#allocation4 + $0x90] sm:$0xff]  ;;  %v5551_v50 = vld [vmem:[#allocation4 + $0x78] sm:$0xff] }
 0x2c6   : > { %v2267_v8 = vor.u32 1.1754944e-38, %v2266_v61  ;;  %vm2265_vm9 = vcmp.eq.f32.partialorder %v2264_v1, 8.507059e+37 }
 0x2c9   : > { %v4284_v41 = vpop.eup %4283 }
 0x2ca   : > { %v4286_v42 = vpop.eup %4285  ;;  %v2241_v43 = vmul.f32 %v4284_v41, %v2238_v39  ;;  %vm2246_vm2 = vweird.f32 %v4284_v41  ;;  %v5521_v39 = vld [vmem:[#allocation4 + $0xd0] sm:$0xff] }
 0x2cb   : > { %v2256_v44 = vmul.f32 %v4286_v42, %v2239_v40  ;;  %vm2247_vm4 = vmor %vm2245_vm3, %vm2246_vm2  ;;  %vm2261_vm6 = vweird.f32 %v4286_v42  ;;  %v5524_v40 = vld [vmem:[#allocation4 + $0xc0] sm:$0xff] }
 0x2cc   : > { %v2242_v45 = vsub.f32 1.0, %v2241_v43  ;;  %vm2262_vm8 = vmor %vm2260_vm7, %vm2261_vm6  ;;  %v5533_v43 = vld [vmem:[#allocation4 + $0xa8] sm:$0xff] }
 0x2cd   : > { %v2257_v47 = vsub.f32 1.0, %v2256_v44  ;;  %v5536_v44 = vld [vmem:[#allocation4 + $0xb0] sm:$0xff] }
 0x2ce   : > { %v2243_v48 = vmul.f32 %v4284_v41, %v2242_v45  ;;  %v5539_v45 = vld [vmem:[#allocation4 + $0xa0] sm:$0xff] }
 0x2cf   : > { %v2258_v53 = vmul.f32 %v4286_v42, %v2257_v47  ;;  %v5545_v47 = vld [vmem:[#allocation4 + $0x98] sm:$0xff] }
 0x2d0   : > { %v2244_v54 = vadd.f32 %v4284_v41, %v2243_v48  ;;  %v5548_v48 = vld [vmem:[#allocation4 + $0x88] sm:$0xff] }
 0x2d1   : > { %v2259_v14 = vadd.f32 %v4286_v42, %v2258_v53  ;;  %v5558_v53 = vld [vmem:[#allocation4 + $0x60] sm:$0xff] }
 0x2d2   : > { %v2248_v49 = vsel %vm2247_vm4, %v4284_v41, %v2244_v54  ;;  %v5527_v41 = vld [vmem:[#allocation4 + $0xc8] sm:$0xff] }
 0x2d3   : > { %v2253_v21 = vsel %vm2250_vm5, %v2252_v56, %v2248_v49  ;;  %v2263_v3 = vsel %vm2262_vm8, %v4286_v42, %v2259_v14  ;;  %v5530_v42 = vld [vmem:[#allocation4 + $0xb8] sm:$0xff]  ;;  %v5561_v54 = vld [vmem:[#allocation4 + $0x68] sm:$0xff] }
 0x2d4   : > { %v2271_v55 = vmul.f32 %v2270_v58, %v2253_v21  ;;  %v2268_v27 = vsel %vm2265_vm9, %v2267_v8, %v2263_v3  ;;  %v5565_v56 = vld [vmem:[#allocation4 + $0x48] sm:$0xff]  ;;  %v5568_v58 = vld [vmem:[#allocation4 + $0x50] sm:$0xff]  ;;  %v5575_v49 = vld [vmem:[#allocation4 + $0x38] sm:$0xff] }
 0x2d5   : > { %v2274_v0 = vsub.f32 1.0, %v2268_v27  ;;  %v2276_v63 = vmul.f32 %v2268_v27, %v5392_v13  ;;  %v5467_v13 = vld [vmem:[#allocation4 + $0x160] sm:$0xff]  ;;  %6605 = vst [vmem:[#allocation21_spill] sm:$0xff] %v5575_v49  ;;  %v6609_v14 = vld [vmem:[#allocation23_spill] sm:$0xff] }
 0x2d6   : > { %v2272_v4 = vadd.f32 %v2271_v55, %v834_v11  ;;  %v5582_v21 = vld [vmem:[#allocation4 + $0x20] sm:$0xff]  ;;  %v875_v7 = vadd.f32 %v6609_v14, %v6599_v24 }
 0x2d7   : > { %6607 = vst [vmem:[#allocation15_spill] sm:$0xff] %v5582_v21  ;;  %v6610_v55 = vld [vmem:[#allocation28_spill] sm:$0xff] }
 0x2d8   : > { %4287 = vtanh.f32 %v2272_v4  ;;  %v895_v1 = vadd.f32 %v6610_v55, %v6601_v28 }
 0x2de   : > { %v4288_v9 = vpop.eup %4287 }
 0x2df   : > { %v2275_v52 = vmul.f32 %v4288_v9, %v2274_v0 }
 0x2e1   : > { %v5453_v5 = vadd.f32 %v2276_v63, %v2275_v52 }
 0x2e3   : > { %2297 = vmatmul.f32.vlgmr.msra.gmra.mxu1 %v5453_v5  ;;  %2317 = vmatmul.f32.vlgmr.msra.gmra.mxu2 %v5453_v5 }
 0x2e4   : > { %2337 = vmatmul.f32.vlgmr.msra.gmra.mxu3 %v5453_v5  ;;  %2543 = vmatpush.msra.mxu1 %v5458_v2 }
 0x2e5   : > { %2614 = vmatpush.msra.mxu2 %v5461_v12  ;;  %2634 = vmatpush.msra.mxu3 %v5464_v22 }
 0x2e6   : > { %2544 = vmatpush.msra.mxu1 %v5467_v13 }
 0x2e7   : > { %2615 = vmatpush.msra.mxu2 %v5470_v10  ;;  %2635 = vmatpush.msra.mxu3 %v5473_v15 }
 0x2e8   : > { %2545 = vmatpush.msra.mxu1 %v5476_v16 }
 0x2e9   : > { %2616 = vmatpush.msra.mxu2 %v5479_v17  ;;  %2636 = vmatpush.msra.mxu3 %v5482_v20 }
 0x2ea   : > { %2546 = vmatpush.msra.mxu1 %v5485_v25 }
 0x2eb   : > { %2617 = vmatpush.msra.mxu2 %v5488_v26  ;;  %2637 = vmatpush.msra.mxu3 %v5491_v29 }
 0x2ec   : > { %2547 = vmatpush.msra.mxu1 %v5494_v30 }
 0x2ed   : > { %2618 = vmatpush.msra.mxu2 %v5497_v31  ;;  %2638 = vmatpush.msra.mxu3 %v5500_v32 }
 0x2ee   : > { %2548 = vmatpush.msra.mxu1 %v5503_v33 }
 0x2ef   : > { %2619 = vmatpush.msra.mxu2 %v5506_v34  ;;  %2639 = vmatpush.msra.mxu3 %v5509_v35 }
 0x2f0   : > { %2549 = vmatpush.msra.mxu1 %v5512_v36 }
 0x2f1   : > { %2620 = vmatpush.msra.mxu2 %v5515_v37  ;;  %2640 = vmatpush.msra.mxu3 %v5518_v38 }
 0x2f2   : > { %2550 = vmatpush.msra.mxu1 %v5521_v39 }
 0x2f3   : > { %2621 = vmatpush.msra.mxu2 %v5524_v40  ;;  %2641 = vmatpush.msra.mxu3 %v5527_v41 }
 0x2f4   : > { %2551 = vmatpush.msra.mxu1 %v5530_v42 }
 0x2f5   : > { %2622 = vmatpush.msra.mxu2 %v5533_v43  ;;  %2642 = vmatpush.msra.mxu3 %v5536_v44 }
 0x2f6   : > { %2552 = vmatpush.msra.mxu1 %v5539_v45 }
 0x2f7   : > { %2623 = vmatpush.msra.mxu2 %v5542_v46  ;;  %2643 = vmatpush.msra.mxu3 %v5545_v47 }
 0x2f8   : > { %2553 = vmatpush.msra.mxu1 %v5548_v48 }
 0x2f9   : > { %2624 = vmatpush.msra.mxu2 %v5551_v50  ;;  %2644 = vmatpush.msra.mxu3 %v5554_v51 }
 0x2fa   : > { %2554 = vmatpush.msra.mxu1 %v5060_v57  ;;  %v5572_v57 = vld [vmem:[#allocation4 + $0x30] sm:$0xff] }
 0x2fb   : > { %2625 = vmatpush.msra.mxu2 %v5558_v53  ;;  %2645 = vmatpush.msra.mxu3 %v5561_v54  ;;  %6604 = vst [vmem:[#allocation20_spill] sm:$0xff] %v5572_v57 }
 0x2fc   : > { %2555 = vmatpush.msra.mxu1 %v5066_v60  ;;  %v5579_v60 = vld [vmem:[#allocation4 + $0x18] sm:$0xff] }
 0x2fd   : > { %2626 = vmatpush.msra.mxu2 %v5565_v56  ;;  %2646 = vmatpush.msra.mxu3 %v5568_v58  ;;  %6606 = vst [vmem:[#allocation12_spill] sm:$0xff] %v5579_v60 }
 0x2fe   : > { %2556 = vmatpush.msra.mxu1 %v5073_v62  ;;  %v5586_v62 = vld [vmem:[#allocation4] sm:$0xff] }
 0x2ff   : > { %2627 = vmatpush.msra.mxu2 %v5572_v57  ;;  %2647 = vmatpush.msra.mxu3 %v5575_v49  ;;  %6608 = vst [vmem:[#allocation18_spill] sm:$0xff] %v5586_v62 }
 0x300   : > { %2557 = vmatpush.msra.mxu1 %v6593_v18 }
 0x301   : > { %2628 = vmatpush.msra.mxu2 %v5579_v60  ;;  %2648 = vmatpush.msra.mxu3 %v5582_v21 }
 0x302   : > { %2558 = vmatpush.msra.mxu1 %v6596_v19 }
 0x303   : > { %2629 = vmatpush.msra.mxu2 %v5586_v62  ;;  %2649 = vmatpush.msra.mxu3 %v6598_v23 }
 0x360   : > { %v2298_v18 = vpop.f32.mrf.mxu1 }
 0x361   : > { %v2341_v11 = vadd.f32 %v2298_v18, %v875_v7 }
 0x363   : > { %v4175_v61 = vmul.f32 -1.442695, %v2341_v11 }
 0x365   : > { %4289 = vpow2.f32 %v4175_v61 }
 0x366   : > { %v2318_v4 = vpop.f32.mrf.mxu2 }
 0x367   : > { %v2342_v3 = vadd.f32 %v2318_v4, %v895_v1  ;;  %v2338_v55 = vpop.f32.mrf.mxu3 }
 0x369   : > { %v4176_v8 = vmul.f32 -1.442695, %v2342_v3 }
 0x36b   : > { %v4290_v19 = vpop.eup %4289  ;;  %4291 = vpow2.f32 %v4176_v8  ;;  %v2381_v8 = vadd.f32 %v5292_v6, %v2338_v55 }
 0x36c   : > { %v2349_v27 = vadd.f32 1.0, %v4290_v19  ;;  %v6611_v19 = vld [vmem:[#allocation56_spill] sm:$0xff] }
 0x36e   : > { %4293 = vrcp.f32 %v2349_v27  ;;  %v2362_v14 = vand.u32 2147483648, %v2349_v27  ;;  %v2360_v18 = vand.u32 2147483647, %v2349_v27  ;;  %vm2356_vm11 = vweird.f32 %v2349_v27 }
 0x370   : > { %v2363_v1 = vor.u32 1.1754944e-38, %v2362_v14  ;;  %vm2361_vm13 = vcmp.eq.f32.partialorder %v2360_v18, 8.507059e+37 }
 0x371   : > { %v4292_v0 = vpop.eup %4291 }
 0x372   : > { %v2350_v9 = vadd.f32 1.0, %v4292_v0  ;;  %v915_v0 = vadd.f32 %v6611_v19, %v5298_v59  ;;  %v6619_v19 = vld [vmem:[#allocation24_spill] sm:$0xff] }
 0x374   : > { %v4294_v23 = vpop.eup %4293  ;;  %4295 = vrcp.f32 %v2350_v9  ;;  %v2377_v62 = vand.u32 2147483648, %v2350_v9  ;;  %v2375_v21 = vand.u32 2147483647, %v2350_v9  ;;  %vm2371_vm15 = vweird.f32 %v2350_v9 }
 0x375   : > { %v2352_v52 = vmul.f32 %v4294_v23, %v2349_v27  ;;  %vm2357_vm10 = vweird.f32 %v4294_v23 }
 0x376   : > { %vm2358_vm12 = vmor %vm2356_vm11, %vm2357_vm10  ;;  %v2378_v14 = vor.u32 1.1754944e-38, %v2377_v62  ;;  %vm2376_vm1 = vcmp.eq.f32.partialorder %v2375_v21, 8.507059e+37  ;;  %v5651_v21 = vld [vmem:[#allocation4 + $0x28] sm:$0xff]  ;;  %v6613_v62 = vld [vmem:[#allocation12_spill] sm:$0xff] }
 0x377   : > { %v2353_v63 = vsub.f32 1.0, %v2352_v52  ;;  %6612 = vst [vmem:[#allocation13_spill] sm:$0xff] %v5651_v21 }
 0x379   : > { %v2354_v7 = vmul.f32 %v4294_v23, %v2353_v63 }
 0x37a   : > { %v4296_v11 = vpop.eup %4295 }
 0x37b   : > { %v2367_v61 = vmul.f32 %v4296_v11, %v2350_v9  ;;  %v2355_v28 = vadd.f32 %v4294_v23, %v2354_v7  ;;  %vm2372_vm14 = vweird.f32 %v4296_v11  ;;  %v6614_v9 = vld [vmem:[#allocation15_spill] sm:$0xff] }
 0x37c   : > { %vm2373_vm0 = vmor %vm2371_vm15, %vm2372_vm14 }
 0x37d   : > { %v2368_v4 = vsub.f32 1.0, %v2367_v61  ;;  %v2359_v3 = vsel %vm2358_vm12, %v4294_v23, %v2355_v28 }
 0x37e   : > { %v2364_v52 = vsel %vm2361_vm13, %v2363_v1, %v2359_v3  ;;  %v5660_v3 = vld [vmem:[#allocation4 + $0x8] sm:$0xff] }
 0x37f   : > { %v2369_v24 = vmul.f32 %v4296_v11, %v2368_v4  ;;  %v2382_v63 = vmul.f32 %v2381_v8, %v2364_v52  ;;  %v6616_v4 = vld [vmem:[#allocation18_spill] sm:$0xff]  ;;  %6617 = vst [vmem:[#allocation19_spill] sm:$0xff] %v5660_v3  ;;  %v6618_v8 = vld [vmem:[#allocation49_spill] sm:$0xff]  ;;  %v6620_v52 = vld [vmem:[#allocation52_spill] sm:$0xff] }
 0x381   : > { %v2383_v60 = vadd.f32 %v2382_v63, %v915_v0  ;;  %v2370_v7 = vadd.f32 %v4296_v11, %v2369_v24  ;;  %v5636_v24 = vld [vmem:[#allocation4 + $0x70] sm:$0xff]  ;;  %v956_v0 = vadd.f32 %v6619_v19, %v6618_v8 }
 0x382   : > { %v6621_v63 = vld [vmem:[#allocation26_spill] sm:$0xff] }
 0x383   : > { %4297 = vtanh.f32 %v2383_v60  ;;  %v2374_v27 = vsel %vm2373_vm0, %v4296_v11, %v2370_v7  ;;  %v5646_v60 = vld [vmem:[#allocation4 + $0x40] sm:$0xff]  ;;  %v5656_v11 = vld [vmem:[#allocation4 + $0x10] sm:$0xff]  ;;  %v976_v7 = vadd.f32 %v6621_v63, %v6620_v52 }
 0x384   : > { %v2379_v28 = vsel %vm2376_vm1, %v2378_v14, %v2374_v27  ;;  %6615 = vst [vmem:[#allocation16_spill] sm:$0xff] %v5656_v11 }
 0x385   : > { %v2385_v23 = vsub.f32 1.0, %v2379_v28  ;;  %v2387_v61 = vmul.f32 %v2379_v28, %v5453_v5  ;;  %v5641_v5 = vld [vmem:[#allocation4 + $0x58] sm:$0xff] }
 0x389   : > { %v4298_v18 = vpop.eup %4297 }
 0x38a   : > { %v2386_v55 = vmul.f32 %v4298_v18, %v2385_v23 }
 0x38c   : > { %v5598_v1 = vadd.f32 %v2387_v61, %v2386_v55 }
 0x38e   : > { %2408 = vmatmul.f32.vlgmr.msrb.gmra.mxu0 %v5598_v1  ;;  %2428 = vmatmul.f32.vlgmr.msrb.gmra.mxu1 %v5598_v1 }
 0x38f   : > { %2448 = vmatmul.f32.vlgmr.msrb.gmra.mxu2 %v5598_v1  ;;  %2654 = vmatpush.msrb.mxu0 %v5458_v2 }
 0x390   : > { %2725 = vmatpush.msrb.mxu1 %v5461_v12  ;;  %2745 = vmatpush.msrb.mxu2 %v5464_v22 }
 0x391   : > { %2655 = vmatpush.msrb.mxu0 %v5467_v13 }
 0x392   : > { %2726 = vmatpush.msrb.mxu1 %v5470_v10  ;;  %2746 = vmatpush.msrb.mxu2 %v5473_v15 }
 0x393   : > { %2656 = vmatpush.msrb.mxu0 %v5476_v16 }
 0x394   : > { %2727 = vmatpush.msrb.mxu1 %v5479_v17  ;;  %2747 = vmatpush.msrb.mxu2 %v5482_v20 }
 0x395   : > { %2657 = vmatpush.msrb.mxu0 %v5485_v25 }
 0x396   : > { %2728 = vmatpush.msrb.mxu1 %v5488_v26  ;;  %2748 = vmatpush.msrb.mxu2 %v5491_v29 }
 0x397   : > { %2658 = vmatpush.msrb.mxu0 %v5494_v30 }
 0x398   : > { %2729 = vmatpush.msrb.mxu1 %v5497_v31  ;;  %2749 = vmatpush.msrb.mxu2 %v5500_v32 }
 0x399   : > { %2659 = vmatpush.msrb.mxu0 %v5503_v33 }
 0x39a   : > { %2730 = vmatpush.msrb.mxu1 %v5506_v34  ;;  %2750 = vmatpush.msrb.mxu2 %v5509_v35 }
 0x39b   : > { %2660 = vmatpush.msrb.mxu0 %v5512_v36 }
 0x39c   : > { %2731 = vmatpush.msrb.mxu1 %v5515_v37  ;;  %2751 = vmatpush.msrb.mxu2 %v5518_v38 }
 0x39d   : > { %2661 = vmatpush.msrb.mxu0 %v5521_v39 }
 0x39e   : > { %2732 = vmatpush.msrb.mxu1 %v5524_v40  ;;  %2752 = vmatpush.msrb.mxu2 %v5527_v41 }
 0x39f   : > { %2662 = vmatpush.msrb.mxu0 %v5530_v42 }
 0x3a0   : > { %2733 = vmatpush.msrb.mxu1 %v5533_v43  ;;  %2753 = vmatpush.msrb.mxu2 %v5536_v44 }
 0x3a1   : > { %2663 = vmatpush.msrb.mxu0 %v5539_v45 }
 0x3a2   : > { %2734 = vmatpush.msrb.mxu1 %v5542_v46  ;;  %2754 = vmatpush.msrb.mxu2 %v5545_v47 }
 0x3a3   : > { %2664 = vmatpush.msrb.mxu0 %v5548_v48 }
 0x3a4   : > { %2735 = vmatpush.msrb.mxu1 %v5551_v50  ;;  %2755 = vmatpush.msrb.mxu2 %v5554_v51 }
 0x3a5   : > { %2665 = vmatpush.msrb.mxu0 %v5636_v24 }
 0x3a6   : > { %2736 = vmatpush.msrb.mxu1 %v5558_v53  ;;  %2756 = vmatpush.msrb.mxu2 %v5561_v54 }
 0x3a7   : > { %2666 = vmatpush.msrb.mxu0 %v5641_v5 }
 0x3a8   : > { %2737 = vmatpush.msrb.mxu1 %v5565_v56  ;;  %2757 = vmatpush.msrb.mxu2 %v5568_v58 }
 0x3a9   : > { %2667 = vmatpush.msrb.mxu0 %v5646_v60 }
 0x3aa   : > { %2738 = vmatpush.msrb.mxu1 %v5572_v57  ;;  %2758 = vmatpush.msrb.mxu2 %v5575_v49 }
 0x3ab   : > { %2668 = vmatpush.msrb.mxu0 %v5651_v21 }
 0x3ac   : > { %2739 = vmatpush.msrb.mxu1 %v6613_v62  ;;  %2759 = vmatpush.msrb.mxu2 %v6614_v9 }
 0x3ad   : > { %2669 = vmatpush.msrb.mxu0 %v5656_v11 }
 0x3ae   : > { %2740 = vmatpush.msrb.mxu1 %v6616_v4  ;;  %2760 = vmatpush.msrb.mxu2 %v5660_v3 }
 0x40b   : > { %v2409_v27 = vpop.f32.mrf.mxu0  ;;  %v2429_v14 = vpop.f32.mrf.mxu1 }
 0x40c   : > { %v2452_v28 = vadd.f32 %v2409_v27, %v956_v0  ;;  %v2453_v23 = vadd.f32 %v2429_v14, %v976_v7 }
 0x40e   : > { %v4177_v18 = vmul.f32 -1.442695, %v2452_v28  ;;  %v4178_v55 = vmul.f32 -1.442695, %v2453_v23 }
 0x410   : > { %4299 = vpow2.f32 %v4177_v18 }
 0x411   : > { %4301 = vpow2.f32 %v4178_v55 }
 0x412   : > { %v2449_v27 = vpop.f32.mrf.mxu2 }
 0x416   : > { %v4300_v61 = vpop.eup %4299 }
 0x417   : > { %v4302_v4 = vpop.eup %4301  ;;  %v2460_v11 = vadd.f32 1.0, %v4300_v61  ;;  %v6622_v61 = vld [vmem:[#allocation31_spill] sm:$0xff] }
 0x418   : > { %v2461_v9 = vadd.f32 1.0, %v4302_v4  ;;  %v2492_v4 = vadd.f32 %v5292_v6, %v2449_v27 }
 0x419   : > { %4303 = vrcp.f32 %v2460_v11  ;;  %v2473_v52 = vand.u32 2147483648, %v2460_v11  ;;  %v2471_v0 = vand.u32 2147483647, %v2460_v11  ;;  %vm2467_vm3 = vweird.f32 %v2460_v11 }
 0x41a   : > { %4305 = vrcp.f32 %v2461_v9  ;;  %vm2482_vm7 = vweird.f32 %v2461_v9  ;;  %v2486_v57 = vand.u32 2147483647, %v2461_v9 }
 0x41b   : > { %v2474_v28 = vor.u32 1.1754944e-38, %v2473_v52  ;;  %vm2472_vm5 = vcmp.eq.f32.partialorder %v2471_v0, 8.507059e+37 }
 0x41c   : > { %vm2487_vm9 = vcmp.eq.f32.partialorder %v2486_v57, 8.507059e+37  ;;  %v6623_v57 = vld [vmem:[#allocation20_spill] sm:$0xff] }
 0x41f   : > { %v4304_v3 = vpop.eup %4303 }
 0x420   : > { %v4306_v62 = vpop.eup %4305  ;;  %v2463_v19 = vmul.f32 %v4304_v3, %v2460_v11  ;;  %vm2468_vm2 = vweird.f32 %v4304_v3 }
 0x421   : > { %v2478_v8 = vmul.f32 %v4306_v62, %v2461_v9  ;;  %vm2469_vm4 = vmor %vm2467_vm3, %vm2468_vm2  ;;  %vm2483_vm6 = vweird.f32 %v4306_v62 }
 0x422   : > { %v2464_v21 = vsub.f32 1.0, %v2463_v19  ;;  %vm2484_vm8 = vmor %vm2482_vm7, %vm2483_vm6 }
 0x423   : > { %v2479_v63 = vsub.f32 1.0, %v2478_v8  ;;  %v996_v8 = vadd.f32 %v6622_v61, %v5298_v59 }
 0x424   : > { %v2465_v49 = vmul.f32 %v4304_v3, %v2464_v21  ;;  %v2488_v21 = vand.u32 2147483648, %v2461_v9  ;;  %v6626_v9 = vld [vmem:[#allocation12_spill] sm:$0xff] }
 0x425   : > { %v2480_v7 = vmul.f32 %v4306_v62, %v2479_v63 }
 0x426   : > { %v2466_v14 = vadd.f32 %v4304_v3, %v2465_v49  ;;  %v2489_v11 = vor.u32 1.1754944e-38, %v2488_v21 }
 0x427   : > { %v2481_v55 = vadd.f32 %v4306_v62, %v2480_v7 }
 0x428   : > { %v2470_v23 = vsel %vm2469_vm4, %v4304_v3, %v2466_v14  ;;  %v6627_v14 = vld [vmem:[#allocation15_spill] sm:$0xff] }
 0x429   : > { %v2475_v18 = vsel %vm2472_vm5, %v2474_v28, %v2470_v23  ;;  %v2485_v49 = vsel %vm2484_vm8, %v4306_v62, %v2481_v55  ;;  %v6625_v62 = vld [vmem:[#allocation13_spill] sm:$0xff]  ;;  %v6628_v28 = vld [vmem:[#allocation16_spill] sm:$0xff]  ;;  %v6629_v23 = vld [vmem:[#allocation18_spill] sm:$0xff] }
 0x42a   : > { %v2493_v19 = vmul.f32 %v2492_v4, %v2475_v18  ;;  %v2490_v3 = vsel %vm2487_vm9, %v2489_v11, %v2485_v49  ;;  %v6630_v4 = vld [vmem:[#allocation19_spill] sm:$0xff]  ;;  %v6631_v18 = vld [vmem:[#allocation52_spill] sm:$0xff]  ;;  %v6634_v49 = vld [vmem:[#allocation57_spill] sm:$0xff] }
 0x42b   : > { %v2496_v52 = vsub.f32 1.0, %v2490_v3  ;;  %v2498_v7 = vmul.f32 %v2490_v3, %v5598_v1  ;;  %v6624_v1 = vld [vmem:[#allocation21_spill] sm:$0xff]  ;;  %v6632_v55 = vld [vmem:[#allocation27_spill] sm:$0xff] }
 0x42c   : > { %v2494_v63 = vadd.f32 %v2493_v19, %v996_v8  ;;  %v1057_v61 = vadd.f32 %v6632_v55, %v6631_v18 }
 0x42e   : > { %4307 = vtanh.f32 %v2494_v63  ;;  %v6633_v63 = vld [vmem:[#allocation49_spill] sm:$0xff] }
 0x42f   : > { %v1037_v11 = vadd.f32 %v6634_v49, %v6633_v63 }
 0x434   : > { %v4308_v0 = vpop.eup %4307 }
 0x435   : > { %v2497_v6 = vmul.f32 %v4308_v0, %v2496_v52 }
 0x437   : > { %v5671_v27 = vadd.f32 %v2498_v7, %v2497_v6 }
 0x439   : > { %2519 = vmatmul.f32.vlgmr.msrb.gmra.mxu3 %v5671_v27  ;;  %2539 = vmatmul.f32.vlgmr.msra.gmra.mxu0 %v5671_v27 }
 0x43a   : > { %2559 = vmatmul.f32.vlgmr.msra.gmra.mxu1 %v5671_v27  ;;  %2765 = vmatpush.msrb.mxu3 %v5458_v2 }
 0x43b   : > { %2836 = vmatpush.msra.mxu0 %v5461_v12  ;;  %2856 = vmatpush.msra.mxu1 %v5464_v22 }
 0x43c   : > { %2766 = vmatpush.msrb.mxu3 %v5467_v13 }
 0x43d   : > { %2837 = vmatpush.msra.mxu0 %v5470_v10  ;;  %2857 = vmatpush.msra.mxu1 %v5473_v15 }
 0x43e   : > { %2767 = vmatpush.msrb.mxu3 %v5476_v16 }
 0x43f   : > { %2838 = vmatpush.msra.mxu0 %v5479_v17  ;;  %2858 = vmatpush.msra.mxu1 %v5482_v20 }
 0x440   : > { %2768 = vmatpush.msrb.mxu3 %v5485_v25 }
 0x441   : > { %2839 = vmatpush.msra.mxu0 %v5488_v26  ;;  %2859 = vmatpush.msra.mxu1 %v5491_v29 }
 0x442   : > { %2769 = vmatpush.msrb.mxu3 %v5494_v30 }
 0x443   : > { %2840 = vmatpush.msra.mxu0 %v5497_v31  ;;  %2860 = vmatpush.msra.mxu1 %v5500_v32 }
 0x444   : > { %2770 = vmatpush.msrb.mxu3 %v5503_v33 }
 0x445   : > { %2841 = vmatpush.msra.mxu0 %v5506_v34  ;;  %2861 = vmatpush.msra.mxu1 %v5509_v35 }
 0x446   : > { %2771 = vmatpush.msrb.mxu3 %v5512_v36 }
 0x447   : > { %2842 = vmatpush.msra.mxu0 %v5515_v37  ;;  %2862 = vmatpush.msra.mxu1 %v5518_v38 }
 0x448   : > { %2772 = vmatpush.msrb.mxu3 %v5521_v39 }
 0x449   : > { %2843 = vmatpush.msra.mxu0 %v5524_v40  ;;  %2863 = vmatpush.msra.mxu1 %v5527_v41 }
 0x44a   : > { %2773 = vmatpush.msrb.mxu3 %v5530_v42 }
 0x44b   : > { %2844 = vmatpush.msra.mxu0 %v5533_v43  ;;  %2864 = vmatpush.msra.mxu1 %v5536_v44 }
 0x44c   : > { %2774 = vmatpush.msrb.mxu3 %v5539_v45 }
 0x44d   : > { %2845 = vmatpush.msra.mxu0 %v5542_v46  ;;  %2865 = vmatpush.msra.mxu1 %v5545_v47 }
 0x44e   : > { %2775 = vmatpush.msrb.mxu3 %v5548_v48 }
 0x44f   : > { %2846 = vmatpush.msra.mxu0 %v5551_v50  ;;  %2866 = vmatpush.msra.mxu1 %v5554_v51 }
 0x450   : > { %2776 = vmatpush.msrb.mxu3 %v5636_v24 }
 0x451   : > { %2847 = vmatpush.msra.mxu0 %v5558_v53  ;;  %2867 = vmatpush.msra.mxu1 %v5561_v54 }
 0x452   : > { %2777 = vmatpush.msrb.mxu3 %v5641_v5 }
 0x453   : > { %2848 = vmatpush.msra.mxu0 %v5565_v56  ;;  %2868 = vmatpush.msra.mxu1 %v5568_v58 }
 0x454   : > { %2778 = vmatpush.msrb.mxu3 %v5646_v60 }
 0x455   : > { %2849 = vmatpush.msra.mxu0 %v6623_v57  ;;  %2869 = vmatpush.msra.mxu1 %v6624_v1 }
 0x456   : > { %2779 = vmatpush.msrb.mxu3 %v6625_v62 }
 0x457   : > { %2850 = vmatpush.msra.mxu0 %v6626_v9  ;;  %2870 = vmatpush.msra.mxu1 %v6627_v14 }
 0x458   : > { %2780 = vmatpush.msrb.mxu3 %v6628_v28 }
 0x459   : > { %2851 = vmatpush.msra.mxu0 %v6629_v23  ;;  %2871 = vmatpush.msra.mxu1 %v6630_v4 }
 0x4b6   : > { %v2540_v8 = vpop.f32.mrf.mxu0 }
 0x4b7   : > { %v2564_v19 = vadd.f32 %v2540_v8, %v1057_v61 }
 0x4b9   : > { %v4180_v21 = vmul.f32 -1.442695, %v2564_v19 }
 0x4bb   : > { %4309 = vpow2.f32 %v4180_v21 }
 0x4bc   : > { %v2520_v3 = vpop.f32.mrf.mxu3 }
 0x4bd   : > { %v2563_v52 = vadd.f32 %v2520_v3, %v1037_v11  ;;  %v2560_v11 = vpop.f32.mrf.mxu1 }
 0x4bf   : > { %v4179_v0 = vmul.f32 -1.442695, %v2563_v52 }
 0x4c1   : > { %v4310_v6 = vpop.eup %4309  ;;  %4311 = vpow2.f32 %v4179_v0 }
 0x4c2   : > { %v2572_v7 = vadd.f32 1.0, %v4310_v6 }
 0x4c4   : > { %4313 = vrcp.f32 %v2572_v7  ;;  %v2599_v63 = vand.u32 2147483648, %v2572_v7  ;;  %vm2593_vm15 = vweird.f32 %v2572_v7 }
 0x4c6   : > { %v2600_v1 = vor.u32 1.1754944e-38, %v2599_v63  ;;  %v6641_v63 = vld [vmem:[#allocation16_spill] sm:$0xff] }
 0x4c7   : > { %v4312_v23 = vpop.eup %4311 }
 0x4c8   : > { %v2571_v28 = vadd.f32 1.0, %v4312_v23  ;;  %v5731_v23 = vld [vmem:[%s6452_s5] ss:$0 sm:$0xff] }
 0x4c9   : > { %v2603_v0 = vadd.f32 %v5731_v23, %v2560_v11 }
 0x4ca   : > { %4315 = vrcp.f32 %v2571_v28  ;;  %v4314_v4 = vpop.eup %4313  ;;  %v2584_v19 = vand.u32 2147483648, %v2571_v28  ;;  %v2582_v21 = vand.u32 2147483647, %v2571_v28  ;;  %vm2578_vm11 = vweird.f32 %v2571_v28 }
 0x4cb   : > { %v2589_v14 = vmul.f32 %v4314_v4, %v2572_v7  ;;  %vm2594_vm14 = vweird.f32 %v4314_v4 }
 0x4cc   : > { %v2585_v52 = vor.u32 1.1754944e-38, %v2584_v19  ;;  %vm2583_vm13 = vcmp.eq.f32.partialorder %v2582_v21, 8.507059e+37  ;;  %vm2595_vm0 = vmor %vm2593_vm15, %vm2594_vm14 }
 0x4cd   : > { %v2590_v61 = vsub.f32 1.0, %v2589_v14 }
 0x4cf   : > { %v2591_v49 = vmul.f32 %v4314_v4, %v2590_v61 }
 0x4d0   : > { %v4316_v55 = vpop.eup %4315 }
 0x4d1   : > { %v2574_v18 = vmul.f32 %v4316_v55, %v2571_v28  ;;  %vm2579_vm10 = vweird.f32 %v4316_v55  ;;  %v2597_v28 = vand.u32 2147483647, %v2572_v7  ;;  %v6642_v7 = vld [vmem:[#allocation18_spill] sm:$0xff] }
 0x4d2   : > { %vm2580_vm12 = vmor %vm2578_vm11, %vm2579_vm10 }
 0x4d3   : > { %v2575_v8 = vsub.f32 1.0, %v2574_v18  ;;  %v2592_v18 = vadd.f32 %v4314_v4, %v2591_v49  ;;  %vm2598_vm1 = vcmp.eq.f32.partialorder %v2597_v28, 8.507059e+37 }
 0x4d5   : > { %v2576_v9 = vmul.f32 %v4316_v55, %v2575_v8  ;;  %v6635_v8 = vld [vmem:[#allocation29_spill] sm:$0xff]  ;;  %v2596_v62 = vsel %vm2595_vm0, %v4314_v4, %v2592_v18  ;;  %v6640_v4 = vld [vmem:[#allocation15_spill] sm:$0xff]  ;;  %v6646_v18 = vld [vmem:[#allocation52_spill] sm:$0xff] }
 0x4d6   : > { %v1077_v61 = vadd.f32 %v6635_v8, %v5298_v59  ;;  %v2601_v57 = vsel %vm2598_vm1, %v2600_v1, %v2596_v62  ;;  %v6638_v1 = vld [vmem:[#allocation13_spill] sm:$0xff]  ;;  %v6639_v62 = vld [vmem:[#allocation12_spill] sm:$0xff]  ;;  %v6647_v8 = vld [vmem:[#allocation58_spill] sm:$0xff] }
 0x4d7   : > { %v2577_v3 = vadd.f32 %v4316_v55, %v2576_v9  ;;  %v2607_v11 = vsub.f32 1.0, %v2601_v57  ;;  %v2609_v49 = vmul.f32 %v2601_v57, %v5671_v27  ;;  %v6636_v27 = vld [vmem:[#allocation20_spill] sm:$0xff]  ;;  %v6637_v57 = vld [vmem:[#allocation21_spill] sm:$0xff] }
 0x4d9   : > { %v2581_v6 = vsel %vm2580_vm12, %v4316_v55, %v2577_v3 }
 0x4da   : > { %v2586_v14 = vsel %vm2583_vm13, %v2585_v52, %v2581_v6  ;;  %v6643_v52 = vld [vmem:[#allocation19_spill] sm:$0xff]  ;;  %v6645_v6 = vld [vmem:[#allocation34_spill] sm:$0xff] }
 0x4db   : > { %v2604_v9 = vmul.f32 %v2603_v0, %v2586_v14  ;;  %v6644_v0 = vld [vmem:[#allocation49_spill] sm:$0xff] }
 0x4dc   : > { %v1118_v14 = vadd.f32 %v6645_v6, %v6644_v0 }
 0x4dd   : > { %v2605_v19 = vadd.f32 %v2604_v9, %v1077_v61  ;;  %v1138_v61 = vadd.f32 %v6647_v8, %v6646_v18 }
 0x4df   : > { %4317 = vtanh.f32 %v2605_v19 }
 0x4e5   : > { %v4318_v55 = vpop.eup %4317 }
 0x4e6   : > { %v2608_v21 = vmul.f32 %v4318_v55, %v2607_v11 }
 0x4e8   : > { %v5737_v3 = vadd.f32 %v2609_v49, %v2608_v21 }
 0x4ea   : > { %2630 = vmatmul.f32.vlgmr.msra.gmra.mxu2 %v5737_v3  ;;  %2650 = vmatmul.f32.vlgmr.msra.gmra.mxu3 %v5737_v3 }
 0x4eb   : > { %2670 = vmatmul.f32.vlgmr.msrb.gmra.mxu0 %v5737_v3  ;;  %2876 = vmatpush.msra.mxu2 %v5458_v2 }
 0x4ec   : > { %2947 = vmatpush.msra.mxu3 %v5461_v12  ;;  %2967 = vmatpush.msrb.mxu0 %v5464_v22 }
 0x4ed   : > { %2877 = vmatpush.msra.mxu2 %v5467_v13 }
 0x4ee   : > { %2948 = vmatpush.msra.mxu3 %v5470_v10  ;;  %2968 = vmatpush.msrb.mxu0 %v5473_v15 }
 0x4ef   : > { %2878 = vmatpush.msra.mxu2 %v5476_v16 }
 0x4f0   : > { %2949 = vmatpush.msra.mxu3 %v5479_v17  ;;  %2969 = vmatpush.msrb.mxu0 %v5482_v20 }
 0x4f1   : > { %2879 = vmatpush.msra.mxu2 %v5485_v25 }
 0x4f2   : > { %2950 = vmatpush.msra.mxu3 %v5488_v26  ;;  %2970 = vmatpush.msrb.mxu0 %v5491_v29 }
 0x4f3   : > { %2880 = vmatpush.msra.mxu2 %v5494_v30 }
 0x4f4   : > { %2951 = vmatpush.msra.mxu3 %v5497_v31  ;;  %2971 = vmatpush.msrb.mxu0 %v5500_v32 }
 0x4f5   : > { %2881 = vmatpush.msra.mxu2 %v5503_v33 }
 0x4f6   : > { %2952 = vmatpush.msra.mxu3 %v5506_v34  ;;  %2972 = vmatpush.msrb.mxu0 %v5509_v35 }
 0x4f7   : > { %2882 = vmatpush.msra.mxu2 %v5512_v36 }
 0x4f8   : > { %2953 = vmatpush.msra.mxu3 %v5515_v37  ;;  %2973 = vmatpush.msrb.mxu0 %v5518_v38 }
 0x4f9   : > { %2883 = vmatpush.msra.mxu2 %v5521_v39 }
 0x4fa   : > { %2954 = vmatpush.msra.mxu3 %v5524_v40  ;;  %2974 = vmatpush.msrb.mxu0 %v5527_v41 }
 0x4fb   : > { %2884 = vmatpush.msra.mxu2 %v5530_v42 }
 0x4fc   : > { %2955 = vmatpush.msra.mxu3 %v5533_v43  ;;  %2975 = vmatpush.msrb.mxu0 %v5536_v44 }
 0x4fd   : > { %2885 = vmatpush.msra.mxu2 %v5539_v45 }
 0x4fe   : > { %2956 = vmatpush.msra.mxu3 %v5542_v46  ;;  %2976 = vmatpush.msrb.mxu0 %v5545_v47 }
 0x4ff   : > { %2886 = vmatpush.msra.mxu2 %v5548_v48 }
 0x500   : > { %2957 = vmatpush.msra.mxu3 %v5551_v50  ;;  %2977 = vmatpush.msrb.mxu0 %v5554_v51 }
 0x501   : > { %2887 = vmatpush.msra.mxu2 %v5636_v24 }
 0x502   : > { %2958 = vmatpush.msra.mxu3 %v5558_v53  ;;  %2978 = vmatpush.msrb.mxu0 %v5561_v54 }
 0x503   : > { %2888 = vmatpush.msra.mxu2 %v5641_v5 }
 0x504   : > { %2959 = vmatpush.msra.mxu3 %v5565_v56  ;;  %2979 = vmatpush.msrb.mxu0 %v5568_v58 }
 0x505   : > { %2889 = vmatpush.msra.mxu2 %v5646_v60 }
 0x506   : > { %2960 = vmatpush.msra.mxu3 %v6636_v27  ;;  %2980 = vmatpush.msrb.mxu0 %v6637_v57 }
 0x507   : > { %2890 = vmatpush.msra.mxu2 %v6638_v1 }
 0x508   : > { %2961 = vmatpush.msra.mxu3 %v6639_v62  ;;  %2981 = vmatpush.msrb.mxu0 %v6640_v4 }
 0x509   : > { %2891 = vmatpush.msra.mxu2 %v6641_v63 }
 0x50a   : > { %2962 = vmatpush.msra.mxu3 %v6642_v7  ;;  %2982 = vmatpush.msrb.mxu0 %v6643_v52 }
 0x56d   : > { %v2631_v9 = vpop.f32.mrf.mxu2  ;;  %v2651_v28 = vpop.f32.mrf.mxu3 }
 0x56e   : > { %v2674_v19 = vadd.f32 %v2631_v9, %v1118_v14  ;;  %v2675_v11 = vadd.f32 %v2651_v28, %v1138_v61  ;;  %v2671_v61 = vpop.f32.mrf.mxu0 }
 0x570   : > { %v4181_v55 = vmul.f32 -1.442695, %v2674_v19  ;;  %v4182_v21 = vmul.f32 -1.442695, %v2675_v11 }
 0x572   : > { %4319 = vpow2.f32 %v4181_v55 }
 0x573   : > { %4321 = vpow2.f32 %v4182_v21 }
 0x578   : > { %v4320_v49 = vpop.eup %4319 }
 0x579   : > { %v4322_v63 = vpop.eup %4321  ;;  %v2682_v4 = vadd.f32 1.0, %v4320_v49  ;;  %v6648_v49 = vld [vmem:[#allocation30_spill] sm:$0xff] }
 0x57a   : > { %v2683_v7 = vadd.f32 1.0, %v4322_v63  ;;  %v2714_v63 = vadd.f32 %v5731_v23, %v2671_v61 }
 0x57b   : > { %4323 = vrcp.f32 %v2682_v4  ;;  %v2695_v8 = vand.u32 2147483648, %v2682_v4  ;;  %v2693_v14 = vand.u32 2147483647, %v2682_v4  ;;  %vm2689_vm3 = vweird.f32 %v2682_v4 }
 0x57c   : > { %4325 = vrcp.f32 %v2683_v7  ;;  %vm2704_vm7 = vweird.f32 %v2683_v7  ;;  %v2708_v27 = vand.u32 2147483647, %v2683_v7 }
 0x57d   : > { %v2696_v19 = vor.u32 1.1754944e-38, %v2695_v8  ;;  %vm2694_vm5 = vcmp.eq.f32.partialorder %v2693_v14, 8.507059e+37 }
 0x57e   : > { %vm2709_vm9 = vcmp.eq.f32.partialorder %v2708_v27, 8.507059e+37  ;;  %v6661_v27 = vld [vmem:[#allocation59_spill] sm:$0xff] }
 0x581   : > { %v4324_v52 = vpop.eup %4323 }
 0x582   : > { %v4326_v62 = vpop.eup %4325  ;;  %v2685_v6 = vmul.f32 %v4324_v52, %v2682_v4  ;;  %vm2690_vm2 = vweird.f32 %v4324_v52 }
 0x583   : > { %v2700_v0 = vmul.f32 %v4326_v62, %v2683_v7  ;;  %vm2691_vm4 = vmor %vm2689_vm3, %vm2690_vm2  ;;  %vm2705_vm6 = vweird.f32 %v4326_v62 }
 0x584   : > { %v2686_v1 = vsub.f32 1.0, %v2685_v6  ;;  %v1158_v6 = vadd.f32 %v6648_v49, %v5298_v59  ;;  %vm2706_vm8 = vmor %vm2704_vm7, %vm2705_vm6 }
 0x585   : > { %v2701_v18 = vsub.f32 1.0, %v2700_v0  ;;  %v2710_v0 = vand.u32 2147483648, %v2683_v7 }
 0x586   : > { %v2687_v57 = vmul.f32 %v4324_v52, %v2686_v1 }
 0x587   : > { %v2702_v9 = vmul.f32 %v4326_v62, %v2701_v18  ;;  %v2711_v4 = vor.u32 1.1754944e-38, %v2710_v0 }
 0x588   : > { %v2688_v28 = vadd.f32 %v4324_v52, %v2687_v57 }
 0x589   : > { %v2703_v21 = vadd.f32 %v4326_v62, %v2702_v9 }
 0x58a   : > { %v2692_v11 = vsel %vm2691_vm4, %v4324_v52, %v2688_v28 }
 0x58b   : > { %v2697_v55 = vsel %vm2694_vm5, %v2696_v19, %v2692_v11  ;;  %v2707_v57 = vsel %vm2706_vm8, %v4326_v62, %v2703_v21  ;;  %v1239_v62 = vadd.f32 %v6661_v27, %v5298_v59  ;;  %v5981_v27 = vld [vmem:[#allocation4 + $0x38] sm:$0xff] }
 0x58c   : > { %v2715_v1 = vmul.f32 %v2714_v63, %v2697_v55  ;;  %v2712_v8 = vsel %vm2709_vm9, %v2711_v4, %v2707_v57  ;;  %6663 = vst [vmem:[#allocation17_spill] sm:$0xff] %v5981_v27 }
 0x58d   : > { %v2718_v61 = vsub.f32 1.0, %v2712_v8  ;;  %v2720_v9 = vmul.f32 %v2712_v8, %v5737_v3 }
 0x58e   : > { %v2716_v18 = vadd.f32 %v2715_v1, %v1158_v6 }
 0x590   : > { %4327 = vtanh.f32 %v2716_v18 }
 0x596   : > { %v4328_v52 = vpop.eup %4327 }
 0x597   : > { %v2719_v14 = vmul.f32 %v4328_v52, %v2718_v61  ;;  %v5864_v52 = vld [vmem:[#allocation4 + $0x178] sm:$0xff] }
 0x599   : > { %v5798_v28 = vadd.f32 %v2720_v9, %v2719_v14  ;;  %v5867_v14 = vld [vmem:[#allocation4 + $0x168] sm:$0xff]  ;;  %v5870_v9 = vld [vmem:[#allocation4 + $0x170] sm:$0xff] }
 0x59b   : > { %2741 = vmatmul.f32.vlgmr.msrb.gmra.mxu1 %v5798_v28  ;;  %2761 = vmatmul.f32.vlgmr.msrb.gmra.mxu2 %v5798_v28 }
 0x59c   : > { %2781 = vmatmul.f32.vlgmr.msrb.gmra.mxu3 %v5798_v28  ;;  %2987 = vmatpush.msrb.mxu1 %v5458_v2  ;;  %v6649_v2 = vld [vmem:[#allocation20_spill] sm:$0xff] }
 0x59d   : > { %3058 = vmatpush.msrb.mxu2 %v5461_v12  ;;  %3078 = vmatpush.msrb.mxu3 %v5464_v22  ;;  %v6650_v12 = vld [vmem:[#allocation21_spill] sm:$0xff] }
 0x59e   : > { %2988 = vmatpush.msrb.mxu1 %v5467_v13  ;;  %v6651_v22 = vld [vmem:[#allocation13_spill] sm:$0xff]  ;;  %v6652_v13 = vld [vmem:[#allocation12_spill] sm:$0xff] }
 0x59f   : > { %3059 = vmatpush.msrb.mxu2 %v5470_v10  ;;  %3079 = vmatpush.msrb.mxu3 %v5473_v15  ;;  %v6653_v10 = vld [vmem:[#allocation15_spill] sm:$0xff]  ;;  %v6654_v15 = vld [vmem:[#allocation16_spill] sm:$0xff] }
 0x5a0   : > { %2989 = vmatpush.msrb.mxu1 %v5476_v16  ;;  %v6655_v16 = vld [vmem:[#allocation18_spill] sm:$0xff] }
 0x5a1   : > { %3060 = vmatpush.msrb.mxu2 %v5479_v17  ;;  %3080 = vmatpush.msrb.mxu3 %v5482_v20  ;;  %v6656_v17 = vld [vmem:[#allocation19_spill] sm:$0xff]  ;;  %v6657_v20 = vld [vmem:[#allocation49_spill] sm:$0xff] }
 0x5a2   : > { %2990 = vmatpush.msrb.mxu1 %v5485_v25  ;;  %v6658_v25 = vld [vmem:[#allocation32_spill] sm:$0xff] }
 0x5a3   : > { %3061 = vmatpush.msrb.mxu2 %v5488_v26  ;;  %3081 = vmatpush.msrb.mxu3 %v5491_v29  ;;  %v1199_v26 = vadd.f32 %v6658_v25, %v6657_v20  ;;  %v5891_v25 = vld [vmem:[#allocation4 + $0x130] sm:$0xff] }
 0x5a4   : > { %2991 = vmatpush.msrb.mxu1 %v5494_v30 }
 0x5a5   : > { %3062 = vmatpush.msrb.mxu2 %v5497_v31  ;;  %3082 = vmatpush.msrb.mxu3 %v5500_v32  ;;  %v6659_v32 = vld [vmem:[#allocation52_spill] sm:$0xff] }
 0x5a6   : > { %2992 = vmatpush.msrb.mxu1 %v5503_v33  ;;  %v6660_v33 = vld [vmem:[#allocation37_spill] sm:$0xff] }
 0x5a7   : > { %3063 = vmatpush.msrb.mxu2 %v5506_v34  ;;  %3083 = vmatpush.msrb.mxu3 %v5509_v35  ;;  %v1219_v34 = vadd.f32 %v6660_v33, %v6659_v32  ;;  %v5906_v33 = vld [vmem:[#allocation4 + $0x110] sm:$0xff] }
 0x5a8   : > { %2993 = vmatpush.msrb.mxu1 %v5512_v36 }
 0x5a9   : > { %3064 = vmatpush.msrb.mxu2 %v5515_v37  ;;  %3084 = vmatpush.msrb.mxu3 %v5518_v38 }
 0x5aa   : > { %2994 = vmatpush.msrb.mxu1 %v5521_v39 }
 0x5ab   : > { %3065 = vmatpush.msrb.mxu2 %v5524_v40  ;;  %3085 = vmatpush.msrb.mxu3 %v5527_v41 }
 0x5ac   : > { %2995 = vmatpush.msrb.mxu1 %v5530_v42 }
 0x5ad   : > { %3066 = vmatpush.msrb.mxu2 %v5533_v43  ;;  %3086 = vmatpush.msrb.mxu3 %v5536_v44 }
 0x5ae   : > { %2996 = vmatpush.msrb.mxu1 %v5539_v45 }
 0x5af   : > { %3067 = vmatpush.msrb.mxu2 %v5542_v46  ;;  %3087 = vmatpush.msrb.mxu3 %v5545_v47 }
 0x5b0   : > { %2997 = vmatpush.msrb.mxu1 %v5548_v48 }
 0x5b1   : > { %3068 = vmatpush.msrb.mxu2 %v5551_v50  ;;  %3088 = vmatpush.msrb.mxu3 %v5554_v51 }
 0x5b2   : > { %2998 = vmatpush.msrb.mxu1 %v5636_v24 }
 0x5b3   : > { %3069 = vmatpush.msrb.mxu2 %v5558_v53  ;;  %3089 = vmatpush.msrb.mxu3 %v5561_v54 }
 0x5b4   : > { %2999 = vmatpush.msrb.mxu1 %v5641_v5 }
 0x5b5   : > { %3070 = vmatpush.msrb.mxu2 %v5565_v56  ;;  %3090 = vmatpush.msrb.mxu3 %v5568_v58 }
 0x5b6   : > { %3000 = vmatpush.msrb.mxu1 %v5646_v60 }
 0x5b7   : > { %3071 = vmatpush.msrb.mxu2 %v6649_v2  ;;  %3091 = vmatpush.msrb.mxu3 %v6650_v12  ;;  %v5876_v2 = vld [vmem:[#allocation4 + $0x150] sm:$0xff]  ;;  %v5879_v12 = vld [vmem:[#allocation4 + $0x158] sm:$0xff] }
 0x5b8   : > { %3001 = vmatpush.msrb.mxu1 %v6651_v22 }
 0x5b9   : > { %3072 = vmatpush.msrb.mxu2 %v6652_v13  ;;  %3092 = vmatpush.msrb.mxu3 %v6653_v10  ;;  %v5882_v13 = vld [vmem:[#allocation4 + $0x148] sm:$0xff]  ;;  %v5885_v10 = vld [vmem:[#allocation4 + $0x138] sm:$0xff] }
 0x5ba   : > { %3002 = vmatpush.msrb.mxu1 %v6654_v15 }
 0x5bb   : > { %3073 = vmatpush.msrb.mxu2 %v6655_v16  ;;  %3093 = vmatpush.msrb.mxu3 %v6656_v17  ;;  %v5888_v16 = vld [vmem:[#allocation4 + $0x140] sm:$0xff] }
 0x618   : > { %v2742_v29 = vpop.f32.mrf.mxu1 }
 0x619   : > { %v2785_v30 = vadd.f32 %v2742_v29, %v1199_v26  ;;  %v5894_v26 = vld [vmem:[#allocation4 + $0x120] sm:$0xff]  ;;  %v5897_v29 = vld [vmem:[#allocation4 + $0x128] sm:$0xff] }
 0x61b   : > { %v4183_v31 = vmul.f32 -1.442695, %v2785_v30  ;;  %v5900_v30 = vld [vmem:[#allocation4 + $0x118] sm:$0xff] }
 0x61d   : > { %4329 = vpow2.f32 %v4183_v31  ;;  %v5903_v31 = vld [vmem:[#allocation4 + $0x108] sm:$0xff] }
 0x61e   : > { %v2762_v35 = vpop.f32.mrf.mxu2 }
 0x61f   : > { %v2786_v36 = vadd.f32 %v2762_v35, %v1219_v34  ;;  %v2782_v50 = vpop.f32.mrf.mxu3  ;;  %v5909_v34 = vld [vmem:[#allocation4 + $0x100] sm:$0xff]  ;;  %v5912_v35 = vld [vmem:[#allocation4 + $0xf0] sm:$0xff] }
 0x620   : > { %v2825_v3 = vadd.f32 %v5731_v23, %v2782_v50  ;;  %v5954_v50 = vld [vmem:[#allocation4 + $0x88] sm:$0xff] }
 0x621   : > { %v4184_v37 = vmul.f32 -1.442695, %v2786_v36  ;;  %v5915_v36 = vld [vmem:[#allocation4 + $0xf8] sm:$0xff] }
 0x623   : > { %v4330_v38 = vpop.eup %4329  ;;  %4331 = vpow2.f32 %v4184_v37  ;;  %v5918_v37 = vld [vmem:[#allocation4 + $0xe8] sm:$0xff] }
 0x624   : > { %v2793_v39 = vadd.f32 1.0, %v4330_v38  ;;  %v5921_v38 = vld [vmem:[#allocation4 + $0xd8] sm:$0xff] }
 0x626   : > { %4333 = vrcp.f32 %v2793_v39  ;;  %v2806_v45 = vand.u32 2147483648, %v2793_v39  ;;  %v2804_v47 = vand.u32 2147483647, %v2793_v39  ;;  %vm2800_vm11 = vweird.f32 %v2793_v39 }
 0x628   : > { %v2807_v54 = vor.u32 1.1754944e-38, %v2806_v45  ;;  %vm2805_vm13 = vcmp.eq.f32.partialorder %v2804_v47, 8.507059e+37  ;;  %v5942_v45 = vld [vmem:[#allocation4 + $0xb0] sm:$0xff] }
 0x629   : > { %v4332_v40 = vpop.eup %4331  ;;  %v5948_v47 = vld [vmem:[#allocation4 + $0x90] sm:$0xff] }
 0x62a   : > { %v2794_v41 = vadd.f32 1.0, %v4332_v40  ;;  %v5927_v40 = vld [vmem:[#allocation4 + $0xd0] sm:$0xff] }
 0x62c   : > { %v4334_v42 = vpop.eup %4333  ;;  %4335 = vrcp.f32 %v2794_v41  ;;  %v2821_v11 = vand.u32 2147483648, %v2794_v41  ;;  %v2819_v55 = vand.u32 2147483647, %v2794_v41  ;;  %vm2815_vm15 = vweird.f32 %v2794_v41 }
 0x62d   : > { %v2796_v43 = vmul.f32 %v4334_v42, %v2793_v39  ;;  %vm2801_vm10 = vweird.f32 %v4334_v42  ;;  %v5924_v39 = vld [vmem:[#allocation4 + $0xe0] sm:$0xff] }
 0x62e   : > { %vm2802_vm12 = vmor %vm2800_vm11, %vm2801_vm10  ;;  %v2822_v0 = vor.u32 1.1754944e-38, %v2821_v11  ;;  %vm2820_vm1 = vcmp.eq.f32.partialorder %v2819_v55, 8.507059e+37 }
 0x62f   : > { %v2797_v44 = vsub.f32 1.0, %v2796_v43  ;;  %v5936_v43 = vld [vmem:[#allocation4 + $0xb8] sm:$0xff] }
 0x631   : > { %v2798_v46 = vmul.f32 %v4334_v42, %v2797_v44  ;;  %v5939_v44 = vld [vmem:[#allocation4 + $0xa8] sm:$0xff] }
 0x632   : > { %v4336_v48 = vpop.eup %4335 }
 0x633   : > { %v2811_v51 = vmul.f32 %v4336_v48, %v2794_v41  ;;  %v2799_v53 = vadd.f32 %v4334_v42, %v2798_v46  ;;  %vm2816_vm14 = vweird.f32 %v4336_v48  ;;  %v5930_v41 = vld [vmem:[#allocation4 + $0xc0] sm:$0xff] }
 0x634   : > { %vm2817_vm0 = vmor %vm2815_vm15, %vm2816_vm14  ;;  %v5945_v46 = vld [vmem:[#allocation4 + $0xa0] sm:$0xff] }
 0x635   : > { %v2812_v56 = vsub.f32 1.0, %v2811_v51  ;;  %v2803_v58 = vsel %vm2802_vm12, %v4334_v42, %v2799_v53  ;;  %v5933_v42 = vld [vmem:[#allocation4 + $0xc8] sm:$0xff]  ;;  %v5957_v51 = vld [vmem:[#allocation4 + $0x78] sm:$0xff]  ;;  %v5960_v53 = vld [vmem:[#allocation4 + $0x80] sm:$0xff] }
 0x636   : > { %v2808_v7 = vsel %vm2805_vm13, %v2807_v54, %v2803_v58  ;;  %v5964_v54 = vld [vmem:[#allocation4 + $0x60] sm:$0xff]  ;;  %v5971_v58 = vld [vmem:[#allocation4 + $0x48] sm:$0xff] }
 0x637   : > { %v2813_v19 = vmul.f32 %v4336_v48, %v2812_v56  ;;  %v2826_v63 = vmul.f32 %v2825_v3, %v2808_v7  ;;  %v5967_v56 = vld [vmem:[#allocation4 + $0x68] sm:$0xff]  ;;  %v5974_v3 = vld [vmem:[#allocation4 + $0x50] sm:$0xff] }
 0x638   : > { %v6667_v7 = vld [vmem:[#allocation33_spill] sm:$0xff] }
 0x639   : > { %v2827_v21 = vadd.f32 %v2826_v63, %v1239_v62  ;;  %v2814_v49 = vadd.f32 %v4336_v48, %v2813_v19  ;;  %v5988_v62 = vld [vmem:[#allocation4 + $0x20] sm:$0xff]  ;;  %v1280_v19 = vadd.f32 %v6667_v7, %v6657_v20 }
 0x63a   : > { %6665 = vst [vmem:[#allocation55_spill] sm:$0xff] %v5988_v62 }
 0x63b   : > { %4337 = vtanh.f32 %v2827_v21  ;;  %v2818_v6 = vsel %vm2817_vm0, %v4336_v48, %v2814_v49  ;;  %v5951_v48 = vld [vmem:[#allocation4 + $0x98] sm:$0xff] }
 0x63c   : > { %v2823_v1 = vsel %vm2820_vm1, %v2822_v0, %v2818_v6 }
 0x63d   : > { %v2829_v18 = vsub.f32 1.0, %v2823_v1  ;;  %v2831_v8 = vmul.f32 %v2823_v1, %v5798_v28  ;;  %v5873_v28 = vld [vmem:[#allocation4 + $0x160] sm:$0xff] }
 0x641   : > { %v4338_v57 = vpop.eup %4337 }
 0x642   : > { %v2830_v4 = vmul.f32 %v4338_v57, %v2829_v18 }
 0x644   : > { %v5859_v61 = vadd.f32 %v2831_v8, %v2830_v4 }
 0x646   : > { %2852 = vmatmul.f32.vlgmr.msra.gmra.mxu0 %v5859_v61  ;;  %2872 = vmatmul.f32.vlgmr.msra.gmra.mxu1 %v5859_v61 }
 0x647   : > { %2892 = vmatmul.f32.vlgmr.msra.gmra.mxu2 %v5859_v61  ;;  %3098 = vmatpush.msra.mxu0 %v5864_v52 }
 0x648   : > { %3169 = vmatpush.msra.mxu1 %v5867_v14  ;;  %3189 = vmatpush.msra.mxu2 %v5870_v9 }
 0x649   : > { %3099 = vmatpush.msra.mxu0 %v5873_v28 }
 0x64a   : > { %3170 = vmatpush.msra.mxu1 %v5876_v2  ;;  %3190 = vmatpush.msra.mxu2 %v5879_v12 }
 0x64b   : > { %3100 = vmatpush.msra.mxu0 %v5882_v13 }
 0x64c   : > { %3171 = vmatpush.msra.mxu1 %v5885_v10  ;;  %3191 = vmatpush.msra.mxu2 %v5888_v16 }
 0x64d   : > { %3101 = vmatpush.msra.mxu0 %v5891_v25 }
 0x64e   : > { %3172 = vmatpush.msra.mxu1 %v5894_v26  ;;  %3192 = vmatpush.msra.mxu2 %v5897_v29 }
 0x64f   : > { %3102 = vmatpush.msra.mxu0 %v5900_v30 }
 0x650   : > { %3173 = vmatpush.msra.mxu1 %v5903_v31  ;;  %3193 = vmatpush.msra.mxu2 %v5906_v33 }
 0x651   : > { %3103 = vmatpush.msra.mxu0 %v5909_v34 }
 0x652   : > { %3174 = vmatpush.msra.mxu1 %v5912_v35  ;;  %3194 = vmatpush.msra.mxu2 %v5915_v36 }
 0x653   : > { %3104 = vmatpush.msra.mxu0 %v5918_v37 }
 0x654   : > { %3175 = vmatpush.msra.mxu1 %v5921_v38  ;;  %3195 = vmatpush.msra.mxu2 %v5924_v39 }
 0x655   : > { %3105 = vmatpush.msra.mxu0 %v5927_v40 }
 0x656   : > { %3176 = vmatpush.msra.mxu1 %v5930_v41  ;;  %3196 = vmatpush.msra.mxu2 %v5933_v42 }
 0x657   : > { %3106 = vmatpush.msra.mxu0 %v5936_v43 }
 0x658   : > { %3177 = vmatpush.msra.mxu1 %v5939_v44  ;;  %3197 = vmatpush.msra.mxu2 %v5942_v45 }
 0x659   : > { %3107 = vmatpush.msra.mxu0 %v5945_v46 }
 0x65a   : > { %3178 = vmatpush.msra.mxu1 %v5948_v47  ;;  %3198 = vmatpush.msra.mxu2 %v5951_v48 }
 0x65b   : > { %3108 = vmatpush.msra.mxu0 %v5954_v50 }
 0x65c   : > { %3179 = vmatpush.msra.mxu1 %v5957_v51  ;;  %3199 = vmatpush.msra.mxu2 %v5960_v53 }
 0x65d   : > { %3109 = vmatpush.msra.mxu0 %v5636_v24  ;;  %v5978_v24 = vld [vmem:[#allocation4 + $0x30] sm:$0xff] }
 0x65e   : > { %3180 = vmatpush.msra.mxu1 %v5964_v54  ;;  %3200 = vmatpush.msra.mxu2 %v5967_v56  ;;  %6662 = vst [vmem:[#allocation14_spill] sm:$0xff] %v5978_v24 }
 0x65f   : > { %3110 = vmatpush.msra.mxu0 %v5641_v5  ;;  %v5985_v5 = vld [vmem:[#allocation4 + $0x18] sm:$0xff] }
 0x660   : > { %3181 = vmatpush.msra.mxu1 %v5971_v58  ;;  %3201 = vmatpush.msra.mxu2 %v5974_v3  ;;  %6664 = vst [vmem:[#allocation25_spill] sm:$0xff] %v5985_v5 }
 0x661   : > { %3111 = vmatpush.msra.mxu0 %v5646_v60  ;;  %v5992_v60 = vld [vmem:[#allocation4] sm:$0xff] }
 0x662   : > { %3182 = vmatpush.msra.mxu1 %v5978_v24  ;;  %3202 = vmatpush.msra.mxu2 %v5981_v27  ;;  %6666 = vst [vmem:[#allocation22_spill] sm:$0xff] %v5992_v60 }
 0x663   : > { %3112 = vmatpush.msra.mxu0 %v6651_v22  ;;  %v6668_v22 = vld [vmem:[#allocation35_spill] sm:$0xff] }
 0x664   : > { %3183 = vmatpush.msra.mxu1 %v5985_v5  ;;  %3203 = vmatpush.msra.mxu2 %v5988_v62  ;;  %v1300_v63 = vadd.f32 %v6668_v22, %v6659_v32 }
 0x665   : > { %3113 = vmatpush.msra.mxu0 %v6654_v15 }
 0x666   : > { %3184 = vmatpush.msra.mxu1 %v5992_v60  ;;  %3204 = vmatpush.msra.mxu2 %v6656_v17 }
 0x6c3   : > { %v2853_v11 = vpop.f32.mrf.mxu0  ;;  %v2873_v55 = vpop.f32.mrf.mxu1 }
 0x6c4   : > { %v2896_v21 = vadd.f32 %v2853_v11, %v1280_v19  ;;  %v2897_v49 = vadd.f32 %v2873_v55, %v1300_v63 }
 0x6c6   : > { %v4185_v6 = vmul.f32 -1.442695, %v2896_v21  ;;  %v4186_v0 = vmul.f32 -1.442695, %v2897_v49 }
 0x6c8   : > { %4339 = vpow2.f32 %v4185_v6 }
 0x6c9   : > { %4341 = vpow2.f32 %v4186_v0 }
 0x6ca   : > { %v2893_v11 = vpop.f32.mrf.mxu2 }
 0x6cb   : > { %v2936_v6 = vadd.f32 %v5731_v23, %v2893_v11 }
 0x6ce   : > { %v4340_v15 = vpop.eup %4339 }
 0x6cf   : > { %v4342_v1 = vpop.eup %4341  ;;  %v2904_v18 = vadd.f32 1.0, %v4340_v15 }
 0x6d0   : > { %v2905_v57 = vadd.f32 1.0, %v4342_v1  ;;  %v6669_v1 = vld [vmem:[#allocation40_spill] sm:$0xff] }
 0x6d1   : > { %4343 = vrcp.f32 %v2904_v18  ;;  %v2917_v32 = vand.u32 2147483648, %v2904_v18  ;;  %v2915_v19 = vand.u32 2147483647, %v2904_v18  ;;  %vm2911_vm3 = vweird.f32 %v2904_v18 }
 0x6d2   : > { %4345 = vrcp.f32 %v2905_v57  ;;  %vm2926_vm7 = vweird.f32 %v2905_v57  ;;  %v2930_v62 = vand.u32 2147483647, %v2905_v57 }
 0x6d3   : > { %v2918_v21 = vor.u32 1.1754944e-38, %v2917_v32  ;;  %vm2916_vm5 = vcmp.eq.f32.partialorder %v2915_v19, 8.507059e+37 }
 0x6d4   : > { %vm2931_vm9 = vcmp.eq.f32.partialorder %v2930_v62, 8.507059e+37  ;;  %v6047_v62 = vld [vmem:[#allocation4 + $0x58] sm:$0xff] }
 0x6d7   : > { %v4344_v17 = vpop.eup %4343 }
 0x6d8   : > { %v4346_v4 = vpop.eup %4345  ;;  %v2907_v8 = vmul.f32 %v4344_v17, %v2904_v18  ;;  %vm2912_vm2 = vweird.f32 %v4344_v17 }
 0x6d9   : > { %v2922_v7 = vmul.f32 %v4346_v4, %v2905_v57  ;;  %vm2913_vm4 = vmor %vm2911_vm3, %vm2912_vm2  ;;  %vm2927_vm6 = vweird.f32 %v4346_v4 }
 0x6da   : > { %v2908_v20 = vsub.f32 1.0, %v2907_v8  ;;  %v1320_v8 = vadd.f32 %v6669_v1, %v5298_v59  ;;  %vm2928_vm8 = vmor %vm2926_vm7, %vm2927_vm6  ;;  %v6677_v1 = vld [vmem:[#allocation36_spill] sm:$0xff] }
 0x6db   : > { %v2923_v22 = vsub.f32 1.0, %v2922_v7 }
 0x6dc   : > { %v2909_v60 = vmul.f32 %v4344_v17, %v2908_v20  ;;  %v2932_v20 = vand.u32 2147483648, %v2905_v57  ;;  %v6052_v57 = vld [vmem:[#allocation4 + $0x40] sm:$0xff] }
 0x6dd   : > { %v2924_v63 = vmul.f32 %v4346_v4, %v2923_v22  ;;  %6670 = vst [vmem:[#allocation23_spill] sm:$0xff] %v6052_v57 }
 0x6de   : > { %v2910_v55 = vadd.f32 %v4344_v17, %v2909_v60  ;;  %v2933_v18 = vor.u32 1.1754944e-38, %v2932_v20 }
 0x6df   : > { %v2925_v15 = vadd.f32 %v4346_v4, %v2924_v63 }
 0x6e0   : > { %v2914_v49 = vsel %vm2913_vm4, %v4344_v17, %v2910_v55 }
 0x6e1   : > { %v2919_v0 = vsel %vm2916_vm5, %v2918_v21, %v2914_v49  ;;  %v2929_v60 = vsel %vm2928_vm8, %v4346_v4, %v2925_v15  ;;  %v6057_v4 = vld [vmem:[#allocation4 + $0x28] sm:$0xff]  ;;  %v6672_v21 = vld [vmem:[#allocation55_spill] sm:$0xff]  ;;  %v6062_v49 = vld [vmem:[#allocation4 + $0x10] sm:$0xff] }
 0x6e2   : > { %v2937_v7 = vmul.f32 %v2936_v6, %v2919_v0  ;;  %v2934_v32 = vsel %vm2931_vm9, %v2933_v18, %v2929_v60  ;;  %6671 = vst [vmem:[#allocation28_spill] sm:$0xff] %v6057_v4  ;;  %v6674_v6 = vld [vmem:[#allocation22_spill] sm:$0xff]  ;;  %v6066_v0 = vld [vmem:[#allocation4 + $0x8] sm:$0xff]  ;;  %v6676_v15 = vld [vmem:[#allocation52_spill] sm:$0xff] }
 0x6e3   : > { %v2940_v17 = vsub.f32 1.0, %v2934_v32  ;;  %v2942_v63 = vmul.f32 %v2934_v32, %v5859_v61  ;;  %v6042_v61 = vld [vmem:[#allocation4 + $0x70] sm:$0xff]  ;;  %6673 = vst [vmem:[#allocation56_spill] sm:$0xff] %v6062_v49  ;;  %v6678_v60 = vld [vmem:[#allocation49_spill] sm:$0xff]  ;;  %v6679_v18 = vld [vmem:[#allocation60_spill] sm:$0xff] }
 0x6e4   : > { %v2938_v22 = vadd.f32 %v2937_v7, %v1320_v8  ;;  %6675 = vst [vmem:[#allocation24_spill] sm:$0xff] %v6066_v0  ;;  %v1381_v8 = vadd.f32 %v6677_v1, %v6676_v15  ;;  %v1361_v32 = vadd.f32 %v6679_v18, %v6678_v60 }
 0x6e6   : > { %4347 = vtanh.f32 %v2938_v22 }
 0x6ec   : > { %v4348_v19 = vpop.eup %4347 }
 0x6ed   : > { %v2941_v11 = vmul.f32 %v4348_v19, %v2940_v17 }
 0x6ef   : > { %v6004_v55 = vadd.f32 %v2942_v63, %v2941_v11 }
 0x6f1   : > { %2963 = vmatmul.f32.vlgmr.msra.gmra.mxu3 %v6004_v55  ;;  %2983 = vmatmul.f32.vlgmr.msrb.gmra.mxu0 %v6004_v55 }
 0x6f2   : > { %3003 = vmatmul.f32.vlgmr.msrb.gmra.mxu1 %v6004_v55  ;;  %3209 = vmatpush.msra.mxu3 %v5864_v52 }
 0x6f3   : > { %3280 = vmatpush.msrb.mxu0 %v5867_v14  ;;  %3300 = vmatpush.msrb.mxu1 %v5870_v9 }
 0x6f4   : > { %3210 = vmatpush.msra.mxu3 %v5873_v28 }
 0x6f5   : > { %3281 = vmatpush.msrb.mxu0 %v5876_v2  ;;  %3301 = vmatpush.msrb.mxu1 %v5879_v12 }
 0x6f6   : > { %3211 = vmatpush.msra.mxu3 %v5882_v13 }
 0x6f7   : > { %3282 = vmatpush.msrb.mxu0 %v5885_v10  ;;  %3302 = vmatpush.msrb.mxu1 %v5888_v16 }
 0x6f8   : > { %3212 = vmatpush.msra.mxu3 %v5891_v25 }
 0x6f9   : > { %3283 = vmatpush.msrb.mxu0 %v5894_v26  ;;  %3303 = vmatpush.msrb.mxu1 %v5897_v29 }
 0x6fa   : > { %3213 = vmatpush.msra.mxu3 %v5900_v30 }
 0x6fb   : > { %3284 = vmatpush.msrb.mxu0 %v5903_v31  ;;  %3304 = vmatpush.msrb.mxu1 %v5906_v33 }
 0x6fc   : > { %3214 = vmatpush.msra.mxu3 %v5909_v34 }
 0x6fd   : > { %3285 = vmatpush.msrb.mxu0 %v5912_v35  ;;  %3305 = vmatpush.msrb.mxu1 %v5915_v36 }
 0x6fe   : > { %3215 = vmatpush.msra.mxu3 %v5918_v37 }
 0x6ff   : > { %3286 = vmatpush.msrb.mxu0 %v5921_v38  ;;  %3306 = vmatpush.msrb.mxu1 %v5924_v39 }
 0x700   : > { %3216 = vmatpush.msra.mxu3 %v5927_v40 }
 0x701   : > { %3287 = vmatpush.msrb.mxu0 %v5930_v41  ;;  %3307 = vmatpush.msrb.mxu1 %v5933_v42 }
 0x702   : > { %3217 = vmatpush.msra.mxu3 %v5936_v43 }
 0x703   : > { %3288 = vmatpush.msrb.mxu0 %v5939_v44  ;;  %3308 = vmatpush.msrb.mxu1 %v5942_v45 }
 0x704   : > { %3218 = vmatpush.msra.mxu3 %v5945_v46 }
 0x705   : > { %3289 = vmatpush.msrb.mxu0 %v5948_v47  ;;  %3309 = vmatpush.msrb.mxu1 %v5951_v48 }
 0x706   : > { %3219 = vmatpush.msra.mxu3 %v5954_v50 }
 0x707   : > { %3290 = vmatpush.msrb.mxu0 %v5957_v51  ;;  %3310 = vmatpush.msrb.mxu1 %v5960_v53 }
 0x708   : > { %3220 = vmatpush.msra.mxu3 %v6042_v61 }
 0x709   : > { %3291 = vmatpush.msrb.mxu0 %v5964_v54  ;;  %3311 = vmatpush.msrb.mxu1 %v5967_v56 }
 0x70a   : > { %3221 = vmatpush.msra.mxu3 %v6047_v62 }
 0x70b   : > { %3292 = vmatpush.msrb.mxu0 %v5971_v58  ;;  %3312 = vmatpush.msrb.mxu1 %v5974_v3 }
 0x70c   : > { %3222 = vmatpush.msra.mxu3 %v6052_v57 }
 0x70d   : > { %3293 = vmatpush.msrb.mxu0 %v5978_v24  ;;  %3313 = vmatpush.msrb.mxu1 %v5981_v27 }
 0x70e   : > { %3223 = vmatpush.msra.mxu3 %v6057_v4 }
 0x70f   : > { %3294 = vmatpush.msrb.mxu0 %v5985_v5  ;;  %3314 = vmatpush.msrb.mxu1 %v6672_v21 }
 0x710   : > { %3224 = vmatpush.msra.mxu3 %v6062_v49 }
 0x711   : > { %3295 = vmatpush.msrb.mxu0 %v6674_v6  ;;  %3315 = vmatpush.msrb.mxu1 %v6066_v0 }
 0x76e   : > { %v2984_v7 = vpop.f32.mrf.mxu0 }
 0x76f   : > { %v3008_v20 = vadd.f32 %v2984_v7, %v1381_v8 }
 0x771   : > { %v4188_v22 = vmul.f32 -1.442695, %v3008_v20 }
 0x773   : > { %4349 = vpow2.f32 %v4188_v22 }
 0x774   : > { %v2964_v17 = vpop.f32.mrf.mxu3 }
 0x775   : > { %v3007_v19 = vadd.f32 %v2964_v17, %v1361_v32  ;;  %v3004_v32 = vpop.f32.mrf.mxu1 }
 0x777   : > { %v4187_v11 = vmul.f32 -1.442695, %v3007_v19 }
 0x779   : > { %v4350_v63 = vpop.eup %4349  ;;  %4351 = vpow2.f32 %v4187_v11  ;;  %v3047_v11 = vadd.f32 %v5731_v23, %v3004_v32 }
 0x77a   : > { %v3016_v6 = vadd.f32 1.0, %v4350_v63 }
 0x77c   : > { %4353 = vrcp.f32 %v3016_v6  ;;  %v3043_v27 = vand.u32 2147483648, %v3016_v6  ;;  %vm3037_vm15 = vweird.f32 %v3016_v6  ;;  %v3041_v24 = vand.u32 2147483647, %v3016_v6 }
 0x77e   : > { %vm3042_vm1 = vcmp.eq.f32.partialorder %v3041_v24, 8.507059e+37  ;;  %v6681_v24 = vld [vmem:[#allocation14_spill] sm:$0xff] }
 0x77f   : > { %v4352_v49 = vpop.eup %4351 }
 0x780   : > { %v3015_v21 = vadd.f32 1.0, %v4352_v49 }
 0x782   : > { %4355 = vrcp.f32 %v3015_v21  ;;  %v4354_v0 = vpop.eup %4353  ;;  %v3028_v20 = vand.u32 2147483648, %v3015_v21  ;;  %v3026_v22 = vand.u32 2147483647, %v3015_v21  ;;  %vm3022_vm11 = vweird.f32 %v3015_v21 }
 0x783   : > { %v3033_v5 = vmul.f32 %v4354_v0, %v3016_v6  ;;  %vm3038_vm14 = vweird.f32 %v4354_v0  ;;  %v6684_v6 = vld [vmem:[#allocation25_spill] sm:$0xff] }
 0x784   : > { %v3029_v19 = vor.u32 1.1754944e-38, %v3028_v20  ;;  %vm3027_vm13 = vcmp.eq.f32.partialorder %v3026_v22, 8.507059e+37  ;;  %vm3039_vm0 = vmor %vm3037_vm15, %vm3038_vm14 }
 0x785   : > { %v3034_v8 = vsub.f32 1.0, %v3033_v5  ;;  %v6680_v5 = vld [vmem:[#allocation38_spill] sm:$0xff] }
 0x787   : > { %v3035_v18 = vmul.f32 %v4354_v0, %v3034_v8 }
 0x788   : > { %v4356_v1 = vpop.eup %4355 }
 0x789   : > { %v3018_v15 = vmul.f32 %v4356_v1, %v3015_v21  ;;  %vm3023_vm10 = vweird.f32 %v4356_v1  ;;  %v3036_v60 = vadd.f32 %v4354_v0, %v3035_v18  ;;  %v3044_v21 = vor.u32 1.1754944e-38, %v3043_v27  ;;  %v6682_v27 = vld [vmem:[#allocation17_spill] sm:$0xff] }
 0x78a   : > { %vm3024_vm12 = vmor %vm3022_vm11, %vm3023_vm10 }
 0x78b   : > { %v3019_v7 = vsub.f32 1.0, %v3018_v15  ;;  %v1401_v15 = vadd.f32 %v6680_v5, %v5298_v59  ;;  %v6691_v5 = vld [vmem:[#allocation52_spill] sm:$0xff] }
 0x78d   : > { %v3020_v4 = vmul.f32 %v4356_v1, %v3019_v7 }
 0x78f   : > { %v3021_v17 = vadd.f32 %v4356_v1, %v3020_v4  ;;  %v3040_v4 = vsel %vm3039_vm0, %v4354_v0, %v3036_v60  ;;  %v6685_v0 = vld [vmem:[#allocation55_spill] sm:$0xff]  ;;  %v6686_v60 = vld [vmem:[#allocation56_spill] sm:$0xff] }
 0x790   : > { %v3045_v20 = vsel %vm3042_vm1, %v3044_v21, %v3040_v4 }
 0x791   : > { %v3025_v49 = vsel %vm3024_vm12, %v4356_v1, %v3021_v17  ;;  %v3051_v23 = vsub.f32 1.0, %v3045_v20  ;;  %v3053_v18 = vmul.f32 %v3045_v20, %v6004_v55  ;;  %v6683_v55 = vld [vmem:[#allocation28_spill] sm:$0xff]  ;;  %v6687_v17 = vld [vmem:[#allocation22_spill] sm:$0xff] }
 0x792   : > { %v3030_v63 = vsel %vm3027_vm13, %v3029_v19, %v3025_v49  ;;  %v6688_v19 = vld [vmem:[#allocation24_spill] sm:$0xff]  ;;  %v6690_v49 = vld [vmem:[#allocation43_spill] sm:$0xff] }
 0x793   : > { %v3048_v7 = vmul.f32 %v3047_v11, %v3030_v63  ;;  %v6689_v11 = vld [vmem:[#allocation49_spill] sm:$0xff] }
 0x794   : > { %v1442_v63 = vadd.f32 %v6690_v49, %v6689_v11 }
 0x795   : > { %v3049_v8 = vadd.f32 %v3048_v7, %v1401_v15  ;;  %v6692_v15 = vld [vmem:[#allocation61_spill] sm:$0xff] }
 0x796   : > { %v1462_v7 = vadd.f32 %v6692_v15, %v6691_v5 }
 0x797   : > { %4357 = vtanh.f32 %v3049_v8 }
 0x79d   : > { %v4358_v1 = vpop.eup %4357 }
 0x79e   : > { %v3052_v22 = vmul.f32 %v4358_v1, %v3051_v23 }
 0x7a0   : > { %v6077_v32 = vadd.f32 %v3053_v18, %v3052_v22 }
 0x7a2   : > { %3074 = vmatmul.f32.vlgmr.msrb.gmra.mxu2 %v6077_v32  ;;  %3094 = vmatmul.f32.vlgmr.msrb.gmra.mxu3 %v6077_v32 }
 0x7a3   : > { %3114 = vmatmul.f32.vlgmr.msra.gmra.mxu0 %v6077_v32  ;;  %3320 = vmatpush.msrb.mxu2 %v5864_v52 }
 0x7a4   : > { %3391 = vmatpush.msrb.mxu3 %v5867_v14  ;;  %3411 = vmatpush.msra.mxu0 %v5870_v9 }
 0x7a5   : > { %3321 = vmatpush.msrb.mxu2 %v5873_v28 }
 0x7a6   : > { %3392 = vmatpush.msrb.mxu3 %v5876_v2  ;;  %3412 = vmatpush.msra.mxu0 %v5879_v12 }
 0x7a7   : > { %3322 = vmatpush.msrb.mxu2 %v5882_v13 }
 0x7a8   : > { %3393 = vmatpush.msrb.mxu3 %v5885_v10  ;;  %3413 = vmatpush.msra.mxu0 %v5888_v16 }
 0x7a9   : > { %3323 = vmatpush.msrb.mxu2 %v5891_v25 }
 0x7aa   : > { %3394 = vmatpush.msrb.mxu3 %v5894_v26  ;;  %3414 = vmatpush.msra.mxu0 %v5897_v29 }
 0x7ab   : > { %3324 = vmatpush.msrb.mxu2 %v5900_v30 }
 0x7ac   : > { %3395 = vmatpush.msrb.mxu3 %v5903_v31  ;;  %3415 = vmatpush.msra.mxu0 %v5906_v33 }
 0x7ad   : > { %3325 = vmatpush.msrb.mxu2 %v5909_v34 }
 0x7ae   : > { %3396 = vmatpush.msrb.mxu3 %v5912_v35  ;;  %3416 = vmatpush.msra.mxu0 %v5915_v36 }
 0x7af   : > { %3326 = vmatpush.msrb.mxu2 %v5918_v37 }
 0x7b0   : > { %3397 = vmatpush.msrb.mxu3 %v5921_v38  ;;  %3417 = vmatpush.msra.mxu0 %v5924_v39 }
 0x7b1   : > { %3327 = vmatpush.msrb.mxu2 %v5927_v40 }
 0x7b2   : > { %3398 = vmatpush.msrb.mxu3 %v5930_v41  ;;  %3418 = vmatpush.msra.mxu0 %v5933_v42 }
 0x7b3   : > { %3328 = vmatpush.msrb.mxu2 %v5936_v43 }
 0x7b4   : > { %3399 = vmatpush.msrb.mxu3 %v5939_v44  ;;  %3419 = vmatpush.msra.mxu0 %v5942_v45 }
 0x7b5   : > { %3329 = vmatpush.msrb.mxu2 %v5945_v46 }
 0x7b6   : > { %3400 = vmatpush.msrb.mxu3 %v5948_v47  ;;  %3420 = vmatpush.msra.mxu0 %v5951_v48 }
 0x7b7   : > { %3330 = vmatpush.msrb.mxu2 %v5954_v50 }
 0x7b8   : > { %3401 = vmatpush.msrb.mxu3 %v5957_v51  ;;  %3421 = vmatpush.msra.mxu0 %v5960_v53 }
 0x7b9   : > { %3331 = vmatpush.msrb.mxu2 %v6042_v61 }
 0x7ba   : > { %3402 = vmatpush.msrb.mxu3 %v5964_v54  ;;  %3422 = vmatpush.msra.mxu0 %v5967_v56 }
 0x7bb   : > { %3332 = vmatpush.msrb.mxu2 %v6047_v62 }
 0x7bc   : > { %3403 = vmatpush.msrb.mxu3 %v5971_v58  ;;  %3423 = vmatpush.msra.mxu0 %v5974_v3 }
 0x7bd   : > { %3333 = vmatpush.msrb.mxu2 %v6052_v57 }
 0x7be   : > { %3404 = vmatpush.msrb.mxu3 %v6681_v24  ;;  %3424 = vmatpush.msra.mxu0 %v6682_v27 }
 0x7bf   : > { %3334 = vmatpush.msrb.mxu2 %v6683_v55 }
 0x7c0   : > { %3405 = vmatpush.msrb.mxu3 %v6684_v6  ;;  %3425 = vmatpush.msra.mxu0 %v6685_v0 }
 0x7c1   : > { %3335 = vmatpush.msrb.mxu2 %v6686_v60 }
 0x7c2   : > { %3406 = vmatpush.msrb.mxu3 %v6687_v17  ;;  %3426 = vmatpush.msra.mxu0 %v6688_v19 }
 0x825   : > { %v3075_v8 = vpop.f32.mrf.mxu2  ;;  %v3095_v4 = vpop.f32.mrf.mxu3 }
 0x826   : > { %v3118_v21 = vadd.f32 %v3075_v8, %v1442_v63  ;;  %v3119_v20 = vadd.f32 %v3095_v4, %v1462_v7  ;;  %v3115_v7 = vpop.f32.mrf.mxu0 }
 0x828   : > { %v4189_v23 = vmul.f32 -1.442695, %v3118_v21  ;;  %v4190_v1 = vmul.f32 -1.442695, %v3119_v20  ;;  %v6137_v20 = vld [vmem:[%s6452_s5] ss:$0 sm:$0xff] }
 0x82a   : > { %4359 = vpow2.f32 %v4189_v23  ;;  %v3158_v23 = vadd.f32 %v6137_v20, %v3115_v7 }
 0x82b   : > { %4361 = vpow2.f32 %v4190_v1 }
 0x830   : > { %v4360_v22 = vpop.eup %4359 }
 0x831   : > { %v4362_v18 = vpop.eup %4361  ;;  %v3126_v60 = vadd.f32 1.0, %v4360_v22 }
 0x832   : > { %v3127_v17 = vadd.f32 1.0, %v4362_v18 }
 0x833   : > { %4363 = vrcp.f32 %v3126_v60  ;;  %v3139_v15 = vand.u32 2147483648, %v3126_v60  ;;  %v3137_v63 = vand.u32 2147483647, %v3126_v60  ;;  %vm3133_vm3 = vweird.f32 %v3126_v60 }
 0x834   : > { %4365 = vrcp.f32 %v3127_v17  ;;  %vm3148_vm7 = vweird.f32 %v3127_v17 }
 0x835   : > { %v3140_v21 = vor.u32 1.1754944e-38, %v3139_v15  ;;  %vm3138_vm5 = vcmp.eq.f32.partialorder %v3137_v63, 8.507059e+37 }
 0x839   : > { %v4364_v19 = vpop.eup %4363 }
 0x83a   : > { %v4366_v0 = vpop.eup %4365  ;;  %v3129_v49 = vmul.f32 %v4364_v19, %v3126_v60  ;;  %vm3134_vm2 = vweird.f32 %v4364_v19  ;;  %v3152_v60 = vand.u32 2147483647, %v3127_v17 }
 0x83b   : > { %v3144_v11 = vmul.f32 %v4366_v0, %v3127_v17  ;;  %vm3135_vm4 = vmor %vm3133_vm3, %vm3134_vm2  ;;  %vm3149_vm6 = vweird.f32 %v4366_v0 }
 0x83c   : > { %v3130_v6 = vsub.f32 1.0, %v3129_v49  ;;  %vm3150_vm8 = vmor %vm3148_vm7, %vm3149_vm6  ;;  %vm3153_vm9 = vcmp.eq.f32.partialorder %v3152_v60, 8.507059e+37  ;;  %v6704_v60 = vld [vmem:[#allocation52_spill] sm:$0xff] }
 0x83d   : > { %v3145_v5 = vsub.f32 1.0, %v3144_v11 }
 0x83e   : > { %v3131_v55 = vmul.f32 %v4364_v19, %v3130_v6  ;;  %v6693_v6 = vld [vmem:[#allocation39_spill] sm:$0xff] }
 0x83f   : > { %v3146_v8 = vmul.f32 %v4366_v0, %v3145_v5  ;;  %v1482_v18 = vadd.f32 %v6693_v6, %v5298_v59  ;;  %v3154_v5 = vand.u32 2147483648, %v3127_v17  ;;  %v6698_v17 = vld [vmem:[#allocation55_spill] sm:$0xff] }
 0x840   : > { %v3132_v4 = vadd.f32 %v4364_v19, %v3131_v55 }
 0x841   : > { %v3147_v11 = vadd.f32 %v4366_v0, %v3146_v8  ;;  %v3155_v27 = vor.u32 1.1754944e-38, %v3154_v5 }
 0x842   : > { %v3136_v1 = vsel %vm3135_vm4, %v4364_v19, %v3132_v4 }
 0x843   : > { %v3141_v22 = vsel %vm3138_vm5, %v3140_v21, %v3136_v1  ;;  %v3151_v15 = vsel %vm3150_vm8, %v4366_v0, %v3147_v11  ;;  %v6697_v0 = vld [vmem:[#allocation25_spill] sm:$0xff]  ;;  %v6699_v21 = vld [vmem:[#allocation56_spill] sm:$0xff] }
 0x844   : > { %v3159_v55 = vmul.f32 %v3158_v23, %v3141_v22  ;;  %v3156_v24 = vsel %vm3153_vm9, %v3155_v27, %v3151_v15  ;;  %v6696_v27 = vld [vmem:[#allocation28_spill] sm:$0xff]  ;;  %v6700_v23 = vld [vmem:[#allocation22_spill] sm:$0xff]  ;;  %v6702_v22 = vld [vmem:[#allocation49_spill] sm:$0xff] }
 0x845   : > { %v3162_v7 = vsub.f32 1.0, %v3156_v24  ;;  %v3164_v8 = vmul.f32 %v3156_v24, %v6077_v32  ;;  %v6694_v32 = vld [vmem:[#allocation14_spill] sm:$0xff]  ;;  %v6695_v24 = vld [vmem:[#allocation17_spill] sm:$0xff]  ;;  %v6701_v1 = vld [vmem:[#allocation24_spill] sm:$0xff] }
 0x846   : > { %v3160_v49 = vadd.f32 %v3159_v55, %v1482_v18  ;;  %v6703_v11 = vld [vmem:[#allocation41_spill] sm:$0xff] }
 0x847   : > { %v1523_v6 = vadd.f32 %v6703_v11, %v6702_v22 }
 0x848   : > { %4367 = vtanh.f32 %v3160_v49  ;;  %v6705_v49 = vld [vmem:[#allocation46_spill] sm:$0xff] }
 0x849   : > { %v1543_v15 = vadd.f32 %v6705_v49, %v6704_v60 }
 0x84e   : > { %v4368_v19 = vpop.eup %4367 }
 0x84f   : > { %v3163_v63 = vmul.f32 %v4368_v19, %v3162_v7 }
 0x851   : > { %v6143_v4 = vadd.f32 %v3164_v8, %v3163_v63 }
 0x853   : > { %3185 = vmatmul.f32.vlgmr.msra.gmra.mxu1 %v6143_v4  ;;  %3205 = vmatmul.f32.vlgmr.msra.gmra.mxu2 %v6143_v4 }
 0x854   : > { %3225 = vmatmul.f32.vlgmr.msra.gmra.mxu3 %v6143_v4  ;;  %3431 = vmatpush.msra.mxu1 %v5864_v52 }
 0x855   : > { %3502 = vmatpush.msra.mxu2 %v5867_v14  ;;  %3522 = vmatpush.msra.mxu3 %v5870_v9 }
 0x856   : > { %3432 = vmatpush.msra.mxu1 %v5873_v28 }
 0x857   : > { %3503 = vmatpush.msra.mxu2 %v5876_v2  ;;  %3523 = vmatpush.msra.mxu3 %v5879_v12 }
 0x858   : > { %3433 = vmatpush.msra.mxu1 %v5882_v13 }
 0x859   : > { %3504 = vmatpush.msra.mxu2 %v5885_v10  ;;  %3524 = vmatpush.msra.mxu3 %v5888_v16 }
 0x85a   : > { %3434 = vmatpush.msra.mxu1 %v5891_v25 }
 0x85b   : > { %3505 = vmatpush.msra.mxu2 %v5894_v26  ;;  %3525 = vmatpush.msra.mxu3 %v5897_v29 }
 0x85c   : > { %3435 = vmatpush.msra.mxu1 %v5900_v30 }
 0x85d   : > { %3506 = vmatpush.msra.mxu2 %v5903_v31  ;;  %3526 = vmatpush.msra.mxu3 %v5906_v33 }
 0x85e   : > { %3436 = vmatpush.msra.mxu1 %v5909_v34 }
 0x85f   : > { %3507 = vmatpush.msra.mxu2 %v5912_v35  ;;  %3527 = vmatpush.msra.mxu3 %v5915_v36 }
 0x860   : > { %3437 = vmatpush.msra.mxu1 %v5918_v37 }
 0x861   : > { %3508 = vmatpush.msra.mxu2 %v5921_v38  ;;  %3528 = vmatpush.msra.mxu3 %v5924_v39 }
 0x862   : > { %3438 = vmatpush.msra.mxu1 %v5927_v40 }
 0x863   : > { %3509 = vmatpush.msra.mxu2 %v5930_v41  ;;  %3529 = vmatpush.msra.mxu3 %v5933_v42 }
 0x864   : > { %3439 = vmatpush.msra.mxu1 %v5936_v43 }
 0x865   : > { %3510 = vmatpush.msra.mxu2 %v5939_v44  ;;  %3530 = vmatpush.msra.mxu3 %v5942_v45 }
 0x866   : > { %3440 = vmatpush.msra.mxu1 %v5945_v46 }
 0x867   : > { %3511 = vmatpush.msra.mxu2 %v5948_v47  ;;  %3531 = vmatpush.msra.mxu3 %v5951_v48 }
 0x868   : > { %3441 = vmatpush.msra.mxu1 %v5954_v50 }
 0x869   : > { %3512 = vmatpush.msra.mxu2 %v5957_v51  ;;  %3532 = vmatpush.msra.mxu3 %v5960_v53 }
 0x86a   : > { %3442 = vmatpush.msra.mxu1 %v6042_v61 }
 0x86b   : > { %3513 = vmatpush.msra.mxu2 %v5964_v54  ;;  %3533 = vmatpush.msra.mxu3 %v5967_v56 }
 0x86c   : > { %3443 = vmatpush.msra.mxu1 %v6047_v62 }
 0x86d   : > { %3514 = vmatpush.msra.mxu2 %v5971_v58  ;;  %3534 = vmatpush.msra.mxu3 %v5974_v3 }
 0x86e   : > { %3444 = vmatpush.msra.mxu1 %v6052_v57 }
 0x86f   : > { %3515 = vmatpush.msra.mxu2 %v6694_v32  ;;  %3535 = vmatpush.msra.mxu3 %v6695_v24 }
 0x870   : > { %3445 = vmatpush.msra.mxu1 %v6696_v27 }
 0x871   : > { %3516 = vmatpush.msra.mxu2 %v6697_v0  ;;  %3536 = vmatpush.msra.mxu3 %v6698_v17 }
 0x872   : > { %3446 = vmatpush.msra.mxu1 %v6699_v21 }
 0x873   : > { %3517 = vmatpush.msra.mxu2 %v6700_v23  ;;  %3537 = vmatpush.msra.mxu3 %v6701_v1 }
 0x8d0   : > { %v3186_v18 = vpop.f32.mrf.mxu1 }
 0x8d1   : > { %v3229_v5 = vadd.f32 %v3186_v18, %v1523_v6 }
 0x8d3   : > { %v4191_v55 = vmul.f32 -1.442695, %v3229_v5 }
 0x8d5   : > { %4369 = vpow2.f32 %v4191_v55 }
 0x8d6   : > { %v3206_v7 = vpop.f32.mrf.mxu2 }
 0x8d7   : > { %v3230_v19 = vadd.f32 %v3206_v7, %v1543_v15  ;;  %v3226_v49 = vpop.f32.mrf.mxu3 }
 0x8d9   : > { %v4192_v63 = vmul.f32 -1.442695, %v3230_v19 }
 0x8db   : > { %v4370_v8 = vpop.eup %4369  ;;  %4371 = vpow2.f32 %v4192_v63  ;;  %v6706_v63 = vld [vmem:[#allocation62_spill] sm:$0xff] }
 0x8dc   : > { %v3237_v21 = vadd.f32 1.0, %v4370_v8  ;;  %v1563_v8 = vadd.f32 %v6706_v63, %v5298_v59 }
 0x8de   : > { %4373 = vrcp.f32 %v3237_v21  ;;  %v3250_v22 = vand.u32 2147483648, %v3237_v21  ;;  %v3248_v18 = vand.u32 2147483647, %v3237_v21  ;;  %vm3244_vm11 = vweird.f32 %v3237_v21 }
 0x8e0   : > { %v3251_v15 = vor.u32 1.1754944e-38, %v3250_v22  ;;  %vm3249_vm13 = vcmp.eq.f32.partialorder %v3248_v18, 8.507059e+37 }
 0x8e1   : > { %v4372_v23 = vpop.eup %4371 }
 0x8e2   : > { %v3238_v17 = vadd.f32 1.0, %v4372_v23  ;;  %v3269_v23 = vadd.f32 %v6137_v20, %v3226_v49 }
 0x8e4   : > { %v4374_v1 = vpop.eup %4373  ;;  %4375 = vrcp.f32 %v3238_v17  ;;  %v3265_v24 = vand.u32 2147483648, %v3238_v17  ;;  %v3263_v32 = vand.u32 2147483647, %v3238_v17  ;;  %vm3259_vm15 = vweird.f32 %v3238_v17 }
 0x8e5   : > { %v3240_v0 = vmul.f32 %v4374_v1, %v3237_v21  ;;  %vm3245_vm10 = vweird.f32 %v4374_v1 }
 0x8e6   : > { %vm3246_vm12 = vmor %vm3244_vm11, %vm3245_vm10  ;;  %v3266_v22 = vor.u32 1.1754944e-38, %v3265_v24  ;;  %vm3264_vm1 = vcmp.eq.f32.partialorder %v3263_v32, 8.507059e+37 }
 0x8e7   : > { %v3241_v11 = vsub.f32 1.0, %v3240_v0 }
 0x8e9   : > { %v3242_v6 = vmul.f32 %v4374_v1, %v3241_v11 }
 0x8ea   : > { %v4376_v5 = vpop.eup %4375 }
 0x8eb   : > { %v3255_v55 = vmul.f32 %v4376_v5, %v3238_v17  ;;  %v3243_v60 = vadd.f32 %v4374_v1, %v3242_v6  ;;  %vm3260_vm14 = vweird.f32 %v4376_v5 }
 0x8ec   : > { %vm3261_vm0 = vmor %vm3259_vm15, %vm3260_vm14 }
 0x8ed   : > { %v3256_v7 = vsub.f32 1.0, %v3255_v55  ;;  %v3247_v19 = vsel %vm3246_vm12, %v4374_v1, %v3243_v60 }
 0x8ee   : > { %v3252_v0 = vsel %vm3249_vm13, %v3251_v15, %v3247_v19 }
 0x8ef   : > { %v3257_v27 = vmul.f32 %v4376_v5, %v3256_v7  ;;  %v3270_v11 = vmul.f32 %v3269_v23, %v3252_v0 }
 0x8f1   : > { %v3271_v57 = vadd.f32 %v3270_v11, %v1563_v8  ;;  %v3258_v6 = vadd.f32 %v4376_v5, %v3257_v27 }
 0x8f3   : > { %4377 = vtanh.f32 %v3271_v57  ;;  %v3262_v21 = vsel %vm3261_vm0, %v4376_v5, %v3258_v6  ;;  %v6720_v5 = vld [vmem:[#allocation50_spill] sm:$0xff] }
 0x8f4   : > { %v3267_v1 = vsel %vm3264_vm1, %v3266_v22, %v3262_v21  ;;  %v1644_v7 = vadd.f32 %v6720_v5, %v5298_v59 }
 0x8f5   : > { %v3273_v60 = vsub.f32 1.0, %v3267_v1  ;;  %v3275_v55 = vmul.f32 %v3267_v1, %v6143_v4 }
 0x8f9   : > { %v4378_v18 = vpop.eup %4377 }
 0x8fa   : > { %v3274_v49 = vmul.f32 %v4378_v18, %v3273_v60 }
 0x8fc   : > { %v6204_v15 = vadd.f32 %v3275_v55, %v3274_v49  ;;  %v4517_v49 = vld [vmem:[#allocation4 + $0x178] sm:$0xff]  ;;  %v4518_v55 = vld [vmem:[#allocation4 + $0x160] sm:$0xff] }
 0x8fe   : > { %3296 = vmatmul.f32.vlgmr.msrb.gmra.mxu0 %v6204_v15  ;;  %3316 = vmatmul.f32.vlgmr.msrb.gmra.mxu1 %v6204_v15 }
 0x8ff   : > { %3336 = vmatmul.f32.vlgmr.msrb.gmra.mxu2 %v6204_v15  ;;  %3542 = vmatpush.msrb.mxu0 %v5864_v52  ;;  %v6707_v52 = vld [vmem:[#allocation23_spill] sm:$0xff] }
 0x900   : > { %3613 = vmatpush.msrb.mxu1 %v5867_v14  ;;  %3633 = vmatpush.msrb.mxu2 %v5870_v9  ;;  %v6708_v14 = vld [vmem:[#allocation14_spill] sm:$0xff]  ;;  %v6709_v9 = vld [vmem:[#allocation17_spill] sm:$0xff] }
 0x901   : > { %3543 = vmatpush.msrb.mxu0 %v5873_v28  ;;  %v6710_v28 = vld [vmem:[#allocation28_spill] sm:$0xff] }
 0x902   : > { %3614 = vmatpush.msrb.mxu1 %v5876_v2  ;;  %3634 = vmatpush.msrb.mxu2 %v5879_v12  ;;  %v6711_v2 = vld [vmem:[#allocation25_spill] sm:$0xff]  ;;  %v6712_v12 = vld [vmem:[#allocation55_spill] sm:$0xff] }
 0x903   : > { %3544 = vmatpush.msrb.mxu0 %v5882_v13  ;;  %v6713_v13 = vld [vmem:[#allocation56_spill] sm:$0xff] }
 0x904   : > { %3615 = vmatpush.msrb.mxu1 %v5885_v10  ;;  %3635 = vmatpush.msrb.mxu2 %v5888_v16  ;;  %v6714_v10 = vld [vmem:[#allocation22_spill] sm:$0xff]  ;;  %v6715_v16 = vld [vmem:[#allocation24_spill] sm:$0xff] }
 0x905   : > { %3545 = vmatpush.msrb.mxu0 %v5891_v25  ;;  %v6716_v25 = vld [vmem:[#allocation49_spill] sm:$0xff] }
 0x906   : > { %3616 = vmatpush.msrb.mxu1 %v5894_v26  ;;  %3636 = vmatpush.msrb.mxu2 %v5897_v29  ;;  %v6717_v26 = vld [vmem:[#allocation42_spill] sm:$0xff] }
 0x907   : > { %3546 = vmatpush.msrb.mxu0 %v5900_v30  ;;  %v1604_v29 = vadd.f32 %v6717_v26, %v6716_v25  ;;  %v6718_v30 = vld [vmem:[#allocation52_spill] sm:$0xff] }
 0x908   : > { %3617 = vmatpush.msrb.mxu1 %v5903_v31  ;;  %3637 = vmatpush.msrb.mxu2 %v5906_v33  ;;  %v6719_v31 = vld [vmem:[#allocation44_spill] sm:$0xff] }
 0x909   : > { %3547 = vmatpush.msrb.mxu0 %v5909_v34  ;;  %v1624_v33 = vadd.f32 %v6719_v31, %v6718_v30  ;;  %v4526_v26 = vld [vmem:[#allocation4 + $0xa0] sm:$0xff] }
 0x90a   : > { %3618 = vmatpush.msrb.mxu1 %v5912_v35  ;;  %3638 = vmatpush.msrb.mxu2 %v5915_v36 }
 0x90b   : > { %3548 = vmatpush.msrb.mxu0 %v5918_v37 }
 0x90c   : > { %3619 = vmatpush.msrb.mxu1 %v5921_v38  ;;  %3639 = vmatpush.msrb.mxu2 %v5924_v39 }
 0x90d   : > { %3549 = vmatpush.msrb.mxu0 %v5927_v40 }
 0x90e   : > { %3620 = vmatpush.msrb.mxu1 %v5930_v41  ;;  %3640 = vmatpush.msrb.mxu2 %v5933_v42 }
 0x90f   : > { %3550 = vmatpush.msrb.mxu0 %v5936_v43 }
 0x910   : > { %3621 = vmatpush.msrb.mxu1 %v5939_v44  ;;  %3641 = vmatpush.msrb.mxu2 %v5942_v45 }
 0x911   : > { %3551 = vmatpush.msrb.mxu0 %v5945_v46 }
 0x912   : > { %3622 = vmatpush.msrb.mxu1 %v5948_v47  ;;  %3642 = vmatpush.msrb.mxu2 %v5951_v48 }
 0x913   : > { %3552 = vmatpush.msrb.mxu0 %v5954_v50 }
 0x914   : > { %3623 = vmatpush.msrb.mxu1 %v5957_v51  ;;  %3643 = vmatpush.msrb.mxu2 %v5960_v53 }
 0x915   : > { %3553 = vmatpush.msrb.mxu0 %v6042_v61 }
 0x916   : > { %3624 = vmatpush.msrb.mxu1 %v5964_v54  ;;  %3644 = vmatpush.msrb.mxu2 %v5967_v56 }
 0x917   : > { %3554 = vmatpush.msrb.mxu0 %v6047_v62 }
 0x918   : > { %3625 = vmatpush.msrb.mxu1 %v5971_v58  ;;  %3645 = vmatpush.msrb.mxu2 %v5974_v3 }
 0x919   : > { %3555 = vmatpush.msrb.mxu0 %v6707_v52 }
 0x91a   : > { %3626 = vmatpush.msrb.mxu1 %v6708_v14  ;;  %3646 = vmatpush.msrb.mxu2 %v6709_v9  ;;  %v4519_v14 = vld [vmem:[#allocation4 + $0x148] sm:$0xff]  ;;  %v4520_v9 = vld [vmem:[#allocation4 + $0x130] sm:$0xff] }
 0x91b   : > { %3556 = vmatpush.msrb.mxu0 %v6710_v28 }
 0x91c   : > { %3627 = vmatpush.msrb.mxu1 %v6711_v2  ;;  %3647 = vmatpush.msrb.mxu2 %v6712_v12  ;;  %v4521_v2 = vld [vmem:[#allocation4 + $0x118] sm:$0xff]  ;;  %v4522_v12 = vld [vmem:[#allocation4 + $0x100] sm:$0xff] }
 0x91d   : > { %3557 = vmatpush.msrb.mxu0 %v6713_v13 }
 0x91e   : > { %3628 = vmatpush.msrb.mxu1 %v6714_v10  ;;  %3648 = vmatpush.msrb.mxu2 %v6715_v16  ;;  %v4524_v10 = vld [vmem:[#allocation4 + $0xd0] sm:$0xff]  ;;  %v4525_v16 = vld [vmem:[#allocation4 + $0xb8] sm:$0xff] }
 0x97b   : > { %v3297_v34 = vpop.f32.mrf.mxu0  ;;  %v3317_v35 = vpop.f32.mrf.mxu1 }
 0x97c   : > { %v3340_v36 = vadd.f32 %v3297_v34, %v1604_v29  ;;  %v3341_v37 = vadd.f32 %v3317_v35, %v1624_v33  ;;  %v6721_v29 = vld [vmem:[#allocation45_spill] sm:$0xff] }
 0x97d   : > { %v1705_v31 = vadd.f32 %v6721_v29, %v6718_v30 }
 0x97e   : > { %v4193_v38 = vmul.f32 -1.442695, %v3340_v36  ;;  %v4194_v39 = vmul.f32 -1.442695, %v3341_v37  ;;  %v6722_v36 = vld [vmem:[#allocation63_spill] sm:$0xff] }
 0x97f   : > { %v1685_v37 = vadd.f32 %v6722_v36, %v6716_v25 }
 0x980   : > { %4379 = vpow2.f32 %v4193_v38 }
 0x981   : > { %4381 = vpow2.f32 %v4194_v39 }
 0x982   : > { %v3337_v3 = vpop.f32.mrf.mxu2 }
 0x983   : > { %v3380_v24 = vadd.f32 %v6137_v20, %v3337_v3 }
 0x986   : > { %v4380_v40 = vpop.eup %4379 }
 0x987   : > { %v4382_v41 = vpop.eup %4381  ;;  %v3348_v42 = vadd.f32 1.0, %v4380_v40 }
 0x988   : > { %v3349_v43 = vadd.f32 1.0, %v4382_v41 }
 0x989   : > { %4383 = vrcp.f32 %v3348_v42  ;;  %v3361_v53 = vand.u32 2147483648, %v3348_v42  ;;  %v3359_v56 = vand.u32 2147483647, %v3348_v42  ;;  %vm3355_vm3 = vweird.f32 %v3348_v42 }
 0x98a   : > { %4385 = vrcp.f32 %v3349_v43  ;;  %v3376_v23 = vand.u32 2147483648, %v3349_v43  ;;  %vm3370_vm7 = vweird.f32 %v3349_v43  ;;  %v3374_v63 = vand.u32 2147483647, %v3349_v43 }
 0x98b   : > { %v3362_v4 = vor.u32 1.1754944e-38, %v3361_v53  ;;  %vm3360_vm5 = vcmp.eq.f32.partialorder %v3359_v56, 8.507059e+37 }
 0x98c   : > { %v3377_v11 = vor.u32 1.1754944e-38, %v3376_v23  ;;  %vm3375_vm9 = vcmp.eq.f32.partialorder %v3374_v63, 8.507059e+37 }
 0x98f   : > { %v4384_v44 = vpop.eup %4383 }
 0x990   : > { %v4386_v45 = vpop.eup %4385  ;;  %v3351_v46 = vmul.f32 %v4384_v44, %v3348_v42  ;;  %vm3356_vm2 = vweird.f32 %v4384_v44 }
 0x991   : > { %v3366_v47 = vmul.f32 %v4386_v45, %v3349_v43  ;;  %vm3357_vm4 = vmor %vm3355_vm3, %vm3356_vm2  ;;  %vm3371_vm6 = vweird.f32 %v4386_v45 }
 0x992   : > { %v3352_v48 = vsub.f32 1.0, %v3351_v46  ;;  %vm3372_vm8 = vmor %vm3370_vm7, %vm3371_vm6 }
 0x993   : > { %v3367_v51 = vsub.f32 1.0, %v3366_v47 }
 0x994   : > { %v3353_v54 = vmul.f32 %v4384_v44, %v3352_v48 }
 0x995   : > { %v3368_v58 = vmul.f32 %v4386_v45, %v3367_v51 }
 0x996   : > { %v3354_v57 = vadd.f32 %v4384_v44, %v3353_v54 }
 0x997   : > { %v3369_v17 = vadd.f32 %v4386_v45, %v3368_v58 }
 0x998   : > { %v3358_v32 = vsel %vm3357_vm4, %v4384_v44, %v3354_v57 }
 0x999   : > { %v3363_v27 = vsel %vm3360_vm5, %v3362_v4, %v3358_v32  ;;  %v3373_v0 = vsel %vm3372_vm8, %v4386_v45, %v3369_v17  ;;  %v6723_v4 = vld [vmem:[#allocation47_spill] sm:$0xff] }
 0x99a   : > { %v3381_v19 = vmul.f32 %v3380_v24, %v3363_v27  ;;  %v3378_v6 = vsel %vm3375_vm9, %v3377_v11, %v3373_v0  ;;  %v1725_v32 = vadd.f32 %v6723_v4, %v5298_v59  ;;  %v3752_v4 = vld [vmem:[%s6453_s6 + $0xf8] sm:$0xff] }
 0x99b   : > { %v3384_v21 = vsub.f32 1.0, %v3378_v6  ;;  %v3386_v60 = vmul.f32 %v3378_v6, %v6204_v15  ;;  %v4523_v15 = vld [vmem:[#allocation4 + $0xe8] sm:$0xff] }
 0x99c   : > { %v3382_v8 = vadd.f32 %v3381_v19, %v1644_v7 }
 0x99e   : > { %4387 = vtanh.f32 %v3382_v8 }
 0x9a4   : > { %v4388_v22 = vpop.eup %4387 }
 0x9a5   : > { %v3385_v1 = vmul.f32 %v4388_v22, %v3384_v21  ;;  %v6724_v21 = vld [vmem:[#allocation53_spill] sm:$0xff] }
 0x9a6   : > { %v1766_v22 = vadd.f32 %v6724_v21, %v6716_v25  ;;  %v3738_v21 = vld [vmem:[%s6453_s6 + $0x88] sm:$0xff] }
 0x9a7   : > { %v6265_v18 = vadd.f32 %v3386_v60, %v3385_v1  ;;  %v6725_v1 = vld [vmem:[#allocation64_spill] sm:$0xff] }
 0x9a8   : > { %v1786_v60 = vadd.f32 %v6725_v1, %v6718_v30 }
 0x9a9   : > { %3407 = vmatmul.f32.vlgmr.msrb.gmra.mxu3 %v6265_v18  ;;  %3427 = vmatmul.f32.vlgmr.msra.gmra.mxu0 %v6265_v18 }
 0x9aa   : > { %3447 = vmatmul.f32.vlgmr.msra.gmra.mxu1 %v6265_v18  ;;  %3653 = vmatpush.msrb.mxu3 %v4517_v49 }
 0x9ac   : > { %3654 = vmatpush.msrb.mxu3 %v4518_v55 }
 0x9ae   : > { %3655 = vmatpush.msrb.mxu3 %v4519_v14 }
 0x9b0   : > { %3656 = vmatpush.msrb.mxu3 %v4520_v9 }
 0x9b2   : > { %3657 = vmatpush.msrb.mxu3 %v4521_v2 }
 0x9b4   : > { %3658 = vmatpush.msrb.mxu3 %v4522_v12 }
 0x9b6   : > { %3659 = vmatpush.msrb.mxu3 %v4523_v15 }
 0x9b8   : > { %3660 = vmatpush.msrb.mxu3 %v4524_v10 }
 0x9ba   : > { %3661 = vmatpush.msrb.mxu3 %v4525_v16 }
 0x9bc   : > { %3662 = vmatpush.msrb.mxu3 %v4526_v26 }
 0x9be   : > { %3663 = vmatpush.msrb.mxu3 %v5954_v50 }
 0x9c0   : > { %3664 = vmatpush.msrb.mxu3 %v6042_v61 }
 0x9c2   : > { %3665 = vmatpush.msrb.mxu3 %v6047_v62 }
 0x9c4   : > { %3666 = vmatpush.msrb.mxu3 %v6707_v52 }
 0x9c6   : > { %3667 = vmatpush.msrb.mxu3 %v6710_v28 }
 0x9c8   : > { %3668 = vmatpush.msrb.mxu3 %v6713_v13 }
 0xa26   : > { %v3428_v33 = vpop.f32.mrf.mxu0 }
 0xa27   : > { %v3452_v34 = vadd.f32 %v3428_v33, %v1705_v31  ;;  %v3448_v51 = vpop.f32.mrf.mxu1 }
 0xa28   : > { %v3491_v56 = vadd.f32 %v6137_v20, %v3448_v51 }
 0xa29   : > { %v4196_v35 = vmul.f32 -1.442695, %v3452_v34 }
 0xa2b   : > { %4389 = vpow2.f32 %v4196_v35 }
 0xa2c   : > { %v3408_v50 = vpop.f32.mrf.mxu3 }
 0xa2d   : > { %v3451_v61 = vadd.f32 %v3408_v50, %v1685_v37 }
 0xa2f   : > { %v4195_v38 = vmul.f32 -1.442695, %v3451_v61 }
 0xa31   : > { %v4390_v62 = vpop.eup %4389  ;;  %4391 = vpow2.f32 %v4195_v38 }
 0xa32   : > { %v3460_v52 = vadd.f32 1.0, %v4390_v62 }
 0xa34   : > { %4393 = vrcp.f32 %v3460_v52  ;;  %v3487_v24 = vand.u32 2147483648, %v3460_v52  ;;  %vm3481_vm15 = vweird.f32 %v3460_v52  ;;  %v3485_v17 = vand.u32 2147483647, %v3460_v52 }
 0xa36   : > { %v3488_v19 = vor.u32 1.1754944e-38, %v3487_v24  ;;  %vm3486_vm1 = vcmp.eq.f32.partialorder %v3485_v17, 8.507059e+37  ;;  %v3750_v24 = vld [vmem:[%s6453_s6 + $0xe8] sm:$0xff]  ;;  %v3748_v17 = vld [vmem:[%s6453_s6 + $0xd8] sm:$0xff] }
 0xa37   : > { %v4392_v28 = vpop.eup %4391 }
 0xa38   : > { %v3459_v39 = vadd.f32 1.0, %v4392_v28 }
 0xa3a   : > { %4395 = vrcp.f32 %v3459_v39  ;;  %v4394_v13 = vpop.eup %4393  ;;  %v3472_v45 = vand.u32 2147483648, %v3459_v39  ;;  %v3470_v47 = vand.u32 2147483647, %v3459_v39  ;;  %vm3466_vm11 = vweird.f32 %v3459_v39 }
 0xa3b   : > { %v3477_v40 = vmul.f32 %v4394_v13, %v3460_v52  ;;  %vm3482_vm14 = vweird.f32 %v4394_v13 }
 0xa3c   : > { %v3473_v54 = vor.u32 1.1754944e-38, %v3472_v45  ;;  %vm3471_vm13 = vcmp.eq.f32.partialorder %v3470_v47, 8.507059e+37  ;;  %vm3483_vm0 = vmor %vm3481_vm15, %vm3482_vm14 }
 0xa3d   : > { %v3478_v43 = vsub.f32 1.0, %v3477_v40 }
 0xa3f   : > { %v3479_v48 = vmul.f32 %v4394_v13, %v3478_v43 }
 0xa40   : > { %v4396_v41 = vpop.eup %4395 }
 0xa41   : > { %v3462_v42 = vmul.f32 %v4396_v41, %v3459_v39  ;;  %vm3467_vm10 = vweird.f32 %v4396_v41  ;;  %v3480_v57 = vadd.f32 %v4394_v13, %v3479_v48 }
 0xa42   : > { %vm3468_vm12 = vmor %vm3466_vm11, %vm3467_vm10  ;;  %vm3763_vm10 = vcmask 1042432   ;;  %vm3759_vm11 = vcmask 23552  }
 0xa43   : > { %v3463_v44 = vsub.f32 1.0, %v3462_v42  ;;  %v3484_v7 = vsel %vm3483_vm0, %v4394_v13, %v3480_v57  ;;  %v3751_v57 = vld [vmem:[%s6453_s6 + $0xf0] sm:$0xff] }
 0xa44   : > { %v3489_v23 = vsel %vm3486_vm1, %v3488_v19, %v3484_v7  ;;  %v3746_v7 = vld [vmem:[%s6453_s6 + $0xc8] sm:$0xff]  ;;  %v3743_v19 = vld [vmem:[%s6453_s6 + $0xb0] sm:$0xff] }
 0xa45   : > { %v3464_v46 = vmul.f32 %v4396_v41, %v3463_v44  ;;  %v3495_v63 = vsub.f32 1.0, %v3489_v23  ;;  %v3497_v11 = vmul.f32 %v3489_v23, %v6265_v18  ;;  %v3744_v23 = vld [vmem:[%s6453_s6 + $0xb8] sm:$0xff] }
 0xa47   : > { %v3465_v53 = vadd.f32 %v4396_v41, %v3464_v46 }
 0xa49   : > { %v3469_v58 = vsel %vm3468_vm12, %v4396_v41, %v3465_v53  ;;  %v6726_v41 = vld [vmem:[#allocation48_spill] sm:$0xff] }
 0xa4a   : > { %v3474_v3 = vsel %vm3471_vm13, %v3473_v54, %v3469_v58  ;;  %v1806_v42 = vadd.f32 %v6726_v41, %v5298_v59 }
 0xa4b   : > { %v3492_v27 = vmul.f32 %v3491_v56, %v3474_v3 }
 0xa4d   : > { %v3493_v5 = vadd.f32 %v3492_v27, %v1725_v32  ;;  %v3749_v32 = vld [vmem:[%s6453_s6 + $0xe0] sm:$0xff]  ;;  %v3747_v27 = vld [vmem:[%s6453_s6 + $0xd0] sm:$0xff] }
 0xa4f   : > { %4397 = vtanh.f32 %v3493_v5  ;;  %v3745_v5 = vld [vmem:[%s6453_s6 + $0xc0] sm:$0xff] }
 0xa55   : > { %v4398_v8 = vpop.eup %4397 }
 0xa56   : > { %v3496_v0 = vmul.f32 %v4398_v8, %v3495_v63  ;;  %v3741_v63 = vld [vmem:[%s6453_s6 + $0xa0] sm:$0xff]  ;;  %v3742_v8 = vld [vmem:[%s6453_s6 + $0xa8] sm:$0xff] }
 0xa58   : > { %v3498_v6 = vadd.f32 %v3497_v11, %v3496_v0  ;;  %v3739_v0 = vld [vmem:[%s6453_s6 + $0x90] sm:$0xff]  ;;  %v3740_v11 = vld [vmem:[%s6453_s6 + $0x98] sm:$0xff] }
 0xa5a   : > { %3518 = vmatmul.f32.vlgmr.msra.gmra.mxu2 %v3498_v6  ;;  %3538 = vmatmul.f32.vlgmr.msra.gmra.mxu3 %v3498_v6 }
 0xa5b   : > { %3558 = vmatmul.f32.vlgmr.msrb.gmra.mxu0 %v3498_v6  ;;  %3808 = vmatpush.msra.mxu2 %v3751_v57 }
 0xa5c   : > { %3828 = vmatpush.msra.mxu3 %v3752_v4 }
 0xa5d   : > { %3809 = vmatpush.msra.mxu2 %v3749_v32  ;;  %v3902_v32 = vld [vmem:[#allocation6 + $0xe0] sm:$0xff] }
 0xa5e   : > { %3829 = vmatpush.msra.mxu3 %v3750_v24 }
 0xa5f   : > { %3810 = vmatpush.msra.mxu2 %v3747_v27 }
 0xa60   : > { %3830 = vmatpush.msra.mxu3 %v3748_v17  ;;  %v3885_v17 = vld [vmem:[#allocation6 + $0x58] sm:$0xff] }
 0xa61   : > { %3811 = vmatpush.msra.mxu2 %v3745_v5 }
 0xa62   : > { %3831 = vmatpush.msra.mxu3 %v3746_v7 }
 0xa63   : > { %3812 = vmatpush.msra.mxu2 %v3743_v19  ;;  %v3901_v19 = vld [vmem:[#allocation6 + $0xd8] sm:$0xff] }
 0xa64   : > { %3832 = vmatpush.msra.mxu3 %v3744_v23 }
 0xa65   : > { %3813 = vmatpush.msra.mxu2 %v3741_v63  ;;  %v3884_v63 = vld [vmem:[#allocation6 + $0x50] sm:$0xff] }
 0xa66   : > { %3833 = vmatpush.msra.mxu3 %v3742_v8 }
 0xa67   : > { %3814 = vmatpush.msra.mxu2 %v3739_v0 }
 0xa68   : > { %3834 = vmatpush.msra.mxu3 %v3740_v11 }
 0xa6a   : > { %3835 = vmatpush.msra.mxu3 %v3738_v21  ;;  %v6729_v21 = vld [vmem:[#allocation65_spill] sm:$0xff] }
 0xad8   : > { %v3559_v61 = vpop.f32.mrf.mxu0 }
 0xad9   : > { %v3602_v28 = vadd.f32 %v6137_v20, %v3559_v61  ;;  %v3754_v61 = vld [vmem:[%s6454_s7] sm:$0x77] }
 0xada   : > { %3756 = vst [vmem:[#allocation1] ss:$2 sm:$0xff] %v3754_v61  ;;  %v3878_v61 = vld [vmem:[#allocation6 + $0x20] sm:$0xff] }
 0xadd   : > { %v3519_v49 = vpop.f32.mrf.mxu2  ;;  %v3539_v55 = vpop.f32.mrf.mxu3 }
 0xade   : > { %v3562_v14 = vadd.f32 %v3519_v49, %v1766_v22  ;;  %v3563_v9 = vadd.f32 %v3539_v55, %v1786_v60  ;;  %v6727_v22 = vld [vmem:[#allocation51_spill] sm:$0xff]  ;;  %v3735_v60 = vld [vmem:[%s6453_s6 + $0x70] sm:$0xff]  ;;  %v3736_v49 = vld [vmem:[%s6453_s6 + $0x78] sm:$0xff] }
 0xadf   : > { %v1847_v1 = vadd.f32 %v6727_v22, %v6716_v25  ;;  %3836 = vmatpush.msra.mxu3 %v3736_v49  ;;  %v3734_v25 = vld [vmem:[%s6453_s6 + $0x68] sm:$0xff]  ;;  %v1887_v22 = vadd.f32 %v6729_v21, %v5298_v59 }
 0xae0   : > { %v4197_v2 = vmul.f32 -1.442695, %v3562_v14  ;;  %v4198_v12 = vmul.f32 -1.442695, %v3563_v9  ;;  %v3733_v9 = vld [vmem:[%s6453_s6 + $0x60] sm:$0xff]  ;;  %v3898_v59 = vld [vmem:[#allocation6 + $0xc0] sm:$0xff] }
 0xae1   : > { %3837 = vmatpush.msra.mxu3 %v3734_v25  ;;  %v3757_v41 = vld.sshfl [vmem:[#allocation1] sm:$0xff pattern:$0x75316420] }
 0xae2   : > { %4399 = vpow2.f32 %v4197_v2  ;;  %4201 = vmatpush.msk.msra.mxu0 %vm3763_vm10, %v3757_v41  ;;  %v3890_v41 = vld [vmem:[#allocation6 + $0x80] sm:$0xff] }
 0xae3   : > { %4401 = vpow2.f32 %v4198_v12  ;;  %v3731_v12 = vld [vmem:[%s6453_s6 + $0x50] sm:$0xff] }
 0xae8   : > { %v4400_v15 = vpop.eup %4399 }
 0xae9   : > { %v4402_v18 = vpop.eup %4401  ;;  %v3570_v10 = vadd.f32 1.0, %v4400_v15  ;;  %v3732_v15 = vld [vmem:[%s6453_s6 + $0x58] sm:$0xff] }
 0xaea   : > { %v3571_v16 = vadd.f32 1.0, %v4402_v18  ;;  %3838 = vmatpush.msra.mxu3 %v3732_v15  ;;  %v6728_v18 = vld [vmem:[#allocation54_spill] sm:$0xff]  ;;  %v3881_v15 = vld [vmem:[#allocation6 + $0x38] sm:$0xff] }
 0xaeb   : > { %4403 = vrcp.f32 %v3570_v10  ;;  %v3583_v35 = vand.u32 2147483648, %v3570_v10  ;;  %v3581_v50 = vand.u32 2147483647, %v3570_v10  ;;  %vm3577_vm3 = vweird.f32 %v3570_v10 }
 0xaec   : > { %4405 = vrcp.f32 %v3571_v16  ;;  %v3598_v43 = vand.u32 2147483648, %v3571_v16  ;;  %vm3592_vm7 = vweird.f32 %v3571_v16  ;;  %v3596_v45 = vand.u32 2147483647, %v3571_v16 }
 0xaed   : > { %v3584_v52 = vor.u32 1.1754944e-38, %v3583_v35  ;;  %vm3582_vm5 = vcmp.eq.f32.partialorder %v3581_v50, 8.507059e+37  ;;  %v3725_v35 = vld [vmem:[%s6453_s6 + $0x20] sm:$0xff]  ;;  %v3724_v50 = vld [vmem:[%s6453_s6 + $0x18] sm:$0xff] }
 0xaee   : > { %v3599_v48 = vor.u32 1.1754944e-38, %v3598_v43  ;;  %vm3597_vm9 = vcmp.eq.f32.partialorder %v3596_v45, 8.507059e+37  ;;  %v3758_v43 = vld.sshfl [vmem:[#allocation1 + $0x8] sm:$0xff pattern:$0x75316420] }
 0xaef   : > { %4203 = vmatpush.msk.msra.mxu1 %vm3763_vm10, %v3758_v43 }
 0xaf1   : > { %v4404_v26 = vpop.eup %4403 }
 0xaf2   : > { %v4406_v29 = vpop.eup %4405  ;;  %v3573_v31 = vmul.f32 %v4404_v26, %v3570_v10  ;;  %vm3578_vm2 = vweird.f32 %v4404_v26  ;;  %v1867_v10 = vadd.f32 %v6728_v18, %v6718_v30  ;;  %v3728_v30 = vld [vmem:[%s6453_s6 + $0x38] sm:$0xff] }
 0xaf3   : > { %v3588_v33 = vmul.f32 %v4406_v29, %v3571_v16  ;;  %vm3579_vm4 = vmor %vm3577_vm3, %vm3578_vm2  ;;  %vm3593_vm6 = vweird.f32 %v4406_v29  ;;  %v3729_v16 = vld [vmem:[%s6453_s6 + $0x40] sm:$0xff] }
 0xaf4   : > { %v3574_v34 = vsub.f32 1.0, %v3573_v31  ;;  %vm3594_vm8 = vmor %vm3592_vm7, %vm3593_vm6 }
 0xaf5   : > { %v3589_v36 = vsub.f32 1.0, %v3588_v33  ;;  %v3727_v33 = vld [vmem:[%s6453_s6 + $0x30] sm:$0xff] }
 0xaf6   : > { %v3575_v37 = vmul.f32 %v4404_v26, %v3574_v34 }
 0xaf7   : > { %v3590_v38 = vmul.f32 %v4406_v29, %v3589_v36  ;;  %v3726_v36 = vld [vmem:[%s6453_s6 + $0x28] sm:$0xff] }
 0xaf8   : > { %v3576_v62 = vadd.f32 %v4404_v26, %v3575_v37  ;;  %v3723_v37 = vld [vmem:[%s6453_s6 + $0x10] sm:$0xff] }
 0xaf9   : > { %v3591_v40 = vadd.f32 %v4406_v29, %v3590_v38 }
 0xafa   : > { %v3580_v39 = vsel %vm3579_vm4, %v4404_v26, %v3576_v62  ;;  %v3730_v26 = vld [vmem:[%s6453_s6 + $0x48] sm:$0xff]  ;;  %v3721_v62 = vld [vmem:[%s6453_s6] sm:$0xff] }
 0xafb   : > { %v3585_v13 = vsel %vm3582_vm5, %v3584_v52, %v3580_v39  ;;  %v3595_v47 = vsel %vm3594_vm8, %v4406_v29, %v3591_v40  ;;  %3839 = vmatpush.msra.mxu3 %v3730_v26  ;;  %v3722_v52 = vld [vmem:[%s6453_s6 + $0x8] sm:$0xff]  ;;  %v3880_v26 = vld [vmem:[#allocation6 + $0x30] sm:$0xff] }
 0xafc   : > { %v3603_v44 = vmul.f32 %v3602_v28, %v3585_v13  ;;  %v3600_v51 = vsel %vm3597_vm9, %v3599_v48, %v3595_v47  ;;  %v3753_v13 = vld [vmem:[%s580_s19] sm:$0xff]  ;;  %v3904_v48 = vld [vmem:[#allocation6 + $0xf0] sm:$0xff] }
 0xafd   : > { %v3606_v53 = vsub.f32 1.0, %v3600_v51  ;;  %v3608_v58 = vmul.f32 %v3600_v51, %v3498_v6  ;;  %v3737_v6 = vld [vmem:[%s6453_s6 + $0x80] sm:$0xff]  ;;  %3840 = vmatpush.msra.mxu3 %v3728_v30  ;;  %4202 = vmatmul.msk.f32.vlgmr.msra.gmra.mxu0 %vm3759_vm11, %v3753_v13  ;;  %v3887_v51 = vld [vmem:[#allocation6 + $0x68] sm:$0xff] }
 0xafe   : > { %v3604_v46 = vadd.f32 %v3603_v44, %v1806_v42  ;;  %3815 = vmatpush.msra.mxu2 %v3737_v6  ;;  %v3889_v42 = vld [vmem:[#allocation6 + $0x78] sm:$0xff]  ;;  %v3900_v6 = vld [vmem:[#allocation6 + $0xd0] sm:$0xff] }
 0xaff   : > { %3841 = vmatpush.msra.mxu3 %v3726_v36  ;;  %v3905_v44 = vld [vmem:[#allocation6 + $0xf8] sm:$0xff]  ;;  %3910 = vmatpush.msrb.mxu0 %v3889_v42 }
 0xb00   : > { %4407 = vtanh.f32 %v3604_v46  ;;  %3816 = vmatpush.msra.mxu2 %v3735_v60  ;;  %v3888_v46 = vld [vmem:[#allocation6 + $0x70] sm:$0xff]  ;;  %v3883_v60 = vld [vmem:[#allocation6 + $0x48] sm:$0xff]  ;;  %v3848_v42 = vld [vmem:[%s6455_s8] sm:$0x3] }
 0xb01   : > { %3842 = vmatpush.msra.mxu3 %v3724_v50  ;;  %3911 = vmatpush.msrb.mxu0 %v3888_v46  ;;  %v3895_v50 = vld [vmem:[#allocation6 + $0xa8] sm:$0xff]  ;;  %v3851_v46 = vperm.slane %v3848_v42, 1 }
 0xb02   : > { %3817 = vmatpush.msra.mxu2 %v3733_v9  ;;  %v3899_v9 = vld [vmem:[#allocation6 + $0xc8] sm:$0xff] }
 0xb03   : > { %3843 = vmatpush.msra.mxu3 %v3722_v52  ;;  %3912 = vmatpush.msrb.mxu0 %v3887_v51  ;;  %v3893_v52 = vld [vmem:[#allocation6 + $0x98] sm:$0xff] }
 0xb04   : > { %3818 = vmatpush.msra.mxu2 %v3731_v12 }
 0xb06   : > { %v4408_v54 = vpop.eup %4407  ;;  %3819 = vmatpush.msra.mxu2 %v3729_v16  ;;  %v3897_v16 = vld [vmem:[#allocation6 + $0xb8] sm:$0xff] }
 0xb07   : > { %v3607_v56 = vmul.f32 %v4408_v54, %v3606_v53  ;;  %v3903_v54 = vld [vmem:[#allocation6 + $0xe8] sm:$0xff] }
 0xb08   : > { %3820 = vmatpush.msra.mxu2 %v3727_v33 }
 0xb09   : > { %v6291_v3 = vadd.f32 %v3608_v58, %v3607_v56  ;;  %v3886_v58 = vld [vmem:[#allocation6 + $0x60] sm:$0xff] }
 0xb0a   : > { %3821 = vmatpush.msra.mxu2 %v3725_v35  ;;  %3913 = vmatpush.msrb.mxu0 %v3886_v58 }
 0xb0b   : > { %3629 = vmatmul.f32.vlgmr.msrb.gmra.mxu1 %v6291_v3  ;;  %3649 = vmatmul.f32.vlgmr.msrb.gmra.mxu2 %v6291_v3 }
 0xb0c   : > { %3669 = vmatmul.f32.vlgmr.msrb.gmra.mxu3 %v6291_v3  ;;  %3822 = vmatpush.msra.mxu2 %v3723_v37  ;;  %v3879_v37 = vld [vmem:[#allocation6 + $0x28] sm:$0xff] }
 0xb0d   : > { %3930 = vmatpush.msrb.mxu1 %v3905_v44  ;;  %3914 = vmatpush.msrb.mxu0 %v3885_v17 }
 0xb0e   : > { %3823 = vmatpush.msra.mxu2 %v3721_v62  ;;  %v3877_v62 = vld [vmem:[#allocation6 + $0x18] sm:$0xff] }
 0xb0f   : > { %3931 = vmatpush.msrb.mxu1 %v3904_v48  ;;  %3915 = vmatpush.msrb.mxu0 %v3884_v63  ;;  %v3858_v48 = vld [vmem:[%s6456_s9] sm:$0x3] }
 0xb11   : > { %3932 = vmatpush.msrb.mxu1 %v3903_v54  ;;  %3916 = vmatpush.msrb.mxu0 %v3883_v60 }
 0xb13   : > { %4204 = vmatmul.msk.f32.vlgmr.msra.gmra.mxu1 %vm3759_vm11, %v3753_v13  ;;  %v3891_v13 = vld [vmem:[#allocation6 + $0x88] sm:$0xff] }
 0xb14   : > { %3933 = vmatpush.msrb.mxu1 %v3902_v32  ;;  %v3861_v32 = vperm.slane %v3858_v48, 1 }
 0xb16   : > { %3934 = vmatpush.msrb.mxu1 %v3901_v19 }
 0xb18   : > { %3935 = vmatpush.msrb.mxu1 %v3900_v6 }
 0xb1a   : > { %3936 = vmatpush.msrb.mxu1 %v3899_v9 }
 0xb1c   : > { %3937 = vmatpush.msrb.mxu1 %v3898_v59 }
 0xb1e   : > { %3938 = vmatpush.msrb.mxu1 %v3897_v16 }
 0xb7a   : > { %v3785_v43 = vpop.f32.mrf.mxu0 }
 0xb88   : > { %v3630_v55 = vpop.f32.mrf.mxu1 }
 0xb89   : > { %v3673_v14 = vadd.f32 %v3630_v55, %v1847_v1 }
 0xb8b   : > { %v4199_v2 = vmul.f32 -1.442695, %v3673_v14 }
 0xb8d   : > { %4409 = vpow2.f32 %v4199_v2  ;;  %v3882_v2 = vld [vmem:[#allocation6 + $0x40] sm:$0xff] }
 0xb8e   : > { %v3650_v29 = vpop.f32.mrf.mxu2  ;;  %3917 = vmatpush.msrb.mxu0 %v3882_v2 }
 0xb8f   : > { %v3674_v31 = vadd.f32 %v3650_v29, %v1867_v10  ;;  %v3670_v27 = vpop.f32.mrf.mxu3 }
 0xb90   : > { %v3713_v11 = vadd.f32 %v6137_v20, %v3670_v27  ;;  %3918 = vmatpush.msrb.mxu0 %v3881_v15  ;;  %v3805_v44 = vpop.f32.mrf.mxu1 }
 0xb91   : > { %v4200_v34 = vmul.f32 -1.442695, %v3674_v31  ;;  %v3896_v31 = vld [vmem:[#allocation6 + $0xb0] sm:$0xff] }
 0xb92   : > { %3919 = vmatpush.msrb.mxu0 %v3880_v26  ;;  %3939 = vmatpush.msrb.mxu1 %v3896_v31 }
 0xb93   : > { %v4410_v38 = vpop.eup %4409  ;;  %4411 = vpow2.f32 %v4200_v34 }
 0xb94   : > { %v3681_v28 = vadd.f32 1.0, %v4410_v38  ;;  %3920 = vmatpush.msrb.mxu0 %v3879_v37  ;;  %3940 = vmatpush.msrb.mxu1 %v3895_v50  ;;  %v3894_v38 = vld [vmem:[#allocation6 + $0xa0] sm:$0xff] }
 0xb96   : > { %4413 = vrcp.f32 %v3681_v28  ;;  %v3694_v56 = vand.u32 2147483648, %v3681_v28  ;;  %v3692_v4 = vand.u32 2147483647, %v3681_v28  ;;  %vm3688_vm13 = vweird.f32 %v3681_v28  ;;  %3921 = vmatpush.msrb.mxu0 %v3878_v61  ;;  %3941 = vmatpush.msrb.mxu1 %v3894_v38 }
 0xb98   : > { %v3695_v23 = vor.u32 1.1754944e-38, %v3694_v56  ;;  %vm3693_vm15 = vcmp.eq.f32.partialorder %v3692_v4, 8.507059e+37  ;;  %3922 = vmatpush.msrb.mxu0 %v3877_v62  ;;  %3942 = vmatpush.msrb.mxu1 %v3893_v52  ;;  %v3866_v56 = vld [vmem:[%s6457_s10] sm:$0x3] }
 0xb99   : > { %v4412_v39 = vpop.eup %4411  ;;  %v3868_v27 = vperm.slane %v3866_v56, 0 }
 0xb9a   : > { %v6409_v40 = vadd.f32 1.0, %v4412_v39  ;;  %v3892_v39 = vld [vmem:[#allocation6 + $0x90] sm:$0xff] }
 0xb9b   : > { %3943 = vmatpush.msrb.mxu1 %v3892_v39 }
 0xb9c   : > { %v4414_v45 = vpop.eup %4413  ;;  %4415 = vrcp.f32 %v6409_v40  ;;  %v3709_v55 = vand.u32 2147483648, %v6409_v40  ;;  %v3707_v25 = vand.u32 2147483647, %v6409_v40  ;;  %vm3703_vm1 = vweird.f32 %v6409_v40 }
 0xb9d   : > { %v3684_v47 = vmul.f32 %v4414_v45, %v3681_v28  ;;  %vm3689_vm12 = vweird.f32 %v4414_v45  ;;  %v3876_v28 = vld [vmem:[#allocation6 + $0x10] sm:$0xff]  ;;  %3944 = vmatpush.msrb.mxu1 %v3891_v13 }
 0xb9e   : > { %vm3690_vm14 = vmor %vm3688_vm13, %vm3689_vm12  ;;  %v3710_v18 = vor.u32 1.1754944e-38, %v3709_v55  ;;  %vm3708_vm3 = vcmp.eq.f32.partialorder %v3707_v25, 8.507059e+37  ;;  %3923 = vmatpush.msrb.mxu0 %v3876_v28 }
 0xb9f   : > { %v3685_v53 = vsub.f32 1.0, %v3684_v47  ;;  %3945 = vmatpush.msrb.mxu1 %v3890_v41 }
 0xba1   : > { %v3686_v57 = vmul.f32 %v4414_v45, %v3685_v53 }
 0xba2   : > { %v4416_v24 = vpop.eup %4415 }
 0xba3   : > { %v3699_v5 = vmul.f32 %v4416_v24, %v6409_v40  ;;  %v3687_v7 = vadd.f32 %v4414_v45, %v3686_v57  ;;  %vm3704_vm0 = vweird.f32 %v4416_v24  ;;  %v3874_v40 = vld [vmem:[#allocation6] sm:$0xff]  ;;  %v3860_v57 = vperm.slane %v3858_v48, 0 }
 0xba4   : > { %vm3705_vm2 = vmor %vm3703_vm1, %vm3704_vm0 }
 0xba5   : > { %v3700_v8 = vsub.f32 1.0, %v3699_v5  ;;  %v3691_v0 = vsel %vm3690_vm14, %v4414_v45, %v3687_v7  ;;  %v3850_v45 = vperm.slane %v3848_v42, 0  ;;  %v3869_v5 = vperm.slane %v3866_v56, 1 }
 0xba6   : > { %v3696_v1 = vsel %vm3693_vm15, %v3695_v23, %v3691_v0 }
 0xba7   : > { %v3701_v49 = vmul.f32 %v4416_v24, %v3700_v8  ;;  %v3714_v14 = vmul.f32 %v3713_v11, %v3696_v1  ;;  %v4258_v8 = vld [vmem:[%s6459_s12] ss:$0 sm:$0xff] }
 0xba9   : > { %v3702_v20 = vadd.f32 %v4416_v24, %v3701_v49  ;;  %v3715_v12 = vadd.f32 %v3714_v14, %v1887_v22 }
 0xbab   : > { %v3706_v10 = vsel %vm3705_vm2, %v4416_v24, %v3702_v20  ;;  %4417 = vtanh.f32 %v3715_v12 }
 0xbac   : > { %v3711_v29 = vsel %vm3708_vm3, %v3710_v18, %v3706_v10 }
 0xbad   : > { %v3717_v33 = vsub.f32 1.0, %v3711_v29  ;;  %v3719_v35 = vmul.f32 %v3711_v29, %v6291_v3  ;;  %v3875_v3 = vld [vmem:[#allocation6 + $0x8] sm:$0xff] }
 0xbae   : > { %3924 = vmatpush.msrb.mxu0 %v3875_v3 }
 0xbb0   : > { %3925 = vmatpush.msrb.mxu0 %v3874_v40 }
 0xbb1   : > { %v4418_v30 = vpop.eup %4417 }
 0xbb2   : > { %v3718_v34 = vmul.f32 %v4418_v30, %v3717_v33 }
 0xbb4   : > { %v3720_v36 = vadd.f32 %v3719_v35, %v3718_v34 }
 0xbb6   : > { %3824 = vmatmul.f32.vlgmr.msra.gmra.mxu2 %v3720_v36  ;;  %3844 = vmatmul.f32.vlgmr.msra.gmra.mxu3 %v3720_v36 }
 0xc39   : > { %v3825_v47 = vpop.f32.mrf.mxu2  ;;  %v3845_v51 = vpop.f32.mrf.mxu3 }
 0xc3a   : > { %v3826_v53 = vadd.f32 %v3825_v47, %v3785_v43  ;;  %v3846_v54 = vadd.f32 %v3845_v51, %v3805_v44 }
 0xc3c   : > { %v3854_v58 = vadd.f32 %v3850_v45, %v3826_v53  ;;  %v3855_v4 = vadd.f32 %v3851_v46, %v3846_v54 }
 0xc3e   : > { %v3856_v24 = vmax.f32 %v3854_v58, 0.0  ;;  %v3857_v17 = vmax.f32 %v3855_v4, 0.0 }
 0xc40   : > { %v3864_v7 = vmul.f32 %v3860_v57, %v3856_v24  ;;  %v3865_v19 = vmul.f32 %v3861_v32, %v3857_v17 }
 0xc42   : > { %v3872_v23 = vadd.f32 %v3868_v27, %v3864_v7  ;;  %v3873_v63 = vadd.f32 %v3869_v5, %v3865_v19 }
 0xc44   : > { %3926 = vmatmul.f32.vlgmr.msrb.gmra.mxu0 %v3872_v23  ;;  %3946 = vmatmul.f32.vlgmr.msrb.gmra.mxu1 %v3873_v63 }
 0xcc1   : > { %v3927_v0 = vpop.f32.mrf.mxu0  ;;  %v3947_v6 = vpop.f32.mrf.mxu1 }
 0xcc2   : > { %v3928_v11 = vadd.f32 %v4258_v8, %v3927_v0 }
 0xcc4   : > { %v3948_v21 = vadd.f32 %v3947_v6, %v3928_v11 }
 0xcc6   : > { %3950 = vst [vmem:[%s584_s17] sm:$0xff] %v3948_v21 }
 0xcc7 PF: > { %s6731_s27 = sld [smem:[#allocation10_spill]]  ;;  %s6733_s25 = smov %s4613_s26 }
 0xcc8   : > { %s6732_s20 = sld [smem:[#allocation11_spill]] }
 0xccd   : > { %p22_p12 = scmp.ge.s32.totalorder %s6731_s27, 4  }
 0xcce   : > { %s6734_s26 = smov %s6732_s20 }
 0xccf   :  { %24 = sbr.rel (!%p22_p12) target bundleno = 7 (0x7), region = 203 }
 0xcd4   :  { %3970 = vsyncpa [#allocation5], 1 }
 0xcd5   :  { %3972 = vsyncpa [#allocation5 + $0x1], 1 }
 0xcd6   :  { %3973 = vsyncpa [#allocation7], 1 }

</bundles_post_ra>
